<compile_context>
chip_gen: v5e
topology: v5e:2x2
jax: 0.10.0
libtpu: 0.0.40
codegen_flags: <defaults>
</compile_context>

<pallas_src>
import functools
import math

import jax
import jax.numpy as jnp
from jax import lax
from jax.experimental import pallas as pl
from jax.experimental.pallas import tpu as pltpu


# ----------------------------------------------------------------------------
# Parameter preprocessing (plain JAX, parameter-sized tensors only).
# ----------------------------------------------------------------------------
def build_gabor_banks(sigma, theta, lambda_, psi, gamma, K):
    """Real/imag Gabor kernels, each of shape (C_out, C_in, K, K)."""
    half = (K - 1) / 2.0
    coords = jnp.arange(K, dtype=jnp.float32) - half
    ys, xs = jnp.meshgrid(coords, coords, indexing="ij")
    s = sigma[..., None, None].astype(jnp.float32)
    t = theta[..., None, None].astype(jnp.float32)
    l = lambda_[..., None, None].astype(jnp.float32)
    p = psi[..., None, None].astype(jnp.float32)
    g = gamma[..., None, None].astype(jnp.float32)
    x_t = xs * jnp.cos(t) + ys * jnp.sin(t)
    y_t = -xs * jnp.sin(t) + ys * jnp.cos(t)
    # NOTE: no clamping of sigma/lambda_ (keeps the PyTorch module's semantics).
    env = jnp.exp(-(x_t ** 2 + (g ** 2) * (y_t ** 2)) / (2.0 * s ** 2))
    arg = 2.0 * math.pi * x_t / l + p
    return env * jnp.cos(arg), env * jnp.sin(arg)


def compose_effective_filters(g_re, g_im, weight, K):
    """Pre-compose Gabor stage with the conv weight (exact for padding=0).

    eff[i, o, c, u, v] = sum_{kh,kw} g_re[i,c,u-kh,v-kw] * w[o,0,kh,kw]
                                   + g_im[i,c,u-kh,v-kw] * w[o,1,kh,kw]
    Returned shape: (C_outG, C_out, C_in, 2K-1, 2K-1).
    """
    C_outG, C_in = g_re.shape[:2]
    C_out = weight.shape[0]
    Ke = 2 * K - 1
    w = weight.astype(jnp.float32)
    eff = jnp.zeros((C_outG, C_out, C_in, Ke, Ke), jnp.float32)
    for kh in range(K):
        for kw in range(K):
            w_re = w[None, :, 0, kh, kw, None, None, None]   # (1, C_out, 1, 1, 1)
            w_im = w[None, :, 1, kh, kw, None, None, None]
            term = g_re[:, None] * w_re + g_im[:, None] * w_im
            eff = eff.at[:, :, :, kh:kh + K, kw:kw + K].add(term)
    return eff


def build_toeplitz_weights(eff, W, Wo, pad, Ke):
    """Banded matrices so the whole conv becomes row-block @ T matmuls.

    T[c*Ke + u, w, e*Wo + x] = eff_e[e, c, u, w + pad - x]   (0 outside the band)
    Folding the horizontal 'same' padding into the band means the kernel only
    needs vertical zero padding and fully lane-aligned loads/stores.
    """
    C_outG, C_out, C_in = eff.shape[0], eff.shape[1], eff.shape[2]
    C_outE = C_outG * C_out
    eff_e = eff.reshape(C_outE, C_in, Ke, Ke)                       # (e, c, u, v)
    eff_cue = jnp.transpose(eff_e, (1, 2, 0, 3)).reshape(C_in * Ke, C_outE, Ke)
    w_idx = jnp.arange(W)[:, None]
    x_idx = jnp.arange(Wo)[None, :]
    v = w_idx + pad - x_idx                                         # (W, Wo)
    valid = (v >= 0) & (v < Ke)
    v_c = jnp.clip(v, 0, Ke - 1)
    g = jnp.take(eff_cue, v_c, axis=2)                              # (CU, E, W, Wo)
    t = jnp.where(valid[None, None], g, 0.0)
    t = jnp.transpose(t, (0, 2, 1, 3)).reshape(C_in * Ke, W, C_outE * Wo)
    return t.astype(jnp.float32)


# ----------------------------------------------------------------------------
# Fused Pallas kernel: Gabor filtering + conv2d in one pass, MXU contraction.
# ----------------------------------------------------------------------------
def _gabor_fused_kernel(t_ref, x_ref, out_ref, xpad_ref, *,
                        C_in, Ke, pad, H, Ho, C_lane):
    """grid = (num_batch_chunks,)

    t_ref   : VMEM (C_in*Ke, W, C_lane)      composed Toeplitz weights (resident)
    x_ref   : VMEM (Bn, C_in, H, W)          batch chunk (unpadded)
    out_ref : VMEM (Bn, Ho, C_lane)          lane-dense fused output
    xpad_ref: VMEM (Bn, C_in, H+2*pad, W)    scratch: vertically zero-padded x
    """
    Bn = x_ref.shape[0]

    # In-kernel vertical 'same' padding (no XLA pad pass over x; the horizontal
    # padding is already folded into the Toeplitz band of t_ref).
    xpad_ref[...] = jnp.zeros_like(xpad_ref)
    xpad_ref[:, :, pad:pad + H, :] = x_ref[...]

    for b in range(Bn):
        acc = jnp.zeros((Ho, C_lane), jnp.float32)
        for c in range(C_in):
            for u in range(Ke):
                row = xpad_ref[b, c, u:u + Ho, :]          # (Ho, W), lane-aligned
                acc = acc + jnp.dot(
                    row, t_ref[c * Ke + u],
                    preferred_element_type=jnp.float32,
                    precision=lax.Precision.HIGHEST)
        out_ref[b] = acc


# ----------------------------------------------------------------------------
# Forward wrapper
# ----------------------------------------------------------------------------
def gabor_conv2d_forward(x, params, *, kernel_size, stride=1, padding=0,
                         batch_block=None, vmem_budget_bytes=4 * 1024 * 1024):
    sigma = params["sigma"].astype(jnp.float32)
    theta = params["theta"].astype(jnp.float32)
    lambda_ = params["lambda_"].astype(jnp.float32)
    psi = params["psi"].astype(jnp.float32)
    gamma = params["gamma"].astype(jnp.float32)
    weight = params["weight"].astype(jnp.float32)

    C_outG, C_in = sigma.shape
    C_out = weight.shape[0]
    N, Cx, H, W = x.shape
    K = kernel_size
    assert Cx == C_in
    assert C_in == 2, ("stack([real, imag], dim=1) gives 2 channels; the final "
                       "conv2d is only well-defined when in_channels == 2")
    assert weight.shape == (C_out, 2, K, K) and C_out == C_outG
    assert K % 2 == 1, "only odd K gives a well-defined 'same' Gabor stage"
    # TODO(synk): padding > 0 zero-pads the *intermediate* response maps, which
    # cannot be folded into the pre-composed filter; needs a two-stage path.
    assert padding == 0

    Ke = 2 * K - 1
    pad = K // 2
    Hp = H + 2 * pad
    Ho, Wo = H - K + 1, W - K + 1
    C_outE = C_outG * C_out
    C_lane = C_outE * Wo
    x = x.astype(jnp.float32)

    # ---- pre-compose both linear stages on the parameters (tiny tensors) ----
    g_re, g_im = build_gabor_banks(sigma, theta, lambda_, psi, gamma, K)
    eff = compose_effective_filters(g_re, g_im, weight, K)
    t_full = build_toeplitz_weights(eff, W, Wo, pad, Ke)   # (C_in*Ke, W, C_lane)

    # ---- batch chunking: several images per grid step, capped by VMEM -------
    per_img_bytes = 4 * (2 * C_in * H * W + 2 * Ho * C_lane + C_in * Hp * W)
    if batch_block is None:
        batch_block = max(1, min(N, 8, vmem_budget_bytes // max(per_img_bytes, 1)))
    Bn = int(batch_block)
    nblocks = -(-N // Bn)
    Npad = nblocks * Bn
    if Npad != N:
        x = jnp.pad(x, ((0, Npad - N), (0, 0), (0, 0), (0, 0)))

    kernel = functools.partial(
        _gabor_fused_kernel,
        C_in=C_in, Ke=Ke, pad=pad, H=H, Ho=Ho, C_lane=C_lane)

    out_k = pl.pallas_call(
        kernel,
        out_shape=jax.ShapeDtypeStruct((Npad, Ho, C_lane), jnp.float32),
        grid=(nblocks,),
        in_specs=[
            # composed weights: one block, stays resident across all grid steps
            pl.BlockSpec((C_in * Ke, W, C_lane), lambda nb: (0, 0, 0)),
            pl.BlockSpec((Bn, C_in, H, W), lambda nb: (nb, 0, 0, 0)),
        ],
        out_specs=pl.BlockSpec((Bn, Ho, C_lane), lambda nb: (nb, 0, 0)),
        scratch_shapes=[pltpu.VMEM((Bn, C_in, Hp, W), jnp.float32)],
        compiler_params=pltpu.CompilerParams(
            # independent batch chunks -> shard across v7x's two TensorCores
            dimension_semantics=("parallel",),
            # explicit, safe on all generations (v7x physical VMEM is 64 MiB)
            vmem_limit_bytes=32 * 1024 * 1024,
        ),
    )(t_full, x)

    # ---- unpack the lane-dense output back to PyTorch's layout --------------
    out_k = out_k[:N]                                   # (N, Ho, C_outG*C_out*Wo)
    out = out_k.reshape(N, Ho, C_outG, C_out, Wo)
    out = jnp.transpose(out, (2, 0, 3, 1, 4)).reshape(C_outG * N, C_out, Ho, Wo)
    if stride != 1:
        out = out[:, :, ::stride, ::stride]             # exact for padding == 0
    return out


# ----------------------------------------------------------------------------
# Pure-JAX reference (same semantics) for correctness checking.
# ----------------------------------------------------------------------------
def reference_forward(x, params, *, kernel_size, stride=1, padding=0):
    K = kernel_size
    C_outG, _ = params["sigma"].shape
    g_re, g_im = build_gabor_banks(params["sigma"], params["theta"],
                                   params["lambda_"], params["psi"],
                                   params["gamma"], K)
    pad = K // 2
    dn = ("NCHW", "OIHW", "NCHW")
    hp = lax.Precision.HIGHEST
    resp_re = lax.conv_general_dilated(x, g_re, (1, 1), [(pad, pad), (pad, pad)],
                                       dimension_numbers=dn, precision=hp)
    resp_im = lax.conv_general_dilated(x, g_im, (1, 1), [(pad, pad), (pad, pad)],
                                       dimension_numbers=dn, precision=hp)
    filters = jnp.concatenate(
        [jnp.stack([resp_re[:, i], resp_im[:, i]], axis=1) for i in range(C_outG)],
        axis=0)
    out = lax.conv_general_dilated(filters, params["weight"], (stride, stride),
                                   [(padding, padding), (padding, padding)],
                                   dimension_numbers=dn, precision=hp)
    return out


if __name__ == "__main__":
    key = jax.random.PRNGKey(0)
    in_channels, out_channels, kernel_size = 2, 3, 5
    N, H, W = 2, 16, 16

    ks = jax.random.split(key, 7)
    params = {
        "sigma":   jax.random.normal(ks[0], (out_channels, in_channels), jnp.float32),
        "theta":   jax.random.normal(ks[1], (out_channels, in_channels), jnp.float32),
        "lambda_": jax.random.normal(ks[2], (out_channels, in_channels), jnp.float32),
        "psi":     jax.random.normal(ks[3], (out_channels, in_channels), jnp.float32),
        "gamma":   jax.random.normal(ks[4], (out_channels, in_channels), jnp.float32),
        "weight":  jax.random.normal(
            ks[5], (out_channels, in_channels, kernel_size, kernel_size), jnp.float32),
    }
    x = jax.random.normal(ks[6], (N, in_channels, H, W), jnp.float32)

    out = gabor_conv2d_forward(x, params, kernel_size=kernel_size, stride=1, padding=0)
    out = jax.block_until_ready(out)

    ref = reference_forward(x, params, kernel_size=kernel_size, stride=1, padding=0)
    assert out.shape == (N * out_channels, out_channels,
                         H - kernel_size + 1, W - kernel_size + 1), out.shape
    max_err = float(jnp.max(jnp.abs(out - ref)))
    assert jnp.allclose(out, ref, rtol=5e-3, atol=5e-3), f"max abs err {max_err}"
    print("KERNEL_OK")
</pallas_src>

<mosaic_0001>
module attributes {stable_mosaic.version = 11 : i64} {
  func.func @_gabor_fused_kernel(%arg0: i32, %arg1: memref<18x16x108xf32, #tpu.memory_space<vmem>>, %arg2: memref<2x2x16x16xf32, #tpu.memory_space<vmem>>, %arg3: memref<2x12x108xf32, #tpu.memory_space<vmem>>, %arg4: memref<2x2x20x16xf32, #tpu.memory_space<vmem>>) attributes {dimension_semantics = [#tpu.dimension_semantics<parallel>], iteration_bounds = array<i64: 1>, scalar_prefetch = 0 : i64, scratch_operands = 1 : i64, tpu.core_type = #tpu.core_type<tc>, window_params = [{pipeline_mode = #tpu.pipeline_mode<synchronous>, transform_indices = @transform_0, window_bounds = array<i64: 18, 16, 108>}, {transform_indices = @transform_1, window_bounds = array<i64: 2, 2, 16, 16>}, {transform_indices = @transform_2, window_bounds = array<i64: 2, 12, 108>}]} {
    %cst = arith.constant 0.000000e+00 : f32
    %0 = vector.broadcast %cst : f32 to vector<2x2x20x16xf32>
    %c0 = arith.constant 0 : index
    %c0_0 = arith.constant 0 : index
    %c0_1 = arith.constant 0 : index
    %c0_2 = arith.constant 0 : index
    %1 = vector.load %arg4[%c0, %c0_0, %c0_1, %c0_2] : memref<2x2x20x16xf32, #tpu.memory_space<vmem>>, vector<2x2x20x16xf32>
    tpu.vector_store %arg4[%c0, %c0_0, %c0_1, %c0_2], %0 {strides = array<i32>} : memref<2x2x20x16xf32, #tpu.memory_space<vmem>>, vector<2x2x20x16xf32>,
    %c0_3 = arith.constant 0 : index
    %c0_4 = arith.constant 0 : index
    %c0_5 = arith.constant 0 : index
    %c0_6 = arith.constant 0 : index
    %2 = vector.load %arg2[%c0_3, %c0_4, %c0_5, %c0_6] : memref<2x2x16x16xf32, #tpu.memory_space<vmem>>, vector<2x2x16x16xf32>
    %c0_7 = arith.constant 0 : index
    %c0_8 = arith.constant 0 : index
    %c2 = arith.constant 2 : index
    %c0_9 = arith.constant 0 : index
    %3 = vector.load %arg4[%c0_7, %c0_8, %c2, %c0_9] : memref<2x2x20x16xf32, #tpu.memory_space<vmem>>, vector<2x2x16x16xf32>
    tpu.vector_store %arg4[%c0_7, %c0_8, %c2, %c0_9], %2 {strides = array<i32>} : memref<2x2x20x16xf32, #tpu.memory_space<vmem>>, vector<2x2x16x16xf32>,
    %cst_10 = arith.constant 0.000000e+00 : f32
    %4 = vector.broadcast %cst_10 : f32 to vector<12x108xf32>
    %c0_11 = arith.constant 0 : index
    %c0_12 = arith.constant 0 : index
    %c0_13 = arith.constant 0 : index
    %c0_14 = arith.constant 0 : index
    %5 = vector.load %arg4[%c0_11, %c0_12, %c0_13, %c0_14] : memref<2x2x20x16xf32, #tpu.memory_space<vmem>>, vector<1x1x12x16xf32>
    %6 = vector.shape_cast %5 : vector<1x1x12x16xf32> to vector<12x16xf32>
    %c0_15 = arith.constant 0 : index
    %c0_16 = arith.constant 0 : index
    %c0_17 = arith.constant 0 : index
    %7 = vector.load %arg1[%c0_15, %c0_16, %c0_17] : memref<18x16x108xf32, #tpu.memory_space<vmem>>, vector<1x16x108xf32>
    %8 = vector.shape_cast %7 : vector<1x16x108xf32> to vector<16x108xf32>
    %cst_18 = arith.constant dense<0.000000e+00> : vector<12x108xf32>
    %9 = tpu.matmul %6, %8, %cst_18 {dimension_numbers = #tpu.dot_dimension_numbers<[1], [0], [0], [1], [0, 0, 1, 1], [], []>, precision = #tpu.contract_precision<fp32>} : vector<12x16xf32>, vector<16x108xf32>, vector<12x108xf32> -> vector<12x108xf32>
    %10 = arith.addf %4, %9 : vector<12x108xf32>
    %c0_19 = arith.constant 0 : index
    %c0_20 = arith.constant 0 : index
    %c1 = arith.constant 1 : index
    %c0_21 = arith.constant 0 : index
    %11 = vector.load %arg4[%c0_19, %c0_20, %c1, %c0_21] : memref<2x2x20x16xf32, #tpu.memory_space<vmem>>, vector<1x1x12x16xf32>
    %12 = vector.shape_cast %11 : vector<1x1x12x16xf32> to vector<12x16xf32>
    %c1_22 = arith.constant 1 : index
    %c0_23 = arith.constant 0 : index
    %c0_24 = arith.constant 0 : index
    %13 = vector.load %arg1[%c1_22, %c0_23, %c0_24] : memref<18x16x108xf32, #tpu.memory_space<vmem>>, vector<1x16x108xf32>
    %14 = vector.shape_cast %13 : vector<1x16x108xf32> to vector<16x108xf32>
    %cst_25 = arith.constant dense<0.000000e+00> : vector<12x108xf32>
    %15 = tpu.matmul %12, %14, %cst_25 {dimension_numbers = #tpu.dot_dimension_numbers<[1], [0], [0], [1], [0, 0, 1, 1], [], []>, precision = #tpu.contract_precision<fp32>} : vector<12x16xf32>, vector<16x108xf32>, vector<12x108xf32> -> vector<12x108xf32>
    %16 = arith.addf %10, %15 : vector<12x108xf32>
    %c0_26 = arith.constant 0 : index
    %c0_27 = arith.constant 0 : index
    %c2_28 = arith.constant 2 : index
    %c0_29 = arith.constant 0 : index
    %17 = vector.load %arg4[%c0_26, %c0_27, %c2_28, %c0_29] : memref<2x2x20x16xf32, #tpu.memory_space<vmem>>, vector<1x1x12x16xf32>
    %18 = vector.shape_cast %17 : vector<1x1x12x16xf32> to vector<12x16xf32>
    %c2_30 = arith.constant 2 : index
    %c0_31 = arith.constant 0 : index
    %c0_32 = arith.constant 0 : index
    %19 = vector.load %arg1[%c2_30, %c0_31, %c0_32] : memref<18x16x108xf32, #tpu.memory_space<vmem>>, vector<1x16x108xf32>
    %20 = vector.shape_cast %19 : vector<1x16x108xf32> to vector<16x108xf32>
    %cst_33 = arith.constant dense<0.000000e+00> : vector<12x108xf32>
    %21 = tpu.matmul %18, %20, %cst_33 {dimension_numbers = #tpu.dot_dimension_numbers<[1], [0], [0], [1], [0, 0, 1, 1], [], []>, precision = #tpu.contract_precision<fp32>} : vector<12x16xf32>, vector<16x108xf32>, vector<12x108xf32> -> vector<12x108xf32>
    %22 = arith.addf %16, %21 : vector<12x108xf32>
    %c0_34 = arith.constant 0 : index
    %c0_35 = arith.constant 0 : index
    %c3 = arith.constant 3 : index
    %c0_36 = arith.constant 0 : index
    %23 = vector.load %arg4[%c0_34, %c0_35, %c3, %c0_36] : memref<2x2x20x16xf32, #tpu.memory_space<vmem>>, vector<1x1x12x16xf32>
    %24 = vector.shape_cast %23 : vector<1x1x12x16xf32> to vector<12x16xf32>
    %c3_37 = arith.constant 3 : index
    %c0_38 = arith.constant 0 : index
    %c0_39 = arith.constant 0 : index
    %25 = vector.load %arg1[%c3_37, %c0_38, %c0_39] : memref<18x16x108xf32, #tpu.memory_space<vmem>>, vector<1x16x108xf32>
    %26 = vector.shape_cast %25 : vector<1x16x108xf32> to vector<16x108xf32>
    %cst_40 = arith.constant dense<0.000000e+00> : vector<12x108xf32>
    %27 = tpu.matmul %24, %26, %cst_40 {dimension_numbers = #tpu.dot_dimension_numbers<[1], [0], [0], [1], [0, 0, 1, 1], [], []>, precision = #tpu.contract_precision<fp32>} : vector<12x16xf32>, vector<16x108xf32>, vector<12x108xf32> -> vector<12x108xf32>
    %28 = arith.addf %22, %27 : vector<12x108xf32>
    %c0_41 = arith.constant 0 : index
    %c0_42 = arith.constant 0 : index
    %c4 = arith.constant 4 : index
    %c0_43 = arith.constant 0 : index
    %29 = vector.load %arg4[%c0_41, %c0_42, %c4, %c0_43] : memref<2x2x20x16xf32, #tpu.memory_space<vmem>>, vector<1x1x12x16xf32>
    %30 = vector.shape_cast %29 : vector<1x1x12x16xf32> to vector<12x16xf32>
    %c4_44 = arith.constant 4 : index
    %c0_45 = arith.constant 0 : index
    %c0_46 = arith.constant 0 : index
    %31 = vector.load %arg1[%c4_44, %c0_45, %c0_46] : memref<18x16x108xf32, #tpu.memory_space<vmem>>, vector<1x16x108xf32>
    %32 = vector.shape_cast %31 : vector<1x16x108xf32> to vector<16x108xf32>
    %cst_47 = arith.constant dense<0.000000e+00> : vector<12x108xf32>
    %33 = tpu.matmul %30, %32, %cst_47 {dimension_numbers = #tpu.dot_dimension_numbers<[1], [0], [0], [1], [0, 0, 1, 1], [], []>, precision = #tpu.contract_precision<fp32>} : vector<12x16xf32>, vector<16x108xf32>, vector<12x108xf32> -> vector<12x108xf32>
    %34 = arith.addf %28, %33 : vector<12x108xf32>
    %c0_48 = arith.constant 0 : index
    %c0_49 = arith.constant 0 : index
    %c5 = arith.constant 5 : index
    %c0_50 = arith.constant 0 : index
    %35 = vector.load %arg4[%c0_48, %c0_49, %c5, %c0_50] : memref<2x2x20x16xf32, #tpu.memory_space<vmem>>, vector<1x1x12x16xf32>
    %36 = vector.shape_cast %35 : vector<1x1x12x16xf32> to vector<12x16xf32>
    %c5_51 = arith.constant 5 : index
    %c0_52 = arith.constant 0 : index
    %c0_53 = arith.constant 0 : index
    %37 = vector.load %arg1[%c5_51, %c0_52, %c0_53] : memref<18x16x108xf32, #tpu.memory_space<vmem>>, vector<1x16x108xf32>
    %38 = vector.shape_cast %37 : vector<1x16x108xf32> to vector<16x108xf32>
    %cst_54 = arith.constant dense<0.000000e+00> : vector<12x108xf32>
    %39 = tpu.matmul %36, %38, %cst_54 {dimension_numbers = #tpu.dot_dimension_numbers<[1], [0], [0], [1], [0, 0, 1, 1], [], []>, precision = #tpu.contract_precision<fp32>} : vector<12x16xf32>, vector<16x108xf32>, vector<12x108xf32> -> vector<12x108xf32>
    %40 = arith.addf %34, %39 : vector<12x108xf32>
    %c0_55 = arith.constant 0 : index
    %c0_56 = arith.constant 0 : index
    %c6 = arith.constant 6 : index
    %c0_57 = arith.constant 0 : index
    %41 = vector.load %arg4[%c0_55, %c0_56, %c6, %c0_57] : memref<2x2x20x16xf32, #tpu.memory_space<vmem>>, vector<1x1x12x16xf32>
    %42 = vector.shape_cast %41 : vector<1x1x12x16xf32> to vector<12x16xf32>
    %c6_58 = arith.constant 6 : index
    %c0_59 = arith.constant 0 : index
    %c0_60 = arith.constant 0 : index
    %43 = vector.load %arg1[%c6_58, %c0_59, %c0_60] : memref<18x16x108xf32, #tpu.memory_space<vmem>>, vector<1x16x108xf32>
    %44 = vector.shape_cast %43 : vector<1x16x108xf32> to vector<16x108xf32>
    %cst_61 = arith.constant dense<0.000000e+00> : vector<12x108xf32>
    %45 = tpu.matmul %42, %44, %cst_61 {dimension_numbers = #tpu.dot_dimension_numbers<[1], [0], [0], [1], [0, 0, 1, 1], [], []>, precision = #tpu.contract_precision<fp32>} : vector<12x16xf32>, vector<16x108xf32>, vector<12x108xf32> -> vector<12x108xf32>
    %46 = arith.addf %40, %45 : vector<12x108xf32>
    %c0_62 = arith.constant 0 : index
    %c0_63 = arith.constant 0 : index
    %c7 = arith.constant 7 : index
    %c0_64 = arith.constant 0 : index
    %47 = vector.load %arg4[%c0_62, %c0_63, %c7, %c0_64] : memref<2x2x20x16xf32, #tpu.memory_space<vmem>>, vector<1x1x12x16xf32>
    %48 = vector.shape_cast %47 : vector<1x1x12x16xf32> to vector<12x16xf32>
    %c7_65 = arith.constant 7 : index
    %c0_66 = arith.constant 0 : index
    %c0_67 = arith.constant 0 : index
    %49 = vector.load %arg1[%c7_65, %c0_66, %c0_67] : memref<18x16x108xf32, #tpu.memory_space<vmem>>, vector<1x16x108xf32>
    %50 = vector.shape_cast %49 : vector<1x16x108xf32> to vector<16x108xf32>
    %cst_68 = arith.constant dense<0.000000e+00> : vector<12x108xf32>
    %51 = tpu.matmul %48, %50, %cst_68 {dimension_numbers = #tpu.dot_dimension_numbers<[1], [0], [0], [1], [0, 0, 1, 1], [], []>, precision = #tpu.contract_precision<fp32>} : vector<12x16xf32>, vector<16x108xf32>, vector<12x108xf32> -> vector<12x108xf32>
    %52 = arith.addf %46, %51 : vector<12x108xf32>
    %c0_69 = arith.constant 0 : index
    %c0_70 = arith.constant 0 : index
    %c8 = arith.constant 8 : index
    %c0_71 = arith.constant 0 : index
    %53 = vector.load %arg4[%c0_69, %c0_70, %c8, %c0_71] : memref<2x2x20x16xf32, #tpu.memory_space<vmem>>, vector<1x1x12x16xf32>
    %54 = vector.shape_cast %53 : vector<1x1x12x16xf32> to vector<12x16xf32>
    %c8_72 = arith.constant 8 : index
    %c0_73 = arith.constant 0 : index
    %c0_74 = arith.constant 0 : index
    %55 = vector.load %arg1[%c8_72, %c0_73, %c0_74] : memref<18x16x108xf32, #tpu.memory_space<vmem>>, vector<1x16x108xf32>
    %56 = vector.shape_cast %55 : vector<1x16x108xf32> to vector<16x108xf32>
    %cst_75 = arith.constant dense<0.000000e+00> : vector<12x108xf32>
    %57 = tpu.matmul %54, %56, %cst_75 {dimension_numbers = #tpu.dot_dimension_numbers<[1], [0], [0], [1], [0, 0, 1, 1], [], []>, precision = #tpu.contract_precision<fp32>} : vector<12x16xf32>, vector<16x108xf32>, vector<12x108xf32> -> vector<12x108xf32>
    %58 = arith.addf %52, %57 : vector<12x108xf32>
    %c0_76 = arith.constant 0 : index
    %c1_77 = arith.constant 1 : index
    %c0_78 = arith.constant 0 : index
    %c0_79 = arith.constant 0 : index
    %59 = vector.load %arg4[%c0_76, %c1_77, %c0_78, %c0_79] : memref<2x2x20x16xf32, #tpu.memory_space<vmem>>, vector<1x1x12x16xf32>
    %60 = vector.shape_cast %59 : vector<1x1x12x16xf32> to vector<12x16xf32>
    %c9 = arith.constant 9 : index
    %c0_80 = arith.constant 0 : index
    %c0_81 = arith.constant 0 : index
    %61 = vector.load %arg1[%c9, %c0_80, %c0_81] : memref<18x16x108xf32, #tpu.memory_space<vmem>>, vector<1x16x108xf32>
    %62 = vector.shape_cast %61 : vector<1x16x108xf32> to vector<16x108xf32>
    %cst_82 = arith.constant dense<0.000000e+00> : vector<12x108xf32>
    %63 = tpu.matmul %60, %62, %cst_82 {dimension_numbers = #tpu.dot_dimension_numbers<[1], [0], [0], [1], [0, 0, 1, 1], [], []>, precision = #tpu.contract_precision<fp32>} : vector<12x16xf32>, vector<16x108xf32>, vector<12x108xf32> -> vector<12x108xf32>
    %64 = arith.addf %58, %63 : vector<12x108xf32>
    %c0_83 = arith.constant 0 : index
    %c1_84 = arith.constant 1 : index
    %c1_85 = arith.constant 1 : index
    %c0_86 = arith.constant 0 : index
    %65 = vector.load %arg4[%c0_83, %c1_84, %c1_85, %c0_86] : memref<2x2x20x16xf32, #tpu.memory_space<vmem>>, vector<1x1x12x16xf32>
    %66 = vector.shape_cast %65 : vector<1x1x12x16xf32> to vector<12x16xf32>
    %c10 = arith.constant 10 : index
    %c0_87 = arith.constant 0 : index
    %c0_88 = arith.constant 0 : index
    %67 = vector.load %arg1[%c10, %c0_87, %c0_88] : memref<18x16x108xf32, #tpu.memory_space<vmem>>, vector<1x16x108xf32>
    %68 = vector.shape_cast %67 : vector<1x16x108xf32> to vector<16x108xf32>
    %cst_89 = arith.constant dense<0.000000e+00> : vector<12x108xf32>
    %69 = tpu.matmul %66, %68, %cst_89 {dimension_numbers = #tpu.dot_dimension_numbers<[1], [0], [0], [1], [0, 0, 1, 1], [], []>, precision = #tpu.contract_precision<fp32>} : vector<12x16xf32>, vector<16x108xf32>, vector<12x108xf32> -> vector<12x108xf32>
    %70 = arith.addf %64, %69 : vector<12x108xf32>
    %c0_90 = arith.constant 0 : index
    %c1_91 = arith.constant 1 : index
    %c2_92 = arith.constant 2 : index
    %c0_93 = arith.constant 0 : index
    %71 = vector.load %arg4[%c0_90, %c1_91, %c2_92, %c0_93] : memref<2x2x20x16xf32, #tpu.memory_space<vmem>>, vector<1x1x12x16xf32>
    %72 = vector.shape_cast %71 : vector<1x1x12x16xf32> to vector<12x16xf32>
    %c11 = arith.constant 11 : index
    %c0_94 = arith.constant 0 : index
    %c0_95 = arith.constant 0 : index
    %73 = vector.load %arg1[%c11, %c0_94, %c0_95] : memref<18x16x108xf32, #tpu.memory_space<vmem>>, vector<1x16x108xf32>
    %74 = vector.shape_cast %73 : vector<1x16x108xf32> to vector<16x108xf32>
    %cst_96 = arith.constant dense<0.000000e+00> : vector<12x108xf32>
    %75 = tpu.matmul %72, %74, %cst_96 {dimension_numbers = #tpu.dot_dimension_numbers<[1], [0], [0], [1], [0, 0, 1, 1], [], []>, precision = #tpu.contract_precision<fp32>} : vector<12x16xf32>, vector<16x108xf32>, vector<12x108xf32> -> vector<12x108xf32>
    %76 = arith.addf %70, %75 : vector<12x108xf32>
    %c0_97 = arith.constant 0 : index
    %c1_98 = arith.constant 1 : index
    %c3_99 = arith.constant 3 : index
    %c0_100 = arith.constant 0 : index
    %77 = vector.load %arg4[%c0_97, %c1_98, %c3_99, %c0_100] : memref<2x2x20x16xf32, #tpu.memory_space<vmem>>, vector<1x1x12x16xf32>
    %78 = vector.shape_cast %77 : vector<1x1x12x16xf32> to vector<12x16xf32>
    %c12 = arith.constant 12 : index
    %c0_101 = arith.constant 0 : index
    %c0_102 = arith.constant 0 : index
    %79 = vector.load %arg1[%c12, %c0_101, %c0_102] : memref<18x16x108xf32, #tpu.memory_space<vmem>>, vector<1x16x108xf32>
    %80 = vector.shape_cast %79 : vector<1x16x108xf32> to vector<16x108xf32>
    %cst_103 = arith.constant dense<0.000000e+00> : vector<12x108xf32>
    %81 = tpu.matmul %78, %80, %cst_103 {dimension_numbers = #tpu.dot_dimension_numbers<[1], [0], [0], [1], [0, 0, 1, 1], [], []>, precision = #tpu.contract_precision<fp32>} : vector<12x16xf32>, vector<16x108xf32>, vector<12x108xf32> -> vector<12x108xf32>
    %82 = arith.addf %76, %81 : vector<12x108xf32>
    %c0_104 = arith.constant 0 : index
    %c1_105 = arith.constant 1 : index
    %c4_106 = arith.constant 4 : index
    %c0_107 = arith.constant 0 : index
    %83 = vector.load %arg4[%c0_104, %c1_105, %c4_106, %c0_107] : memref<2x2x20x16xf32, #tpu.memory_space<vmem>>, vector<1x1x12x16xf32>
    %84 = vector.shape_cast %83 : vector<1x1x12x16xf32> to vector<12x16xf32>
    %c13 = arith.constant 13 : index
    %c0_108 = arith.constant 0 : index
    %c0_109 = arith.constant 0 : index
    %85 = vector.load %arg1[%c13, %c0_108, %c0_109] : memref<18x16x108xf32, #tpu.memory_space<vmem>>, vector<1x16x108xf32>
    %86 = vector.shape_cast %85 : vector<1x16x108xf32> to vector<16x108xf32>
    %cst_110 = arith.constant dense<0.000000e+00> : vector<12x108xf32>
    %87 = tpu.matmul %84, %86, %cst_110 {dimension_numbers = #tpu.dot_dimension_numbers<[1], [0], [0], [1], [0, 0, 1, 1], [], []>, precision = #tpu.contract_precision<fp32>} : vector<12x16xf32>, vector<16x108xf32>, vector<12x108xf32> -> vector<12x108xf32>
    %88 = arith.addf %82, %87 : vector<12x108xf32>
    %c0_111 = arith.constant 0 : index
    %c1_112 = arith.constant 1 : index
    %c5_113 = arith.constant 5 : index
    %c0_114 = arith.constant 0 : index
    %89 = vector.load %arg4[%c0_111, %c1_112, %c5_113, %c0_114] : memref<2x2x20x16xf32, #tpu.memory_space<vmem>>, vector<1x1x12x16xf32>
    %90 = vector.shape_cast %89 : vector<1x1x12x16xf32> to vector<12x16xf32>
    %c14 = arith.constant 14 : index
    %c0_115 = arith.constant 0 : index
    %c0_116 = arith.constant 0 : index
    %91 = vector.load %arg1[%c14, %c0_115, %c0_116] : memref<18x16x108xf32, #tpu.memory_space<vmem>>, vector<1x16x108xf32>
    %92 = vector.shape_cast %91 : vector<1x16x108xf32> to vector<16x108xf32>
    %cst_117 = arith.constant dense<0.000000e+00> : vector<12x108xf32>
    %93 = tpu.matmul %90, %92, %cst_117 {dimension_numbers = #tpu.dot_dimension_numbers<[1], [0], [0], [1], [0, 0, 1, 1], [], []>, precision = #tpu.contract_precision<fp32>} : vector<12x16xf32>, vector<16x108xf32>, vector<12x108xf32> -> vector<12x108xf32>
    %94 = arith.addf %88, %93 : vector<12x108xf32>
    %c0_118 = arith.constant 0 : index
    %c1_119 = arith.constant 1 : index
    %c6_120 = arith.constant 6 : index
    %c0_121 = arith.constant 0 : index
    %95 = vector.load %arg4[%c0_118, %c1_119, %c6_120, %c0_121] : memref<2x2x20x16xf32, #tpu.memory_space<vmem>>, vector<1x1x12x16xf32>
    %96 = vector.shape_cast %95 : vector<1x1x12x16xf32> to vector<12x16xf32>
    %c15 = arith.constant 15 : index
    %c0_122 = arith.constant 0 : index
    %c0_123 = arith.constant 0 : index
    %97 = vector.load %arg1[%c15, %c0_122, %c0_123] : memref<18x16x108xf32, #tpu.memory_space<vmem>>, vector<1x16x108xf32>
    %98 = vector.shape_cast %97 : vector<1x16x108xf32> to vector<16x108xf32>
    %cst_124 = arith.constant dense<0.000000e+00> : vector<12x108xf32>
    %99 = tpu.matmul %96, %98, %cst_124 {dimension_numbers = #tpu.dot_dimension_numbers<[1], [0], [0], [1], [0, 0, 1, 1], [], []>, precision = #tpu.contract_precision<fp32>} : vector<12x16xf32>, vector<16x108xf32>, vector<12x108xf32> -> vector<12x108xf32>
    %100 = arith.addf %94, %99 : vector<12x108xf32>
    %c0_125 = arith.constant 0 : index
    %c1_126 = arith.constant 1 : index
    %c7_127 = arith.constant 7 : index
    %c0_128 = arith.constant 0 : index
    %101 = vector.load %arg4[%c0_125, %c1_126, %c7_127, %c0_128] : memref<2x2x20x16xf32, #tpu.memory_space<vmem>>, vector<1x1x12x16xf32>
    %102 = vector.shape_cast %101 : vector<1x1x12x16xf32> to vector<12x16xf32>
    %c16 = arith.constant 16 : index
    %c0_129 = arith.constant 0 : index
    %c0_130 = arith.constant 0 : index
    %103 = vector.load %arg1[%c16, %c0_129, %c0_130] : memref<18x16x108xf32, #tpu.memory_space<vmem>>, vector<1x16x108xf32>
    %104 = vector.shape_cast %103 : vector<1x16x108xf32> to vector<16x108xf32>
    %cst_131 = arith.constant dense<0.000000e+00> : vector<12x108xf32>
    %105 = tpu.matmul %102, %104, %cst_131 {dimension_numbers = #tpu.dot_dimension_numbers<[1], [0], [0], [1], [0, 0, 1, 1], [], []>, precision = #tpu.contract_precision<fp32>} : vector<12x16xf32>, vector<16x108xf32>, vector<12x108xf32> -> vector<12x108xf32>
    %106 = arith.addf %100, %105 : vector<12x108xf32>
    %c0_132 = arith.constant 0 : index
    %c1_133 = arith.constant 1 : index
    %c8_134 = arith.constant 8 : index
    %c0_135 = arith.constant 0 : index
    %107 = vector.load %arg4[%c0_132, %c1_133, %c8_134, %c0_135] : memref<2x2x20x16xf32, #tpu.memory_space<vmem>>, vector<1x1x12x16xf32>
    %108 = vector.shape_cast %107 : vector<1x1x12x16xf32> to vector<12x16xf32>
    %c17 = arith.constant 17 : index
    %c0_136 = arith.constant 0 : index
    %c0_137 = arith.constant 0 : index
    %109 = vector.load %arg1[%c17, %c0_136, %c0_137] : memref<18x16x108xf32, #tpu.memory_space<vmem>>, vector<1x16x108xf32>
    %110 = vector.shape_cast %109 : vector<1x16x108xf32> to vector<16x108xf32>
    %cst_138 = arith.constant dense<0.000000e+00> : vector<12x108xf32>
    %111 = tpu.matmul %108, %110, %cst_138 {dimension_numbers = #tpu.dot_dimension_numbers<[1], [0], [0], [1], [0, 0, 1, 1], [], []>, precision = #tpu.contract_precision<fp32>} : vector<12x16xf32>, vector<16x108xf32>, vector<12x108xf32> -> vector<12x108xf32>
    %112 = arith.addf %106, %111 : vector<12x108xf32>
    %c0_139 = arith.constant 0 : index
    %c0_140 = arith.constant 0 : index
    %c0_141 = arith.constant 0 : index
    %113 = vector.load %arg3[%c0_139, %c0_140, %c0_141] : memref<2x12x108xf32, #tpu.memory_space<vmem>>, vector<1x12x108xf32>
    %114 = vector.shape_cast %113 : vector<1x12x108xf32> to vector<12x108xf32>
    %115 = vector.shape_cast %112 : vector<12x108xf32> to vector<1x12x108xf32>
    tpu.vector_store %arg3[%c0_139, %c0_140, %c0_141], %115 {strides = array<i32>} : memref<2x12x108xf32, #tpu.memory_space<vmem>>, vector<1x12x108xf32>,
    %cst_142 = arith.constant 0.000000e+00 : f32
    %116 = vector.broadcast %cst_142 : f32 to vector<12x108xf32>
    %c1_143 = arith.constant 1 : index
    %c0_144 = arith.constant 0 : index
    %c0_145 = arith.constant 0 : index
    %c0_146 = arith.constant 0 : index
    %117 = vector.load %arg4[%c1_143, %c0_144, %c0_145, %c0_146] : memref<2x2x20x16xf32, #tpu.memory_space<vmem>>, vector<1x1x12x16xf32>
    %118 = vector.shape_cast %117 : vector<1x1x12x16xf32> to vector<12x16xf32>
    %c0_147 = arith.constant 0 : index
    %c0_148 = arith.constant 0 : index
    %c0_149 = arith.constant 0 : index
    %119 = vector.load %arg1[%c0_147, %c0_148, %c0_149] : memref<18x16x108xf32, #tpu.memory_space<vmem>>, vector<1x16x108xf32>
    %120 = vector.shape_cast %119 : vector<1x16x108xf32> to vector<16x108xf32>
    %cst_150 = arith.constant dense<0.000000e+00> : vector<12x108xf32>
    %121 = tpu.matmul %118, %120, %cst_150 {dimension_numbers = #tpu.dot_dimension_numbers<[1], [0], [0], [1], [0, 0, 1, 1], [], []>, precision = #tpu.contract_precision<fp32>} : vector<12x16xf32>, vector<16x108xf32>, vector<12x108xf32> -> vector<12x108xf32>
    %122 = arith.addf %116, %121 : vector<12x108xf32>
    %c1_151 = arith.constant 1 : index
    %c0_152 = arith.constant 0 : index
    %c1_153 = arith.constant 1 : index
    %c0_154 = arith.constant 0 : index
    %123 = vector.load %arg4[%c1_151, %c0_152, %c1_153, %c0_154] : memref<2x2x20x16xf32, #tpu.memory_space<vmem>>, vector<1x1x12x16xf32>
    %124 = vector.shape_cast %123 : vector<1x1x12x16xf32> to vector<12x16xf32>
    %c1_155 = arith.constant 1 : index
    %c0_156 = arith.constant 0 : index
    %c0_157 = arith.constant 0 : index
    %125 = vector.load %arg1[%c1_155, %c0_156, %c0_157] : memref<18x16x108xf32, #tpu.memory_space<vmem>>, vector<1x16x108xf32>
    %126 = vector.shape_cast %125 : vector<1x16x108xf32> to vector<16x108xf32>
    %cst_158 = arith.constant dense<0.000000e+00> : vector<12x108xf32>
    %127 = tpu.matmul %124, %126, %cst_158 {dimension_numbers = #tpu.dot_dimension_numbers<[1], [0], [0], [1], [0, 0, 1, 1], [], []>, precision = #tpu.contract_precision<fp32>} : vector<12x16xf32>, vector<16x108xf32>, vector<12x108xf32> -> vector<12x108xf32>
    %128 = arith.addf %122, %127 : vector<12x108xf32>
    %c1_159 = arith.constant 1 : index
    %c0_160 = arith.constant 0 : index
    %c2_161 = arith.constant 2 : index
    %c0_162 = arith.constant 0 : index
    %129 = vector.load %arg4[%c1_159, %c0_160, %c2_161, %c0_162] : memref<2x2x20x16xf32, #tpu.memory_space<vmem>>, vector<1x1x12x16xf32>
    %130 = vector.shape_cast %129 : vector<1x1x12x16xf32> to vector<12x16xf32>
    %c2_163 = arith.constant 2 : index
    %c0_164 = arith.constant 0 : index
    %c0_165 = arith.constant 0 : index
    %131 = vector.load %arg1[%c2_163, %c0_164, %c0_165] : memref<18x16x108xf32, #tpu.memory_space<vmem>>, vector<1x16x108xf32>
    %132 = vector.shape_cast %131 : vector<1x16x108xf32> to vector<16x108xf32>
    %cst_166 = arith.constant dense<0.000000e+00> : vector<12x108xf32>
    %133 = tpu.matmul %130, %132, %cst_166 {dimension_numbers = #tpu.dot_dimension_numbers<[1], [0], [0], [1], [0, 0, 1, 1], [], []>, precision = #tpu.contract_precision<fp32>} : vector<12x16xf32>, vector<16x108xf32>, vector<12x108xf32> -> vector<12x108xf32>
    %134 = arith.addf %128, %133 : vector<12x108xf32>
    %c1_167 = arith.constant 1 : index
    %c0_168 = arith.constant 0 : index
    %c3_169 = arith.constant 3 : index
    %c0_170 = arith.constant 0 : index
    %135 = vector.load %arg4[%c1_167, %c0_168, %c3_169, %c0_170] : memref<2x2x20x16xf32, #tpu.memory_space<vmem>>, vector<1x1x12x16xf32>
    %136 = vector.shape_cast %135 : vector<1x1x12x16xf32> to vector<12x16xf32>
    %c3_171 = arith.constant 3 : index
    %c0_172 = arith.constant 0 : index
    %c0_173 = arith.constant 0 : index
    %137 = vector.load %arg1[%c3_171, %c0_172, %c0_173] : memref<18x16x108xf32, #tpu.memory_space<vmem>>, vector<1x16x108xf32>
    %138 = vector.shape_cast %137 : vector<1x16x108xf32> to vector<16x108xf32>
    %cst_174 = arith.constant dense<0.000000e+00> : vector<12x108xf32>
    %139 = tpu.matmul %136, %138, %cst_174 {dimension_numbers = #tpu.dot_dimension_numbers<[1], [0], [0], [1], [0, 0, 1, 1], [], []>, precision = #tpu.contract_precision<fp32>} : vector<12x16xf32>, vector<16x108xf32>, vector<12x108xf32> -> vector<12x108xf32>
    %140 = arith.addf %134, %139 : vector<12x108xf32>
    %c1_175 = arith.constant 1 : index
    %c0_176 = arith.constant 0 : index
    %c4_177 = arith.constant 4 : index
    %c0_178 = arith.constant 0 : index
    %141 = vector.load %arg4[%c1_175, %c0_176, %c4_177, %c0_178] : memref<2x2x20x16xf32, #tpu.memory_space<vmem>>, vector<1x1x12x16xf32>
    %142 = vector.shape_cast %141 : vector<1x1x12x16xf32> to vector<12x16xf32>
    %c4_179 = arith.constant 4 : index
    %c0_180 = arith.constant 0 : index
    %c0_181 = arith.constant 0 : index
    %143 = vector.load %arg1[%c4_179, %c0_180, %c0_181] : memref<18x16x108xf32, #tpu.memory_space<vmem>>, vector<1x16x108xf32>
    %144 = vector.shape_cast %143 : vector<1x16x108xf32> to vector<16x108xf32>
    %cst_182 = arith.constant dense<0.000000e+00> : vector<12x108xf32>
    %145 = tpu.matmul %142, %144, %cst_182 {dimension_numbers = #tpu.dot_dimension_numbers<[1], [0], [0], [1], [0, 0, 1, 1], [], []>, precision = #tpu.contract_precision<fp32>} : vector<12x16xf32>, vector<16x108xf32>, vector<12x108xf32> -> vector<12x108xf32>
    %146 = arith.addf %140, %145 : vector<12x108xf32>
    %c1_183 = arith.constant 1 : index
    %c0_184 = arith.constant 0 : index
    %c5_185 = arith.constant 5 : index
    %c0_186 = arith.constant 0 : index
    %147 = vector.load %arg4[%c1_183, %c0_184, %c5_185, %c0_186] : memref<2x2x20x16xf32, #tpu.memory_space<vmem>>, vector<1x1x12x16xf32>
    %148 = vector.shape_cast %147 : vector<1x1x12x16xf32> to vector<12x16xf32>
    %c5_187 = arith.constant 5 : index
    %c0_188 = arith.constant 0 : index
    %c0_189 = arith.constant 0 : index
    %149 = vector.load %arg1[%c5_187, %c0_188, %c0_189] : memref<18x16x108xf32, #tpu.memory_space<vmem>>, vector<1x16x108xf32>
    %150 = vector.shape_cast %149 : vector<1x16x108xf32> to vector<16x108xf32>
    %cst_190 = arith.constant dense<0.000000e+00> : vector<12x108xf32>
    %151 = tpu.matmul %148, %150, %cst_190 {dimension_numbers = #tpu.dot_dimension_numbers<[1], [0], [0], [1], [0, 0, 1, 1], [], []>, precision = #tpu.contract_precision<fp32>} : vector<12x16xf32>, vector<16x108xf32>, vector<12x108xf32> -> vector<12x108xf32>
    %152 = arith.addf %146, %151 : vector<12x108xf32>
    %c1_191 = arith.constant 1 : index
    %c0_192 = arith.constant 0 : index
    %c6_193 = arith.constant 6 : index
    %c0_194 = arith.constant 0 : index
    %153 = vector.load %arg4[%c1_191, %c0_192, %c6_193, %c0_194] : memref<2x2x20x16xf32, #tpu.memory_space<vmem>>, vector<1x1x12x16xf32>
    %154 = vector.shape_cast %153 : vector<1x1x12x16xf32> to vector<12x16xf32>
    %c6_195 = arith.constant 6 : index
    %c0_196 = arith.constant 0 : index
    %c0_197 = arith.constant 0 : index
    %155 = vector.load %arg1[%c6_195, %c0_196, %c0_197] : memref<18x16x108xf32, #tpu.memory_space<vmem>>, vector<1x16x108xf32>
    %156 = vector.shape_cast %155 : vector<1x16x108xf32> to vector<16x108xf32>
    %cst_198 = arith.constant dense<0.000000e+00> : vector<12x108xf32>
    %157 = tpu.matmul %154, %156, %cst_198 {dimension_numbers = #tpu.dot_dimension_numbers<[1], [0], [0], [1], [0, 0, 1, 1], [], []>, precision = #tpu.contract_precision<fp32>} : vector<12x16xf32>, vector<16x108xf32>, vector<12x108xf32> -> vector<12x108xf32>
    %158 = arith.addf %152, %157 : vector<12x108xf32>
    %c1_199 = arith.constant 1 : index
    %c0_200 = arith.constant 0 : index
    %c7_201 = arith.constant 7 : index
    %c0_202 = arith.constant 0 : index
    %159 = vector.load %arg4[%c1_199, %c0_200, %c7_201, %c0_202] : memref<2x2x20x16xf32, #tpu.memory_space<vmem>>, vector<1x1x12x16xf32>
    %160 = vector.shape_cast %159 : vector<1x1x12x16xf32> to vector<12x16xf32>
    %c7_203 = arith.constant 7 : index
    %c0_204 = arith.constant 0 : index
    %c0_205 = arith.constant 0 : index
    %161 = vector.load %arg1[%c7_203, %c0_204, %c0_205] : memref<18x16x108xf32, #tpu.memory_space<vmem>>, vector<1x16x108xf32>
    %162 = vector.shape_cast %161 : vector<1x16x108xf32> to vector<16x108xf32>
    %cst_206 = arith.constant dense<0.000000e+00> : vector<12x108xf32>
    %163 = tpu.matmul %160, %162, %cst_206 {dimension_numbers = #tpu.dot_dimension_numbers<[1], [0], [0], [1], [0, 0, 1, 1], [], []>, precision = #tpu.contract_precision<fp32>} : vector<12x16xf32>, vector<16x108xf32>, vector<12x108xf32> -> vector<12x108xf32>
    %164 = arith.addf %158, %163 : vector<12x108xf32>
    %c1_207 = arith.constant 1 : index
    %c0_208 = arith.constant 0 : index
    %c8_209 = arith.constant 8 : index
    %c0_210 = arith.constant 0 : index
    %165 = vector.load %arg4[%c1_207, %c0_208, %c8_209, %c0_210] : memref<2x2x20x16xf32, #tpu.memory_space<vmem>>, vector<1x1x12x16xf32>
    %166 = vector.shape_cast %165 : vector<1x1x12x16xf32> to vector<12x16xf32>
    %c8_211 = arith.constant 8 : index
    %c0_212 = arith.constant 0 : index
    %c0_213 = arith.constant 0 : index
    %167 = vector.load %arg1[%c8_211, %c0_212, %c0_213] : memref<18x16x108xf32, #tpu.memory_space<vmem>>, vector<1x16x108xf32>
    %168 = vector.shape_cast %167 : vector<1x16x108xf32> to vector<16x108xf32>
    %cst_214 = arith.constant dense<0.000000e+00> : vector<12x108xf32>
    %169 = tpu.matmul %166, %168, %cst_214 {dimension_numbers = #tpu.dot_dimension_numbers<[1], [0], [0], [1], [0, 0, 1, 1], [], []>, precision = #tpu.contract_precision<fp32>} : vector<12x16xf32>, vector<16x108xf32>, vector<12x108xf32> -> vector<12x108xf32>
    %170 = arith.addf %164, %169 : vector<12x108xf32>
    %c1_215 = arith.constant 1 : index
    %c1_216 = arith.constant 1 : index
    %c0_217 = arith.constant 0 : index
    %c0_218 = arith.constant 0 : index
    %171 = vector.load %arg4[%c1_215, %c1_216, %c0_217, %c0_218] : memref<2x2x20x16xf32, #tpu.memory_space<vmem>>, vector<1x1x12x16xf32>
    %172 = vector.shape_cast %171 : vector<1x1x12x16xf32> to vector<12x16xf32>
    %c9_219 = arith.constant 9 : index
    %c0_220 = arith.constant 0 : index
    %c0_221 = arith.constant 0 : index
    %173 = vector.load %arg1[%c9_219, %c0_220, %c0_221] : memref<18x16x108xf32, #tpu.memory_space<vmem>>, vector<1x16x108xf32>
    %174 = vector.shape_cast %173 : vector<1x16x108xf32> to vector<16x108xf32>
    %cst_222 = arith.constant dense<0.000000e+00> : vector<12x108xf32>
    %175 = tpu.matmul %172, %174, %cst_222 {dimension_numbers = #tpu.dot_dimension_numbers<[1], [0], [0], [1], [0, 0, 1, 1], [], []>, precision = #tpu.contract_precision<fp32>} : vector<12x16xf32>, vector<16x108xf32>, vector<12x108xf32> -> vector<12x108xf32>
    %176 = arith.addf %170, %175 : vector<12x108xf32>
    %c1_223 = arith.constant 1 : index
    %c1_224 = arith.constant 1 : index
    %c1_225 = arith.constant 1 : index
    %c0_226 = arith.constant 0 : index
    %177 = vector.load %arg4[%c1_223, %c1_224, %c1_225, %c0_226] : memref<2x2x20x16xf32, #tpu.memory_space<vmem>>, vector<1x1x12x16xf32>
    %178 = vector.shape_cast %177 : vector<1x1x12x16xf32> to vector<12x16xf32>
    %c10_227 = arith.constant 10 : index
    %c0_228 = arith.constant 0 : index
    %c0_229 = arith.constant 0 : index
    %179 = vector.load %arg1[%c10_227, %c0_228, %c0_229] : memref<18x16x108xf32, #tpu.memory_space<vmem>>, vector<1x16x108xf32>
    %180 = vector.shape_cast %179 : vector<1x16x108xf32> to vector<16x108xf32>
    %cst_230 = arith.constant dense<0.000000e+00> : vector<12x108xf32>
    %181 = tpu.matmul %178, %180, %cst_230 {dimension_numbers = #tpu.dot_dimension_numbers<[1], [0], [0], [1], [0, 0, 1, 1], [], []>, precision = #tpu.contract_precision<fp32>} : vector<12x16xf32>, vector<16x108xf32>, vector<12x108xf32> -> vector<12x108xf32>
    %182 = arith.addf %176, %181 : vector<12x108xf32>
    %c1_231 = arith.constant 1 : index
    %c1_232 = arith.constant 1 : index
    %c2_233 = arith.constant 2 : index
    %c0_234 = arith.constant 0 : index
    %183 = vector.load %arg4[%c1_231, %c1_232, %c2_233, %c0_234] : memref<2x2x20x16xf32, #tpu.memory_space<vmem>>, vector<1x1x12x16xf32>
    %184 = vector.shape_cast %183 : vector<1x1x12x16xf32> to vector<12x16xf32>
    %c11_235 = arith.constant 11 : index
    %c0_236 = arith.constant 0 : index
    %c0_237 = arith.constant 0 : index
    %185 = vector.load %arg1[%c11_235, %c0_236, %c0_237] : memref<18x16x108xf32, #tpu.memory_space<vmem>>, vector<1x16x108xf32>
    %186 = vector.shape_cast %185 : vector<1x16x108xf32> to vector<16x108xf32>
    %cst_238 = arith.constant dense<0.000000e+00> : vector<12x108xf32>
    %187 = tpu.matmul %184, %186, %cst_238 {dimension_numbers = #tpu.dot_dimension_numbers<[1], [0], [0], [1], [0, 0, 1, 1], [], []>, precision = #tpu.contract_precision<fp32>} : vector<12x16xf32>, vector<16x108xf32>, vector<12x108xf32> -> vector<12x108xf32>
    %188 = arith.addf %182, %187 : vector<12x108xf32>
    %c1_239 = arith.constant 1 : index
    %c1_240 = arith.constant 1 : index
    %c3_241 = arith.constant 3 : index
    %c0_242 = arith.constant 0 : index
    %189 = vector.load %arg4[%c1_239, %c1_240, %c3_241, %c0_242] : memref<2x2x20x16xf32, #tpu.memory_space<vmem>>, vector<1x1x12x16xf32>
    %190 = vector.shape_cast %189 : vector<1x1x12x16xf32> to vector<12x16xf32>
    %c12_243 = arith.constant 12 : index
    %c0_244 = arith.constant 0 : index
    %c0_245 = arith.constant 0 : index
    %191 = vector.load %arg1[%c12_243, %c0_244, %c0_245] : memref<18x16x108xf32, #tpu.memory_space<vmem>>, vector<1x16x108xf32>
    %192 = vector.shape_cast %191 : vector<1x16x108xf32> to vector<16x108xf32>
    %cst_246 = arith.constant dense<0.000000e+00> : vector<12x108xf32>
    %193 = tpu.matmul %190, %192, %cst_246 {dimension_numbers = #tpu.dot_dimension_numbers<[1], [0], [0], [1], [0, 0, 1, 1], [], []>, precision = #tpu.contract_precision<fp32>} : vector<12x16xf32>, vector<16x108xf32>, vector<12x108xf32> -> vector<12x108xf32>
    %194 = arith.addf %188, %193 : vector<12x108xf32>
    %c1_247 = arith.constant 1 : index
    %c1_248 = arith.constant 1 : index
    %c4_249 = arith.constant 4 : index
    %c0_250 = arith.constant 0 : index
    %195 = vector.load %arg4[%c1_247, %c1_248, %c4_249, %c0_250] : memref<2x2x20x16xf32, #tpu.memory_space<vmem>>, vector<1x1x12x16xf32>
    %196 = vector.shape_cast %195 : vector<1x1x12x16xf32> to vector<12x16xf32>
    %c13_251 = arith.constant 13 : index
    %c0_252 = arith.constant 0 : index
    %c0_253 = arith.constant 0 : index
    %197 = vector.load %arg1[%c13_251, %c0_252, %c0_253] : memref<18x16x108xf32, #tpu.memory_space<vmem>>, vector<1x16x108xf32>
    %198 = vector.shape_cast %197 : vector<1x16x108xf32> to vector<16x108xf32>
    %cst_254 = arith.constant dense<0.000000e+00> : vector<12x108xf32>
    %199 = tpu.matmul %196, %198, %cst_254 {dimension_numbers = #tpu.dot_dimension_numbers<[1], [0], [0], [1], [0, 0, 1, 1], [], []>, precision = #tpu.contract_precision<fp32>} : vector<12x16xf32>, vector<16x108xf32>, vector<12x108xf32> -> vector<12x108xf32>
    %200 = arith.addf %194, %199 : vector<12x108xf32>
    %c1_255 = arith.constant 1 : index
    %c1_256 = arith.constant 1 : index
    %c5_257 = arith.constant 5 : index
    %c0_258 = arith.constant 0 : index
    %201 = vector.load %arg4[%c1_255, %c1_256, %c5_257, %c0_258] : memref<2x2x20x16xf32, #tpu.memory_space<vmem>>, vector<1x1x12x16xf32>
    %202 = vector.shape_cast %201 : vector<1x1x12x16xf32> to vector<12x16xf32>
    %c14_259 = arith.constant 14 : index
    %c0_260 = arith.constant 0 : index
    %c0_261 = arith.constant 0 : index
    %203 = vector.load %arg1[%c14_259, %c0_260, %c0_261] : memref<18x16x108xf32, #tpu.memory_space<vmem>>, vector<1x16x108xf32>
    %204 = vector.shape_cast %203 : vector<1x16x108xf32> to vector<16x108xf32>
    %cst_262 = arith.constant dense<0.000000e+00> : vector<12x108xf32>
    %205 = tpu.matmul %202, %204, %cst_262 {dimension_numbers = #tpu.dot_dimension_numbers<[1], [0], [0], [1], [0, 0, 1, 1], [], []>, precision = #tpu.contract_precision<fp32>} : vector<12x16xf32>, vector<16x108xf32>, vector<12x108xf32> -> vector<12x108xf32>
    %206 = arith.addf %200, %205 : vector<12x108xf32>
    %c1_263 = arith.constant 1 : index
    %c1_264 = arith.constant 1 : index
    %c6_265 = arith.constant 6 : index
    %c0_266 = arith.constant 0 : index
    %207 = vector.load %arg4[%c1_263, %c1_264, %c6_265, %c0_266] : memref<2x2x20x16xf32, #tpu.memory_space<vmem>>, vector<1x1x12x16xf32>
    %208 = vector.shape_cast %207 : vector<1x1x12x16xf32> to vector<12x16xf32>
    %c15_267 = arith.constant 15 : index
    %c0_268 = arith.constant 0 : index
    %c0_269 = arith.constant 0 : index
    %209 = vector.load %arg1[%c15_267, %c0_268, %c0_269] : memref<18x16x108xf32, #tpu.memory_space<vmem>>, vector<1x16x108xf32>
    %210 = vector.shape_cast %209 : vector<1x16x108xf32> to vector<16x108xf32>
    %cst_270 = arith.constant dense<0.000000e+00> : vector<12x108xf32>
    %211 = tpu.matmul %208, %210, %cst_270 {dimension_numbers = #tpu.dot_dimension_numbers<[1], [0], [0], [1], [0, 0, 1, 1], [], []>, precision = #tpu.contract_precision<fp32>} : vector<12x16xf32>, vector<16x108xf32>, vector<12x108xf32> -> vector<12x108xf32>
    %212 = arith.addf %206, %211 : vector<12x108xf32>
    %c1_271 = arith.constant 1 : index
    %c1_272 = arith.constant 1 : index
    %c7_273 = arith.constant 7 : index
    %c0_274 = arith.constant 0 : index
    %213 = vector.load %arg4[%c1_271, %c1_272, %c7_273, %c0_274] : memref<2x2x20x16xf32, #tpu.memory_space<vmem>>, vector<1x1x12x16xf32>
    %214 = vector.shape_cast %213 : vector<1x1x12x16xf32> to vector<12x16xf32>
    %c16_275 = arith.constant 16 : index
    %c0_276 = arith.constant 0 : index
    %c0_277 = arith.constant 0 : index
    %215 = vector.load %arg1[%c16_275, %c0_276, %c0_277] : memref<18x16x108xf32, #tpu.memory_space<vmem>>, vector<1x16x108xf32>
    %216 = vector.shape_cast %215 : vector<1x16x108xf32> to vector<16x108xf32>
    %cst_278 = arith.constant dense<0.000000e+00> : vector<12x108xf32>
    %217 = tpu.matmul %214, %216, %cst_278 {dimension_numbers = #tpu.dot_dimension_numbers<[1], [0], [0], [1], [0, 0, 1, 1], [], []>, precision = #tpu.contract_precision<fp32>} : vector<12x16xf32>, vector<16x108xf32>, vector<12x108xf32> -> vector<12x108xf32>
    %218 = arith.addf %212, %217 : vector<12x108xf32>
    %c1_279 = arith.constant 1 : index
    %c1_280 = arith.constant 1 : index
    %c8_281 = arith.constant 8 : index
    %c0_282 = arith.constant 0 : index
    %219 = vector.load %arg4[%c1_279, %c1_280, %c8_281, %c0_282] : memref<2x2x20x16xf32, #tpu.memory_space<vmem>>, vector<1x1x12x16xf32>
    %220 = vector.shape_cast %219 : vector<1x1x12x16xf32> to vector<12x16xf32>
    %c17_283 = arith.constant 17 : index
    %c0_284 = arith.constant 0 : index
    %c0_285 = arith.constant 0 : index
    %221 = vector.load %arg1[%c17_283, %c0_284, %c0_285] : memref<18x16x108xf32, #tpu.memory_space<vmem>>, vector<1x16x108xf32>
    %222 = vector.shape_cast %221 : vector<1x16x108xf32> to vector<16x108xf32>
    %cst_286 = arith.constant dense<0.000000e+00> : vector<12x108xf32>
    %223 = tpu.matmul %220, %222, %cst_286 {dimension_numbers = #tpu.dot_dimension_numbers<[1], [0], [0], [1], [0, 0, 1, 1], [], []>, precision = #tpu.contract_precision<fp32>} : vector<12x16xf32>, vector<16x108xf32>, vector<12x108xf32> -> vector<12x108xf32>
    %224 = arith.addf %218, %223 : vector<12x108xf32>
    %c1_287 = arith.constant 1 : index
    %c0_288 = arith.constant 0 : index
    %c0_289 = arith.constant 0 : index
    %225 = vector.load %arg3[%c1_287, %c0_288, %c0_289] : memref<2x12x108xf32, #tpu.memory_space<vmem>>, vector<1x12x108xf32>
    %226 = vector.shape_cast %225 : vector<1x12x108xf32> to vector<12x108xf32>
    %227 = vector.shape_cast %224 : vector<12x108xf32> to vector<1x12x108xf32>
    tpu.vector_store %arg3[%c1_287, %c0_288, %c0_289], %227 {strides = array<i32>} : memref<2x12x108xf32, #tpu.memory_space<vmem>>, vector<1x12x108xf32>,
    return
  }
  func.func @transform_0(%arg0: i32) -> (i32, i32, i32) {
    %c0_i32 = arith.constant 0 : i32
    %c0_i32_0 = arith.constant 0 : i32
    %c0_i32_1 = arith.constant 0 : i32
    %c0_i32_2 = arith.constant 0 : i32
    return %c0_i32, %c0_i32_0, %c0_i32_1 : i32, i32, i32
  }
  func.func @transform_1(%arg0: i32) -> (i32, i32, i32, i32) {
    %c0_i32 = arith.constant 0 : i32
    %c0_i32_0 = arith.constant 0 : i32
    %c0_i32_1 = arith.constant 0 : i32
    %c0_i32_2 = arith.constant 0 : i32
    return %arg0, %c0_i32, %c0_i32_0, %c0_i32_1 : i32, i32, i32, i32
  }
  func.func @transform_2(%arg0: i32) -> (i32, i32, i32) {
    %c0_i32 = arith.constant 0 : i32
    %c0_i32_0 = arith.constant 0 : i32
    %c0_i32_1 = arith.constant 0 : i32
    return %arg0, %c0_i32, %c0_i32_0 : i32, i32, i32
  }
}

</mosaic_0001>

<bundles_post_ra>
// kernel: tpu_custom_call.1
= control target key start
LH: loop header
LB: loop body
LE: loop exit
PB: predicated region body
PF: predicated region fallthrough
CT: control target
= control target key end

     0   :  { %7 = vsyncpa [#allocation4], 0  ;;  %s9352_s0 = inlined_call_operand.hbm [shape: f32[18,16,108], index: 0, kind: input, shape index: {}]   ;;  %s9353_s1 = inlined_call_operand.hbm [shape: f32[2,2,16,16], index: 1, kind: input, shape index: {}]   ;;  %s9354_s2 = inlined_call_operand.vmem [shape: f32[2,12,108], index: 2, kind: output, shape index: {}]  }
   0x1   :  { %s13_s11 = sshll.u32 %s9352_s0, 4  ;;  %s14_s11 = int_to_ptr.hbm [resolvable:$true] %s13_s11 }
   0x2   :  { %8 = vsyncpa [#allocation6], 0  ;;  %s7429_s12 = smov [#allocation3]   ;;  %s26_s16 = sshll.u32 %s9353_s1, 4  ;;  %s27_s16 = int_to_ptr.hbm [resolvable:$true] %s26_s16 }
   0x3   :  { %s15_s13 = sshll.u32 %s7429_s12, 4  ;;  %s7430_s17 = smov 128   ;;  %s16_s13 = int_to_ptr.vmem [resolvable:$true] %s15_s13 }
   0x4   :  { %s7431_s18 = smov 8   ;;  %s7432_s19 = smov [#allocation5]  }
   0x5   :  { %21 = dma.hbm_to_vmem [thread:$0]  %s14_s11, 4608, %s16_s13, [#allocation4], %s7430_s17, %s7430_s17, %s7431_s18  }
   0x6   :  { %s28_s20 = sshll.u32 %s7432_s19, 4  ;;  %s29_s20 = int_to_ptr.vmem [resolvable:$true] %s28_s20 }
   0x7   :  { %34 = dma.hbm_to_vmem [thread:$0]  %s27_s16, 1024, %s29_s20, [#allocation6], %s7430_s17, %s7430_s17, %s7431_s18  }
   0x8   :  { %7425 = dma.done.wait [#allocation4], 4608  }
   0x9   :  { %7426 = vsyncadd [#allocation4], 4294962688 }
   0xa   :  { %7427 = dma.done.wait [#allocation6], 1024  }
   0xb   :  { %7428 = vsyncadd [#allocation6], 4294966272  ;;  %vm43_vm0 = vcmask 130048   ;;  %v7433_v0 = vmov 0.0   ;;  %v81_v1 = vld [vmem:[#allocation3 + $0x18] sm:$0xff]  ;;  %v80_v2 = vld [vmem:[#allocation3 + $0x10] sm:$0xff] }
   0xc   :  { %44 = vst.msk [vmem:[#allocation2] sm:$0xff] %vm43_vm0, %v7433_v0  ;;  %v57_v3 = vld [vmem:[#allocation5] sm:$0xff]  ;;  %vm46_vm1 = vcmask 125952   ;;  %v102_v4 = vand.u32 4294901760, %v81_v1  ;;  %v7462_v5 = vand.u32 4294901760, %v80_v2  ;;  %v76_v6 = vld [vmem:[#allocation3 + $0x8] sm:$0xff] }
   0xd   :  { %45 = vst.msk [vmem:[#allocation2 + $0x8] sm:$0xff] %vm43_vm0, %v7433_v0  ;;  %v58_v7 = vld [vmem:[#allocation5 + $0x8] sm:$0xff]  ;;  %v75_v8 = vld [vmem:[#allocation3] sm:$0xff]  ;;  %v7466_v9 = vand.u32 4294901760, %v76_v6  ;;  %vm3723_vm2 = vcmask 883712   ;;  %vm3725_vm3 = vcmask 879616  }
   0xe   :  { %48 = vst.msk [vmem:[#allocation2 + $0x18] sm:$0xff] %vm43_vm0, %v7433_v0  ;;  %v7468_v10 = vand.u32 4294901760, %v75_v8  ;;  %v138_v11 = vsub.f32 %v81_v1, %v102_v4  ;;  %v144_v12 = vsub.f32 %v80_v2, %v7462_v5  ;;  %204 = vmatpush.msra.mxu3 %v102_v4  ;;  %103 = vmatpush.msra.mxu0 %v102_v4  ;;  %v478_v43 = vld [vmem:[#allocation3 + $0x28] sm:$0xff]  ;;  %v477_v56 = vld [vmem:[#allocation3 + $0x20] sm:$0xff]  ;;  %v681_v1 = vld [vmem:[#allocation3 + $0x38] sm:$0xff] }
   0xf   :  { %49 = vst.msk [vmem:[#allocation2 + $0x20] sm:$0xff] %vm43_vm0, %v7433_v0  ;;  %v7473_v13 = vsub.f32 %v76_v6, %v7466_v9  ;;  %v7508_v45 = vand.u32 4294901760, %v478_v43  ;;  %v501_v57 = vand.u32 4294901760, %v477_v56 }
  0x10   :  { %51 = vst.msk [vmem:[#allocation2 + $0x30] sm:$0xff] %vm43_vm0, %v7433_v0  ;;  %v7477_v14 = vsub.f32 %v75_v8, %v7468_v10  ;;  %174 = vmatpush.msra.mxu2 %v138_v11  ;;  %v139_v15 = vand.u32 4294901760, %v138_v11  ;;  %206 = vmatpush.msra.mxu3 %v7462_v5  ;;  %v145_v16 = vand.u32 4294901760, %v144_v12 }
  0x11   :  { %52 = vst.msk [vmem:[#allocation2 + $0x38] sm:$0xff] %vm43_vm0, %v7433_v0  ;;  %105 = vmatpush.msra.mxu0 %v7462_v5  ;;  %v335_v17 = vand.u32 4294901760, %v7473_v13  ;;  %v7516_v49 = vsub.f32 %v478_v43, %v7508_v45  ;;  %v541_v61 = vsub.f32 %v477_v56, %v501_v57 }
  0x12   :  { %54 = vst.msk [vmem:[#allocation2 + $0x48] sm:$0xff] %vm43_vm0, %v7433_v0  ;;  %v341_v18 = vand.u32 4294901760, %v7477_v14  ;;  %177 = vmatpush.msra.mxu2 %v144_v12  ;;  %v140_v19 = vsub.f32 %v138_v11, %v139_v15  ;;  %v146_v20 = vsub.f32 %v144_v12, %v145_v16 }
  0x13   :  { %65 = vst.msk [vmem:[#allocation2 + $0x2] sm:$0xff] %vm43_vm0, %v57_v3  ;;  %237 = vmatpush.msrb.mxu0 %v139_v15  ;;  %v336_v22 = vsub.f32 %v7473_v13, %v335_v17  ;;  %v536_v51 = vand.u32 4294901760, %v7516_v49  ;;  %v542_v62 = vand.u32 4294901760, %v541_v61  ;;  %v702_v3 = vand.u32 4294901760, %v681_v1 }
  0x14   :  { %55 = vst.msk [vmem:[#allocation2 + $0x50] sm:$0xff] %vm43_vm0, %v7433_v0  ;;  %299 = vmatpush.msrb.mxu2 %v7466_v9  ;;  %v342_v23 = vsub.f32 %v7477_v14, %v341_v18  ;;  %v141_v26 = vand.u32 4294901760, %v140_v19  ;;  %v147_v27 = vand.u32 4294901760, %v146_v20 }
  0x15   :  { %47 = vst.msk [vmem:[#allocation2 + $0x10] sm:$0xf] %vm46_vm1, %v7433_v0  ;;  %241 = vmatpush.msrb.mxu0 %v145_v16  ;;  %v337_v30 = vand.u32 4294901760, %v336_v22  ;;  %v537_v54 = vsub.f32 %v7516_v49, %v536_v51 }
  0x16   :  { %66 = vst.msk [vmem:[#allocation2 + $0xa] sm:$0xff] %vm43_vm0, %v58_v7  ;;  %301 = vmatpush.msrb.mxu2 %v7468_v10  ;;  %142 = vmatpush.msra.mxu1 %v141_v26  ;;  %v343_v33 = vand.u32 4294901760, %v342_v23  ;;  %v680_v7 = vld [vmem:[#allocation3 + $0x30] sm:$0xff] }
  0x17   :  { %50 = vst.msk [vmem:[#allocation2 + $0x28] sm:$0xf] %vm46_vm1, %v7433_v0  ;;  %338 = vmatpush.msrb.mxu3 %v337_v30  ;;  %v538_v60 = vand.u32 4294901760, %v537_v54  ;;  %v704_v8 = vand.u32 4294901760, %v680_v7 }
  0x18   :  { %53 = vst.msk [vmem:[#allocation2 + $0x40] sm:$0xf] %vm46_vm1, %v7433_v0  ;;  %148 = vmatpush.msra.mxu1 %v147_v27 }
  0x19   :  { %56 = vst.msk [vmem:[#allocation2 + $0x58] sm:$0xf] %vm46_vm1, %v7433_v0  ;;  %344 = vmatpush.msrb.mxu3 %v343_v33  ;;  %v543_v0 = vsub.f32 %v541_v61, %v542_v62  ;;  %v884_v33 = vld [vmem:[#allocation3 + $0x48] sm:$0xff] }
  0x1a   :  { %v77_v21 = vld [vmem:[#allocation2 + $0x1] sm:$0xff]  ;;  %266 = vmatpush.msrb.mxu1 %v102_v4 }
  0x1b   :  { %v73_v24 = vld [vmem:[#allocation2] sm:$0xff]  ;;  %v83_v25 = vsel %vm43_vm0, %v77_v21, 0  ;;  %v544_v2 = vand.u32 4294901760, %v543_v0 }
  0x1c   :  { %v279_v28 = vsel %vm43_vm0, %v73_v24, 0  ;;  %v7491_v29 = vand.u32 4294901760, %v83_v25  ;;  %268 = vmatpush.msrb.mxu1 %v7462_v5  ;;  %v7536_v5 = vsub.f32 %v681_v1, %v702_v3  ;;  %v474_v11 = vld [vmem:[#allocation2 + $0x2] sm:$0xff] }
  0x1d   :  { %v7494_v31 = vand.u32 4294901760, %v279_v28  ;;  %v78_v32 = vld [vmem:[#allocation2 + $0x9] sm:$0xf] }
  0x1e   :  { %v107_v34 = vsub.f32 %v83_v25, %v7491_v29  ;;  %v86_v35 = vsel %vm43_vm0, %v78_v32, 0  ;;  %v74_v36 = vld [vmem:[#allocation2 + $0x8] sm:$0xf]  ;;  %150 = vmatmul.f32.vlgmr.msra.gmra.mxu1 %v7491_v29  ;;  %v739_v6 = vand.u32 4294901760, %v7536_v5 }
  0x1f   :  { %v7498_v37 = vand.u32 4294901760, %v86_v35  ;;  %v7502_v39 = vsub.f32 %v279_v28, %v7494_v31  ;;  %v282_v41 = vsel %vm43_vm0, %v74_v36, 0  ;;  %400 = vmatpush.msra.mxu1 %v7466_v9  ;;  %v677_v20 = vld [vmem:[#allocation2 + $0x3] sm:$0xff]  ;;  %v678_v28 = vld [vmem:[#allocation2 + $0xb] sm:$0xf] }
  0x20   :  { %180 = vmatmul.f32.vlgmr.msra.gmra.mxu2 %v107_v34  ;;  %v108_v38 = vand.u32 4294901760, %v107_v34  ;;  %v7512_v48 = vand.u32 4294901760, %v282_v41  ;;  %v683_v22 = vsel %vm43_vm0, %v677_v20, 0  ;;  %v686_v30 = vsel %vm43_vm0, %v678_v28, 0 }
  0x21   :  { %v115_v40 = vsub.f32 %v86_v35, %v7498_v37  ;;  %433 = vmatpush.msra.mxu2 %v335_v17  ;;  %v304_v47 = vand.u32 4294901760, %v7502_v39  ;;  %402 = vmatpush.msra.mxu1 %v7468_v10  ;;  %v7561_v25 = vand.u32 4294901760, %v683_v22  ;;  %v7571_v36 = vand.u32 4294901760, %v686_v30 }
  0x22   :  { %210 = vmatmul.f32.vlgmr.msra.gmra.mxu3 %v108_v38  ;;  %v109_v42 = vsub.f32 %v107_v34, %v108_v38  ;;  %v7524_v53 = vsub.f32 %v282_v41, %v7512_v48  ;;  %v905_v34 = vand.u32 4294901760, %v884_v33 }
  0x23   :  { %v116_v44 = vand.u32 4294901760, %v115_v40  ;;  %462 = vmatpush.msra.mxu3 %v7466_v9  ;;  %437 = vmatpush.msra.mxu2 %v341_v18  ;;  %v305_v52 = vsub.f32 %v7502_v39, %v304_v47  ;;  %v740_v9 = vsub.f32 %v7536_v5, %v739_v6  ;;  %v475_v18 = vld [vmem:[#allocation2 + $0xa] sm:$0xf]  ;;  %v7580_v41 = vsub.f32 %v686_v30, %v7571_v36 }
  0x24   :  { %v110_v46 = vand.u32 4294901760, %v109_v42  ;;  %v312_v59 = vand.u32 4294901760, %v7524_v53  ;;  %v483_v21 = vsel %vm43_vm0, %v475_v18, 0 }
  0x25   :  { %464 = vmatpush.msra.mxu3 %v7468_v10  ;;  %v117_v50 = vsub.f32 %v115_v40, %v116_v44  ;;  %v306_v58 = vand.u32 4294901760, %v305_v52  ;;  %v744_v10 = vsub.f32 %v680_v7, %v704_v8  ;;  %v7559_v24 = vand.u32 4294901760, %v483_v21 }
  0x26   :  { %111 = vmatmul.f32.vlgmr.msra.gmra.mxu0 %v110_v46  ;;  %154 = vmatmul.f32.gmra.mxu1 %v7498_v37  ;;  %v313_v63 = vsub.f32 %v7524_v53, %v312_v59 }
  0x27   :  { %370 = vmatpush.msra.mxu0 %v7473_v13  ;;  %v118_v55 = vand.u32 4294901760, %v117_v50  ;;  %v745_v12 = vand.u32 4294901760, %v744_v10  ;;  %v480_v13 = vsel %vm43_vm0, %v474_v11, 0  ;;  %v512_v27 = vsub.f32 %v483_v21, %v7559_v24 }
  0x28   :  { %185 = vmatmul.f32.gmra.mxu2 %v115_v40  ;;  %v314_v4 = vand.u32 4294901760, %v313_v63  ;;  %v7549_v17 = vand.u32 4294901760, %v480_v13  ;;  %v880_v63 = vld [vmem:[#allocation2 + $0x4] sm:$0xff] }
  0x29   :  { %373 = vmatpush.msra.mxu0 %v7477_v14  ;;  %v741_v14 = vand.u32 4294901760, %v740_v9  ;;  %v746_v15 = vsub.f32 %v744_v10, %v745_v12  ;;  %v513_v32 = vand.u32 4294901760, %v512_v27  ;;  %v886_v1 = vsel %vm43_vm0, %v880_v63, 0 }
  0x2a   :  { %216 = vmatmul.f32.gmra.mxu3 %v116_v44  ;;  %v504_v19 = vsub.f32 %v480_v13, %v7549_v17  ;;  %v883_v44 = vld [vmem:[#allocation3 + $0x40] sm:$0xff] }
  0x2b   :  { %v747_v16 = vand.u32 4294901760, %v746_v15  ;;  %v514_v38 = vsub.f32 %v512_v27, %v513_v32 }
  0x2c   :  { %v505_v23 = vand.u32 4294901760, %v504_v19 }
  0x2d   :  { %v515_v43 = vand.u32 4294901760, %v514_v38 }
  0x2e   :  { %119 = vmatmul.f32.gmra.mxu0 %v118_v55  ;;  %270 = vmatmul.f32.vlgmr.msrb.gmra.mxu1 %v7491_v29  ;;  %v506_v26 = vsub.f32 %v504_v19, %v505_v23 }
  0x2f   :  { %539 = vmatpush.msrb.mxu1 %v538_v60 }
  0x30   :  { %307 = vmatmul.f32.vlgmr.msrb.gmra.mxu2 %v306_v58 }
  0x31   :  { %571 = vmatpush.msrb.mxu2 %v7516_v49  ;;  %545 = vmatpush.msrb.mxu1 %v544_v2 }
  0x32   :  { %346 = vmatmul.f32.vlgmr.msrb.gmra.mxu3 %v7494_v31 }
  0x33   :  { %601 = vmatpush.msrb.mxu3 %v7508_v45  ;;  %574 = vmatpush.msrb.mxu2 %v541_v61 }
  0x35   :  { %603 = vmatpush.msrb.mxu3 %v501_v57 }
  0x36   :  { %243 = vmatmul.f32.vlgmr.msrb.gmra.mxu0 %v7491_v29  ;;  %274 = vmatmul.f32.gmra.mxu1 %v7498_v37  ;;  %v7567_v29 = vsub.f32 %v683_v22, %v7561_v25 }
  0x37   :  { %500 = vmatpush.msrb.mxu0 %v7508_v45 }
  0x38   :  { %315 = vmatmul.f32.gmra.mxu2 %v314_v4  ;;  %v708_v35 = vand.u32 4294901760, %v7567_v29 }
  0x39   :  { %502 = vmatpush.msrb.mxu0 %v501_v57 }
  0x3a   :  { %350 = vmatmul.f32.gmra.mxu3 %v7512_v48  ;;  %v709_v40 = vsub.f32 %v7567_v29, %v708_v35 }
  0x3c   :  { %v710_v46 = vand.u32 4294901760, %v709_v40 }
  0x3e   :  { %247 = vmatmul.f32.gmra.mxu0 %v7498_v37  ;;  %406 = vmatmul.f32.vlgmr.msra.gmra.mxu1 %v304_v47  ;;  %v7573_v37 = vsub.f32 %v884_v33, %v905_v34  ;;  %v716_v47 = vand.u32 4294901760, %v7580_v41 }
  0x3f   :  { %663 = vmatpush.msra.mxu1 %v7508_v45  ;;  %v907_v45 = vand.u32 4294901760, %v883_v44 }
  0x40   :  { %439 = vmatmul.f32.vlgmr.msra.gmra.mxu2 %v7494_v31 }
  0x41   :  { %703 = vmatpush.msra.mxu2 %v702_v3  ;;  %665 = vmatpush.msra.mxu1 %v501_v57  ;;  %v947_v49 = vsub.f32 %v883_v44, %v907_v45 }
  0x42   :  { %466 = vmatmul.f32.vlgmr.msra.gmra.mxu3 %v7494_v31  ;;  %v507_v31 = vand.u32 4294901760, %v506_v26 }
  0x43   :  { %742 = vmatpush.msra.mxu3 %v741_v14  ;;  %705 = vmatpush.msra.mxu2 %v704_v8  ;;  %v948_v50 = vand.u32 4294901760, %v947_v49 }
  0x45   :  { %748 = vmatpush.msra.mxu3 %v747_v16  ;;  %v949_v52 = vsub.f32 %v947_v49, %v948_v50  ;;  %v1084_v16 = vld [vmem:[#allocation2 + $0xd] sm:$0xf] }
  0x46   :  { %376 = vmatmul.f32.vlgmr.msra.gmra.mxu0 %v7502_v39  ;;  %412 = vmatmul.f32.gmra.mxu1 %v312_v59  ;;  %v942_v39 = vand.u32 4294901760, %v7573_v37  ;;  %v1086_v59 = vld [vmem:[#allocation3 + $0x50] sm:$0xff]  ;;  %v1092_v18 = vsel %vm43_vm0, %v1084_v16, 0 }
  0x47   :  { %634 = vmatpush.msra.mxu0 %v536_v51  ;;  %v717_v51 = vsub.f32 %v7580_v41, %v716_v47  ;;  %v950_v54 = vand.u32 4294901760, %v949_v52  ;;  %v1110_v60 = vand.u32 4294901760, %v1086_v59  ;;  %v7623_v22 = vand.u32 4294901760, %v1092_v18 }
  0x48   :  { %443 = vmatmul.f32.gmra.mxu2 %v7512_v48  ;;  %v943_v42 = vsub.f32 %v7573_v37, %v942_v39 }
  0x49   :  { %638 = vmatpush.msra.mxu0 %v542_v62  ;;  %v718_v56 = vand.u32 4294901760, %v717_v51  ;;  %v1150_v62 = vsub.f32 %v1086_v59, %v1110_v60  ;;  %v7631_v28 = vsub.f32 %v1092_v18, %v7623_v22  ;;  %v1490_v18 = vld [vmem:[#allocation2 + $0xf] sm:$0xf] }
  0x4a   :  { %470 = vmatmul.f32.gmra.mxu3 %v7512_v48  ;;  %v944_v48 = vand.u32 4294901760, %v943_v42 }
  0x4b   :  { %v1151_v0 = vand.u32 4294901760, %v1150_v62 }
  0x4e   :  { %381 = vmatmul.f32.gmra.mxu0 %v7524_v53  ;;  %547 = vmatmul.f32.vlgmr.msrb.gmra.mxu1 %v7549_v17  ;;  %v1087_v53 = vld [vmem:[#allocation3 + $0x58] sm:$0xff] }
  0x4f   :  { %804 = vmatpush.msrb.mxu1 %v702_v3  ;;  %v1108_v55 = vand.u32 4294901760, %v1087_v53 }
  0x50   :  { %577 = vmatmul.f32.vlgmr.msrb.gmra.mxu2 %v504_v19 }
  0x51   :  { %837 = vmatpush.msrb.mxu2 %v739_v6  ;;  %806 = vmatpush.msrb.mxu1 %v704_v8  ;;  %v7590_v57 = vsub.f32 %v1087_v53, %v1108_v55  ;;  %v881_v6 = vld [vmem:[#allocation2 + $0xc] sm:$0xf] }
  0x52   :  { %607 = vmatmul.f32.vlgmr.msrb.gmra.mxu3 %v505_v23  ;;  %v889_v9 = vsel %vm43_vm0, %v881_v6, 0  ;;  %v1290_v23 = vld [vmem:[#allocation3 + $0x68] sm:$0xff] }
  0x53   :  { %866 = vmatpush.msrb.mxu3 %v702_v3  ;;  %841 = vmatpush.msrb.mxu2 %v745_v12  ;;  %v1145_v58 = vand.u32 4294901760, %v7590_v57  ;;  %v1152_v3 = vsub.f32 %v1150_v62, %v1151_v0  ;;  %v7611_v12 = vand.u32 4294901760, %v889_v9 }
  0x55   :  { %868 = vmatpush.msrb.mxu3 %v704_v8  ;;  %v1146_v61 = vsub.f32 %v7590_v57, %v1145_v58  ;;  %v1153_v4 = vand.u32 4294901760, %v1152_v3  ;;  %v1083_v8 = vld [vmem:[#allocation2 + $0x5] sm:$0xff]  ;;  %v918_v15 = vsub.f32 %v889_v9, %v7611_v12 }
  0x56   :  { %508 = vmatmul.f32.vlgmr.msrb.gmra.mxu0 %v507_v31  ;;  %551 = vmatmul.f32.gmra.mxu1 %v7559_v24  ;;  %v1289_v31 = vld [vmem:[#allocation3 + $0x60] sm:$0xff] }
  0x57   :  { %774 = vmatpush.msrb.mxu0 %v7536_v5  ;;  %v1147_v2 = vand.u32 4294901760, %v1146_v61  ;;  %v7601_v5 = vand.u32 4294901760, %v886_v1  ;;  %v919_v20 = vand.u32 4294901760, %v918_v15  ;;  %v1313_v33 = vand.u32 4294901760, %v1289_v31  ;;  %v1489_v3 = vld [vmem:[#allocation2 + $0x7] sm:$0xff] }
  0x58   :  { %582 = vmatmul.f32.gmra.mxu2 %v512_v27  ;;  %v1495_v6 = vsel %vm43_vm0, %v1489_v3, 0 }
  0x59   :  { %777 = vmatpush.msrb.mxu0 %v744_v10  ;;  %v910_v7 = vsub.f32 %v886_v1, %v7601_v5  ;;  %v1089_v10 = vsel %vm43_vm0, %v1083_v8, 0 }
  0x5a   :  { %613 = vmatmul.f32.gmra.mxu3 %v513_v32  ;;  %v7613_v13 = vand.u32 4294901760, %v1089_v10 }
  0x5b   :  { %v911_v11 = vand.u32 4294901760, %v910_v7 }
  0x5d   :  { %v912_v14 = vsub.f32 %v910_v7, %v911_v11 }
  0x5e   :  { %516 = vmatmul.f32.gmra.mxu0 %v515_v43  ;;  %667 = vmatmul.f32.vlgmr.msra.gmra.mxu1 %v7549_v17  ;;  %v1493_v43 = vld [vmem:[#allocation3 + $0x78] sm:$0xff] }
  0x5f   :  { %945 = vmatpush.msra.mxu1 %v944_v48  ;;  %v913_v19 = vand.u32 4294901760, %v912_v14  ;;  %v7650_v44 = vand.u32 4294901760, %v1493_v43 }
  0x60   :  { %711 = vmatmul.f32.vlgmr.msra.gmra.mxu2 %v710_v46 }
  0x61   :  { %977 = vmatpush.msra.mxu2 %v7573_v37  ;;  %951 = vmatpush.msra.mxu1 %v950_v54  ;;  %v7638_v37 = vsub.f32 %v1289_v31, %v1313_v33  ;;  %v7654_v46 = vsub.f32 %v1493_v43, %v7650_v44 }
  0x62   :  { %750 = vmatmul.f32.vlgmr.msra.gmra.mxu3 %v7561_v25 }
  0x63   :  { %1007 = vmatpush.msra.mxu3 %v905_v34  ;;  %980 = vmatpush.msra.mxu2 %v947_v49  ;;  %v1354_v38 = vand.u32 4294901760, %v7638_v37  ;;  %v1551_v48 = vand.u32 4294901760, %v7654_v46 }
  0x65   :  { %1009 = vmatpush.msra.mxu3 %v907_v45  ;;  %v1355_v40 = vsub.f32 %v7638_v37, %v1354_v38  ;;  %v1552_v52 = vsub.f32 %v7654_v46, %v1551_v48 }
  0x66   :  { %640 = vmatmul.f32.vlgmr.msra.gmra.mxu0 %v7549_v17  ;;  %671 = vmatmul.f32.gmra.mxu1 %v7559_v24  ;;  %v7619_v17 = vsub.f32 %v1089_v10, %v7613_v13 }
  0x67   :  { %906 = vmatpush.msra.mxu0 %v905_v34 }
  0x68   :  { %719 = vmatmul.f32.gmra.mxu2 %v718_v56  ;;  %v1114_v21 = vand.u32 4294901760, %v7619_v17 }
  0x69   :  { %908 = vmatpush.msra.mxu0 %v907_v45 }
  0x6a   :  { %754 = vmatmul.f32.gmra.mxu3 %v7571_v36  ;;  %v1115_v27 = vsub.f32 %v7619_v17, %v1114_v21 }
  0x6e   :  { %644 = vmatmul.f32.gmra.mxu0 %v7559_v24  ;;  %810 = vmatmul.f32.vlgmr.msrb.gmra.mxu1 %v708_v35  ;;  %v1311_v24 = vand.u32 4294901760, %v1290_v23  ;;  %v1122_v35 = vand.u32 4294901760, %v7631_v28 }
  0x6f   :  { %1069 = vmatpush.msrb.mxu1 %v905_v34  ;;  %v1116_v34 = vand.u32 4294901760, %v1115_v27 }
  0x70   :  { %843 = vmatmul.f32.vlgmr.msrb.gmra.mxu2 %v7561_v25  ;;  %v7626_v26 = vsub.f32 %v1290_v23, %v1311_v24 }
  0x71   :  { %1109 = vmatpush.msrb.mxu2 %v1108_v55  ;;  %1071 = vmatpush.msrb.mxu1 %v907_v45  ;;  %v1492_v45 = vld [vmem:[#allocation3 + $0x70] sm:$0xff] }
  0x72   :  { %870 = vmatmul.f32.vlgmr.msrb.gmra.mxu3 %v7561_v25  ;;  %v920_v25 = vsub.f32 %v918_v15, %v919_v20 }
  0x73   :  { %1148 = vmatpush.msrb.mxu3 %v1147_v2  ;;  %1111 = vmatpush.msrb.mxu2 %v1110_v60 }
  0x74   :  { %v921_v30 = vand.u32 4294901760, %v920_v25 }
  0x75   :  { %1154 = vmatpush.msrb.mxu3 %v1153_v4 }
  0x76   :  { %780 = vmatmul.f32.vlgmr.msrb.gmra.mxu0 %v7567_v29  ;;  %816 = vmatmul.f32.gmra.mxu1 %v716_v47  ;;  %v1348_v29 = vand.u32 4294901760, %v7626_v26  ;;  %v7656_v47 = vand.u32 4294901760, %v1492_v45 }
  0x77   :  { %1040 = vmatpush.msrb.mxu0 %v942_v39  ;;  %v1123_v39 = vsub.f32 %v7631_v28, %v1122_v35 }
  0x78   :  { %847 = vmatmul.f32.gmra.mxu2 %v7571_v36  ;;  %v1349_v32 = vsub.f32 %v7626_v26, %v1348_v29  ;;  %v7661_v49 = vsub.f32 %v1492_v45, %v7656_v47 }
  0x79   :  { %1044 = vmatpush.msrb.mxu0 %v948_v50  ;;  %v1124_v42 = vand.u32 4294901760, %v1123_v39  ;;  %v1286_v50 = vld [vmem:[#allocation2 + $0x6] sm:$0xff] }
  0x7a   :  { %874 = vmatmul.f32.gmra.mxu3 %v7571_v36  ;;  %v1350_v36 = vand.u32 4294901760, %v1349_v32  ;;  %v1557_v53 = vand.u32 4294901760, %v7661_v49  ;;  %v1292_v54 = vsel %vm43_vm0, %v1286_v50, 0 }
  0x7c   :  { %v1558_v56 = vsub.f32 %v7661_v49, %v1557_v53 }
  0x7e   :  { %785 = vmatmul.f32.gmra.mxu0 %v7580_v41  ;;  %953 = vmatmul.f32.vlgmr.msra.gmra.mxu1 %v7601_v5  ;;  %v1356_v41 = vand.u32 4294901760, %v1355_v40 }
  0x7f   :  { %1210 = vmatpush.msra.mxu1 %v1108_v55 }
  0x80   :  { %983 = vmatmul.f32.vlgmr.msra.gmra.mxu2 %v910_v7 }
  0x81   :  { %1243 = vmatpush.msra.mxu2 %v1145_v58  ;;  %1212 = vmatpush.msra.mxu1 %v1110_v60  ;;  %v7671_v58 = vand.u32 4294901760, %v1292_v54 }
  0x82   :  { %1013 = vmatmul.f32.vlgmr.msra.gmra.mxu3 %v911_v11 }
  0x83   :  { %1272 = vmatpush.msra.mxu3 %v1108_v55  ;;  %1247 = vmatpush.msra.mxu2 %v1151_v0  ;;  %v1553_v55 = vand.u32 4294901760, %v1552_v52  ;;  %v1316_v2 = vsub.f32 %v1292_v54, %v7671_v58 }
  0x85   :  { %1274 = vmatpush.msra.mxu3 %v1110_v60  ;;  %v1317_v7 = vand.u32 4294901760, %v1316_v2 }
  0x86   :  { %914 = vmatmul.f32.vlgmr.msra.gmra.mxu0 %v913_v19  ;;  %957 = vmatmul.f32.gmra.mxu1 %v7611_v12 }
  0x87   :  { %1180 = vmatpush.msra.mxu0 %v7590_v57  ;;  %v1559_v57 = vand.u32 4294901760, %v1558_v56  ;;  %v1318_v16 = vsub.f32 %v1316_v2, %v1317_v7 }
  0x88   :  { %988 = vmatmul.f32.gmra.mxu2 %v918_v15 }
  0x89   :  { %1183 = vmatpush.msra.mxu0 %v1150_v62  ;;  %v1287_v62 = vld [vmem:[#allocation2 + $0xe] sm:$0xf] }
  0x8a   :  { %1019 = vmatmul.f32.gmra.mxu3 %v919_v20  ;;  %v1295_v4 = vsel %vm43_vm0, %v1287_v62, 0 }
  0x8b   :  { %v7684_v8 = vand.u32 4294901760, %v1295_v4 }
  0x8e   :  { %922 = vmatmul.f32.gmra.mxu0 %v921_v30  ;;  %1073 = vmatmul.f32.vlgmr.msrb.gmra.mxu1 %v7601_v5 }
  0x8f   :  { %1351 = vmatpush.msrb.mxu1 %v1350_v36 }
  0x90   :  { %1117 = vmatmul.f32.vlgmr.msrb.gmra.mxu2 %v1116_v34 }
  0x91   :  { %1383 = vmatpush.msrb.mxu2 %v7626_v26  ;;  %1357 = vmatpush.msrb.mxu1 %v1356_v41 }
  0x92   :  { %1156 = vmatmul.f32.vlgmr.msrb.gmra.mxu3 %v7613_v13 }
  0x93   :  { %1413 = vmatpush.msrb.mxu3 %v1311_v24  ;;  %1386 = vmatpush.msrb.mxu2 %v7638_v37 }
  0x95   :  { %1415 = vmatpush.msrb.mxu3 %v1313_v33 }
  0x96   :  { %1046 = vmatmul.f32.vlgmr.msrb.gmra.mxu0 %v7601_v5  ;;  %1077 = vmatmul.f32.gmra.mxu1 %v7611_v12 }
  0x97   :  { %1312 = vmatpush.msrb.mxu0 %v1311_v24 }
  0x98   :  { %1125 = vmatmul.f32.gmra.mxu2 %v1124_v42  ;;  %v1695_v42 = vld [vmem:[#allocation3 + $0x80] sm:$0xff] }
  0x99   :  { %1314 = vmatpush.msrb.mxu0 %v1313_v33 }
  0x9a   :  { %1160 = vmatmul.f32.gmra.mxu3 %v7623_v22 }
  0x9b   :  { %v151_v51 = vpop.f32.mrf.mxu1 }
  0x9e   :  { %1050 = vmatmul.f32.gmra.mxu0 %v7611_v12  ;;  %1216 = vmatmul.f32.vlgmr.msra.gmra.mxu1 %v1114_v21  ;;  %v7686_v12 = vand.u32 4294901760, %v1495_v6  ;;  %v1498_v21 = vsel %vm43_vm0, %v1490_v18, 0 }
  0x9f   :  { %1475 = vmatpush.msra.mxu1 %v1311_v24 }
  0xa0   :  { %1249 = vmatmul.f32.vlgmr.msra.gmra.mxu2 %v7613_v13  ;;  %v7692_v20 = vsub.f32 %v1495_v6, %v7686_v12  ;;  %v1900_v6 = vld [vmem:[#allocation3 + $0x98] sm:$0xff] }
  0xa1   :  { %1515 = vmatpush.msra.mxu2 %v7650_v44  ;;  %1477 = vmatpush.msra.mxu1 %v1313_v33 }
  0xa2   :  { %1276 = vmatmul.f32.vlgmr.msra.gmra.mxu3 %v7613_v13  ;;  %v1520_v27 = vand.u32 4294901760, %v7692_v20 }
  0xa3   :  { %v112_v59 = vpop.f32.mrf.mxu0  ;;  %v181_v60 = vpop.f32.mrf.mxu2  ;;  %1554 = vmatpush.msra.mxu3 %v1553_v55  ;;  %1517 = vmatpush.msra.mxu2 %v7656_v47  ;;  %v59_v55 = vld [vmem:[#allocation5 + $0x10] sm:$0xff] }
  0xa4   :  { %v152_v61 = vadd.f32 %v151_v51, %v112_v59  ;;  %v155_v0 = vpop.f32.mrf.mxu1  ;;  %v1521_v37 = vsub.f32 %v7692_v20, %v1520_v27  ;;  %67 = vst.msk [vmem:[#allocation2 + $0x1a] sm:$0xff] %vm43_vm0, %v59_v55 }
  0xa5   :  { %v211_v63 = vpop.f32.mrf.mxu3  ;;  %1560 = vmatpush.msra.mxu3 %v1559_v57 }
  0xa6   :  { %v182_v1 = vadd.f32 %v181_v60, %v152_v61  ;;  %1186 = vmatmul.f32.vlgmr.msra.gmra.mxu0 %v7619_v17  ;;  %1222 = vmatmul.f32.gmra.mxu1 %v1122_v35  ;;  %v1324_v17 = vsub.f32 %v1295_v4, %v7684_v8 }
  0xa7   :  { %1446 = vmatpush.msra.mxu0 %v1348_v29  ;;  %v1696_v29 = vld [vmem:[#allocation3 + $0x88] sm:$0xff] }
  0xa8   :  { %v212_v5 = vadd.f32 %v211_v63, %v182_v1  ;;  %1253 = vmatmul.f32.gmra.mxu2 %v7623_v22  ;;  %v1325_v23 = vand.u32 4294901760, %v1324_v17  ;;  %v7702_v32 = vand.u32 4294901760, %v1696_v29 }
  0xa9   :  { %1450 = vmatpush.msra.mxu0 %v1354_v38 }
  0xaa   :  { %1280 = vmatmul.f32.gmra.mxu3 %v7623_v22  ;;  %v1319_v22 = vand.u32 4294901760, %v1318_v16  ;;  %v1326_v34 = vsub.f32 %v1324_v17, %v1325_v23  ;;  %v7706_v35 = vsub.f32 %v1696_v29, %v7702_v32 }
  0xab   :  { %v120_v9 = vpop.f32.mrf.mxu0  ;;  %v186_v10 = vpop.f32.mrf.mxu2 }
  0xac   :  { %v156_v11 = vadd.f32 %v155_v0, %v120_v9  ;;  %v271_v14 = vpop.f32.mrf.mxu1  ;;  %v1754_v39 = vand.u32 4294901760, %v7706_v35  ;;  %v1327_v41 = vand.u32 4294901760, %v1326_v34  ;;  %v7742_v9 = vand.u32 4294901760, %v1900_v6 }
  0xad   :  { %v217_v13 = vpop.f32.mrf.mxu3 }
  0xae   :  { %v187_v15 = vadd.f32 %v186_v10, %v156_v11  ;;  %1191 = vmatmul.f32.gmra.mxu0 %v7631_v28  ;;  %1359 = vmatmul.f32.vlgmr.msrb.gmra.mxu1 %v7671_v58  ;;  %v7698_v28 = vand.u32 4294901760, %v1498_v21  ;;  %v1755_v45 = vsub.f32 %v7706_v35, %v1754_v39  ;;  %v1899_v11 = vld [vmem:[#allocation3 + $0x90] sm:$0xff] }
  0xaf   :  { %1616 = vmatpush.msrb.mxu1 %v7650_v44 }
  0xb0   :  { %v218_v19 = vadd.f32 %v217_v13, %v187_v15  ;;  %1389 = vmatmul.f32.vlgmr.msrb.gmra.mxu2 %v1316_v2  ;;  %v7713_v38 = vsub.f32 %v1498_v21, %v7698_v28  ;;  %v1756_v52 = vand.u32 4294901760, %v1755_v45  ;;  %v7748_v13 = vsub.f32 %v1900_v6, %v7742_v9  ;;  %v1692_v21 = vld [vmem:[#allocation2 + $0x8] sm:$0xff] }
  0xb1   :  { %1649 = vmatpush.msrb.mxu2 %v1551_v48  ;;  %1618 = vmatpush.msrb.mxu1 %v7656_v47  ;;  %v1522_v48 = vand.u32 4294901760, %v1521_v37  ;;  %v1698_v29 = vsel %vm43_vm0, %v1692_v21, 0 }
  0xb2   :  { %1419 = vmatmul.f32.vlgmr.msrb.gmra.mxu3 %v1317_v7  ;;  %v1528_v50 = vand.u32 4294901760, %v7713_v38  ;;  %v60_v7 = vld [vmem:[#allocation5 + $0x18] sm:$0xff] }
  0xb3   :  { %v244_v24 = vpop.f32.mrf.mxu0  ;;  %v308_v25 = vpop.f32.mrf.mxu2  ;;  %1678 = vmatpush.msrb.mxu3 %v7650_v44  ;;  %1653 = vmatpush.msrb.mxu2 %v1557_v53  ;;  %68 = vst.msk [vmem:[#allocation2 + $0x22] sm:$0xff] %vm43_vm0, %v60_v7 }
  0xb4   :  { %v245_v26 = vadd.f32 %v244_v24, %v212_v5  ;;  %v275_v31 = vpop.f32.mrf.mxu1  ;;  %v1529_v59 = vsub.f32 %v7713_v38, %v1528_v50 }
  0xb5   :  { %v347_v30 = vpop.f32.mrf.mxu3  ;;  %1680 = vmatpush.msrb.mxu3 %v7656_v47 }
  0xb6   :  { %v272_v33 = vadd.f32 %v271_v14, %v245_v26  ;;  %1320 = vmatmul.f32.vlgmr.msrb.gmra.mxu0 %v1319_v22  ;;  %1363 = vmatmul.f32.gmra.mxu1 %v7684_v8  ;;  %v1530_v2 = vand.u32 4294901760, %v1529_v59  ;;  %v7750_v14 = vand.u32 4294901760, %v1899_v11 }
  0xb7   :  { %1586 = vmatpush.msrb.mxu0 %v7654_v46  ;;  %v7720_v46 = vand.u32 4294901760, %v1695_v42 }
  0xb8   :  { %v309_v36 = vadd.f32 %v308_v25, %v272_v33  ;;  %1394 = vmatmul.f32.gmra.mxu2 %v1324_v17  ;;  %v1958_v17 = vand.u32 4294901760, %v7748_v13  ;;  %v7757_v18 = vsub.f32 %v1899_v11, %v7750_v14 }
  0xb9   :  { %1589 = vmatpush.msrb.mxu0 %v7661_v49  ;;  %v7724_v53 = vsub.f32 %v1695_v42, %v7720_v46  ;;  %v1693_v42 = vld [vmem:[#allocation2 + $0x10] sm:$0xf] }
  0xba   :  { %v348_v40 = vadd.f32 %v347_v30, %v309_v36  ;;  %1425 = vmatmul.f32.gmra.mxu3 %v1325_v23  ;;  %v1959_v24 = vsub.f32 %v7748_v13, %v1958_v17  ;;  %v1964_v25 = vand.u32 4294901760, %v7757_v18  ;;  %v1701_v45 = vsel %vm43_vm0, %v1693_v42, 0 }
  0xbb   :  { %v248_v43 = vpop.f32.mrf.mxu0  ;;  %v316_v44 = vpop.f32.mrf.mxu2  ;;  %v1760_v56 = vand.u32 4294901760, %v7724_v53 }
  0xbc   :  { %v249_v47 = vadd.f32 %v248_v43, %v218_v19  ;;  %v407_v49 = vpop.f32.mrf.mxu1  ;;  %v1960_v30 = vand.u32 4294901760, %v1959_v24 }
  0xbd   :  { %v351_v51 = vpop.f32.mrf.mxu3  ;;  %v1761_v60 = vsub.f32 %v7724_v53, %v1760_v56 }
  0xbe   :  { %v276_v54 = vadd.f32 %v275_v31, %v249_v47  ;;  %1328 = vmatmul.f32.gmra.mxu0 %v1327_v41  ;;  %1479 = vmatmul.f32.vlgmr.msra.gmra.mxu1 %v7671_v58  ;;  %v1965_v31 = vsub.f32 %v7757_v18, %v1964_v25 }
  0xbf   :  { %1757 = vmatpush.msra.mxu1 %v1756_v52  ;;  %v1762_v0 = vand.u32 4294901760, %v1761_v60 }
  0xc0   :  { %v317_v57 = vadd.f32 %v316_v44, %v276_v54  ;;  %1523 = vmatmul.f32.vlgmr.msra.gmra.mxu2 %v1522_v48  ;;  %v1966_v34 = vand.u32 4294901760, %v1965_v31  ;;  %v7788_v48 = vand.u32 4294901760, %v1701_v45 }
  0xc1   :  { %1789 = vmatpush.msra.mxu2 %v7706_v35  ;;  %1763 = vmatpush.msra.mxu1 %v1762_v0 }
  0xc2   :  { %v352_v61 = vadd.f32 %v351_v51, %v317_v57  ;;  %1562 = vmatmul.f32.vlgmr.msra.gmra.mxu3 %v7686_v12 }
  0xc3   :  { %v377_v62 = vpop.f32.mrf.mxu0  ;;  %v440_v63 = vpop.f32.mrf.mxu2  ;;  %1819 = vmatpush.msra.mxu3 %v7702_v32  ;;  %1792 = vmatpush.msra.mxu2 %v7724_v53  ;;  %v1730_v53 = vsub.f32 %v1701_v45, %v7788_v48 }
  0xc4   :  { %v378_v1 = vadd.f32 %v377_v62, %v348_v40  ;;  %v413_v4 = vpop.f32.mrf.mxu1 }
  0xc5   :  { %v467_v3 = vpop.f32.mrf.mxu3  ;;  %1821 = vmatpush.msra.mxu3 %v7720_v46 }
  0xc6   :  { %v408_v5 = vadd.f32 %v407_v49, %v378_v1  ;;  %1452 = vmatmul.f32.vlgmr.msra.gmra.mxu0 %v7671_v58  ;;  %1483 = vmatmul.f32.gmra.mxu1 %v7684_v8 }
  0xc7   :  { %1718 = vmatpush.msra.mxu0 %v7702_v32 }
  0xc8   :  { %v441_v10 = vadd.f32 %v440_v63, %v408_v5  ;;  %1531 = vmatmul.f32.gmra.mxu2 %v1530_v2  ;;  %v2103_v2 = vld [vmem:[#allocation3 + $0xa8] sm:$0xff] }
  0xc9   :  { %1720 = vmatpush.msra.mxu0 %v7720_v46  ;;  %v7806_v5 = vand.u32 4294901760, %v2103_v2 }
  0xca   :  { %v7752_v58 = vadd.f32 %v467_v3, %v441_v10  ;;  %1566 = vmatmul.f32.gmra.mxu3 %v7698_v28 }
  0xcb   :  { %v382_v15 = vpop.f32.mrf.mxu0  ;;  %v444_v16 = vpop.f32.mrf.mxu2 }
  0xcc   :  { %v383_v19 = vadd.f32 %v382_v15, %v352_v61  ;;  %v548_v23 = vpop.f32.mrf.mxu1  ;;  %v1731_v61 = vand.u32 4294901760, %v1730_v53 }
  0xcd   :  { %v471_v22 = vpop.f32.mrf.mxu3 }
  0xce   :  { %v414_v26 = vadd.f32 %v413_v4, %v383_v19  ;;  %1456 = vmatmul.f32.gmra.mxu0 %v7684_v8  ;;  %1622 = vmatmul.f32.vlgmr.msrb.gmra.mxu1 %v1520_v27  ;;  %v7772_v8 = vand.u32 4294901760, %v1698_v29  ;;  %v1732_v10 = vsub.f32 %v1730_v53, %v1731_v61 }
  0xcf   :  { %1881 = vmatpush.msrb.mxu1 %v7702_v32 }
  0xd0   :  { %v445_v33 = vadd.f32 %v444_v16, %v414_v26  ;;  %1655 = vmatmul.f32.vlgmr.msrb.gmra.mxu2 %v7686_v12  ;;  %v1722_v44 = vsub.f32 %v1698_v29, %v7772_v8 }
  0xd1   :  { %1922 = vmatpush.msrb.mxu2 %v7742_v9  ;;  %1883 = vmatpush.msrb.mxu1 %v7720_v46 }
  0xd2   :  { %v7769_v36 = vadd.f32 %v471_v22, %v445_v33  ;;  %1682 = vmatmul.f32.vlgmr.msrb.gmra.mxu3 %v7686_v12  ;;  %v1896_v12 = vld [vmem:[#allocation2 + $0x18] sm:$0xff] }
  0xd3   :  { %v509_v37 = vpop.f32.mrf.mxu0  ;;  %v578_v40 = vpop.f32.mrf.mxu2  ;;  %1961 = vmatpush.msrb.mxu3 %v1960_v30  ;;  %1924 = vmatpush.msrb.mxu2 %v7750_v14  ;;  %v1902_v46 = vsel %vm43_vm0, %v1896_v12, 0 }
  0xd4   :  { %v549_v41 = vadd.f32 %v548_v23, %v509_v37  ;;  %v552_v43 = vpop.f32.mrf.mxu1  ;;  %v7790_v49 = vand.u32 4294901760, %v1902_v46 }
  0xd5   :  { %v608_v27 = vpop.f32.mrf.mxu3  ;;  %1967 = vmatpush.msrb.mxu3 %v1966_v34 }
  0xd6   :  { %v579_v32 = vadd.f32 %v578_v40, %v549_v41  ;;  %1592 = vmatmul.f32.vlgmr.msrb.gmra.mxu0 %v7692_v20  ;;  %1628 = vmatmul.f32.gmra.mxu1 %v1528_v50  ;;  %v1723_v20 = vand.u32 4294901760, %v1722_v44 }
  0xd7   :  { %1852 = vmatpush.msrb.mxu0 %v1754_v39 }
  0xd8   :  { %v609_v47 = vadd.f32 %v608_v27, %v579_v32  ;;  %1659 = vmatmul.f32.gmra.mxu2 %v7698_v28  ;;  %v1724_v50 = vsub.f32 %v1722_v44, %v1723_v20 }
  0xd9   :  { %1856 = vmatpush.msrb.mxu0 %v1760_v56  ;;  %v1897_v56 = vld [vmem:[#allocation2 + $0x20] sm:$0xf] }
  0xda   :  { %1686 = vmatmul.f32.gmra.mxu3 %v7698_v28  ;;  %v7796_v28 = vsub.f32 %v1902_v46, %v7790_v49  ;;  %v1905_v59 = vsel %vm43_vm0, %v1897_v56, 0  ;;  %v1725_v60 = vand.u32 4294901760, %v1724_v50 }
  0xdb   :  { %v517_v35 = vpop.f32.mrf.mxu0  ;;  %v583_v39 = vpop.f32.mrf.mxu2  ;;  %v7802_v1 = vand.u32 4294901760, %v1905_v59 }
  0xdc   :  { %v553_v51 = vadd.f32 %v552_v43, %v517_v35  ;;  %v668_v54 = vpop.f32.mrf.mxu1  ;;  %v1927_v0 = vand.u32 4294901760, %v7796_v28  ;;  %v2305_v35 = vld [vmem:[#allocation3 + $0xb0] sm:$0xff] }
  0xdd   :  { %v614_v52 = vpop.f32.mrf.mxu3  ;;  %v7818_v15 = vsub.f32 %v1905_v59, %v7802_v1 }
  0xde   :  { %v584_v55 = vadd.f32 %v583_v39, %v553_v51  ;;  %1597 = vmatmul.f32.gmra.mxu0 %v7713_v38  ;;  %1765 = vmatmul.f32.vlgmr.msra.gmra.mxu1 %v7772_v8  ;;  %v7854_v51 = vand.u32 4294901760, %v2305_v35 }
  0xdf   :  { %2023 = vmatpush.msra.mxu1 %v7742_v9 }
  0xe0   :  { %v615_v57 = vadd.f32 %v614_v52, %v584_v55  ;;  %1795 = vmatmul.f32.vlgmr.msra.gmra.mxu2 %v1722_v44  ;;  %v7859_v50 = vsub.f32 %v2305_v35, %v7854_v51 }
  0xe1   :  { %2056 = vmatpush.msra.mxu2 %v1958_v17  ;;  %2025 = vmatpush.msra.mxu1 %v7750_v14  ;;  %v2102_v17 = vld [vmem:[#allocation3 + $0xa0] sm:$0xff] }
  0xe2   :  { %1825 = vmatmul.f32.vlgmr.msra.gmra.mxu3 %v1723_v20  ;;  %v7825_v22 = vand.u32 4294901760, %v2102_v17 }
  0xe3   :  { %v641_v38 = vpop.f32.mrf.mxu0  ;;  %v712_v62 = vpop.f32.mrf.mxu2  ;;  %2085 = vmatpush.msra.mxu3 %v7742_v9  ;;  %2060 = vmatpush.msra.mxu2 %v1964_v25  ;;  %v7810_v9 = vsub.f32 %v2103_v2, %v7806_v5  ;;  %v1935_v25 = vand.u32 4294901760, %v7818_v15 }
  0xe4   :  { %v642_v63 = vadd.f32 %v641_v38, %v609_v47  ;;  %v672_v4 = vpop.f32.mrf.mxu1  ;;  %v7829_v30 = vsub.f32 %v2102_v17, %v7825_v22  ;;  %v2306_v47 = vld [vmem:[#allocation3 + $0xb8] sm:$0xff]  ;;  %v2370_v38 = vand.u32 4294901760, %v7859_v50  ;;  %v2100_v17 = vld [vmem:[#allocation2 + $0x21] sm:$0xf] }
  0xe5   :  { %v751_v3 = vpop.f32.mrf.mxu3  ;;  %2087 = vmatpush.msra.mxu3 %v7750_v14  ;;  %v1928_v14 = vsub.f32 %v7796_v28, %v1927_v0  ;;  %v2161_v16 = vand.u32 4294901760, %v7810_v9  ;;  %v1936_v40 = vsub.f32 %v7818_v15, %v1935_v25  ;;  %v7847_v46 = vand.u32 4294901760, %v2306_v47 }
  0xe6   :  { %v669_v6 = vadd.f32 %v668_v54, %v642_v63  ;;  %1726 = vmatmul.f32.vlgmr.msra.gmra.mxu0 %v1725_v60  ;;  %v752_v7 = vadd.f32 %v751_v3, %v712_v62  ;;  %1769 = vmatmul.f32.gmra.mxu1 %v7788_v48  ;;  %v2167_v34 = vand.u32 4294901760, %v7829_v30  ;;  %v2371_v3 = vsub.f32 %v7859_v50, %v2370_v38 }
  0xe7   :  { %1993 = vmatpush.msra.mxu0 %v7748_v13  ;;  %v1733_v13 = vand.u32 4294901760, %v1732_v10  ;;  %v1929_v24 = vand.u32 4294901760, %v1928_v14  ;;  %v1937_v32 = vand.u32 4294901760, %v1936_v40  ;;  %v7852_v39 = vsub.f32 %v2306_v47, %v7847_v46 }
  0xe8   :  { %v675_v11 = vadd.f32 %v669_v6, %v7752_v58  ;;  %1800 = vmatmul.f32.gmra.mxu2 %v1730_v53  ;;  %v2162_v58 = vsub.f32 %v7810_v9, %v2161_v16  ;;  %v2168_v41 = vsub.f32 %v7829_v30, %v2167_v34  ;;  %v2372_v6 = vand.u32 4294901760, %v2371_v3 }
  0xe9   :  { %1996 = vmatpush.msra.mxu0 %v7757_v18  ;;  %v2364_v55 = vand.u32 4294901760, %v7852_v39 }
  0xea   :  { %1831 = vmatmul.f32.gmra.mxu3 %v1731_v61  ;;  %v2163_v18 = vand.u32 4294901760, %v2162_v58  ;;  %v2108_v58 = vsel %vm43_vm0, %v2100_v17, 0 }
  0xeb   :  { %v645_v19 = vpop.f32.mrf.mxu0  ;;  %v720_v21 = vpop.f32.mrf.mxu2  ;;  %v2365_v61 = vsub.f32 %v7852_v39, %v2364_v55 }
  0xec   :  { %v646_v23 = vadd.f32 %v645_v19, %v615_v57  ;;  %v811_v29 = vpop.f32.mrf.mxu1  ;;  %v2099_v57 = vld [vmem:[#allocation2 + $0x19] sm:$0xff] }
  0xed   :  { %v755_v26 = vpop.f32.mrf.mxu3  ;;  %v2105_v63 = vsel %vm43_vm0, %v2099_v57, 0  ;;  %v2366_v2 = vand.u32 4294901760, %v2365_v61 }
  0xee   :  { %v673_v31 = vadd.f32 %v672_v4, %v646_v23  ;;  %1734 = vmatmul.f32.gmra.mxu0 %v1733_v13  ;;  %v756_v33 = vadd.f32 %v755_v26, %v720_v21  ;;  %1885 = vmatmul.f32.vlgmr.msrb.gmra.mxu1 %v7772_v8  ;;  %v2302_v21 = vld [vmem:[#allocation2 + $0x1a] sm:$0xff] }
  0xef   :  { %2164 = vmatpush.msrb.mxu1 %v2163_v18 }
  0xf0   :  { %v676_v37 = vadd.f32 %v673_v31, %v7769_v36  ;;  %1930 = vmatmul.f32.vlgmr.msrb.gmra.mxu2 %v1929_v24  ;;  %v2169_v36 = vand.u32 4294901760, %v2168_v41  ;;  %v7896_v24 = vand.u32 4294901760, %v2108_v58 }
  0xf1   :  { %2196 = vmatpush.msrb.mxu2 %v7810_v9 }
  0xf2   :  { %1969 = vmatmul.f32.vlgmr.msrb.gmra.mxu3 %v7790_v49  ;;  %2170 = vmatpush.msrb.mxu1 %v2169_v36 }
  0xf3   :  { %v781_v42 = vpop.f32.mrf.mxu0  ;;  %v844_v27 = vpop.f32.mrf.mxu2  ;;  %2226 = vmatpush.msrb.mxu3 %v7806_v5  ;;  %2199 = vmatpush.msrb.mxu2 %v7829_v30  ;;  %v2137_v30 = vsub.f32 %v2108_v58, %v7896_v24 }
  0xf4   :  { %v782_v43 = vadd.f32 %v781_v42, %v752_v7  ;;  %v817_v12 = vpop.f32.mrf.mxu1 }
  0xf5   :  { %v871_v44 = vpop.f32.mrf.mxu3  ;;  %2228 = vmatpush.msrb.mxu3 %v7825_v22  ;;  %v2138_v41 = vand.u32 4294901760, %v2137_v30 }
  0xf6   :  { %v812_v45 = vadd.f32 %v811_v29, %v782_v43  ;;  %1858 = vmatmul.f32.vlgmr.msrb.gmra.mxu0 %v7772_v8  ;;  %1889 = vmatmul.f32.gmra.mxu1 %v7788_v48 }
  0xf7   :  { %2125 = vmatpush.msrb.mxu0 %v7806_v5  ;;  %v2139_v35 = vsub.f32 %v2137_v30, %v2138_v41 }
  0xf8   :  { %v845_v20 = vadd.f32 %v844_v27, %v812_v45  ;;  %1938 = vmatmul.f32.gmra.mxu2 %v1937_v32 }
  0xf9   :  { %2127 = vmatpush.msrb.mxu0 %v7825_v22 }
  0xfa   :  { %v872_v52 = vadd.f32 %v871_v44, %v845_v20  ;;  %1973 = vmatmul.f32.gmra.mxu3 %v7802_v1  ;;  %v2509_v44 = vld [vmem:[#allocation3 + $0xc8] sm:$0xff] }
  0xfb   :  { %v786_v8 = vpop.f32.mrf.mxu0  ;;  %v848_v54 = vpop.f32.mrf.mxu2  ;;  %v7918_v47 = vand.u32 4294901760, %v2509_v44 }
  0xfc   :  { %v7861_v53 = vadd.f32 %v872_v52, %v675_v11  ;;  %v787_v56 = vadd.f32 %v786_v8, %v756_v33  ;;  %v954_v60 = vpop.f32.mrf.mxu1 }
  0xfd   :  { %v875_v59 = vpop.f32.mrf.mxu3  ;;  %v7922_v52 = vsub.f32 %v2509_v44, %v7918_v47 }
  0xfe   :  { %v818_v62 = vadd.f32 %v817_v12, %v787_v56  ;;  %1862 = vmatmul.f32.gmra.mxu0 %v7788_v48  ;;  %2029 = vmatmul.f32.vlgmr.msra.gmra.mxu1 %v1927_v0  ;;  %v7878_v48 = vand.u32 4294901760, %v2105_v63  ;;  %v2508_v56 = vld [vmem:[#allocation3 + $0xc0] sm:$0xff] }
  0xff   :  { %2288 = vmatpush.msra.mxu1 %v7806_v5 }
 0x100   :  { %v849_v4 = vadd.f32 %v848_v54, %v818_v62  ;;  %2062 = vmatmul.f32.vlgmr.msra.gmra.mxu2 %v7790_v49 }
 0x101   :  { %2328 = vmatpush.msra.mxu2 %v7847_v46  ;;  %2290 = vmatpush.msra.mxu1 %v7825_v22  ;;  %v2308_v22 = vsel %vm43_vm0, %v2302_v21, 0 }
 0x102   :  { %v876_v7 = vadd.f32 %v875_v59, %v849_v4  ;;  %2089 = vmatmul.f32.vlgmr.msra.gmra.mxu3 %v7790_v49  ;;  %v2129_v49 = vsub.f32 %v2105_v63, %v7878_v48  ;;  %v7898_v29 = vand.u32 4294901760, %v2308_v22 }
 0x103   :  { %v915_v10 = vpop.f32.mrf.mxu0  ;;  %v984_v11 = vpop.f32.mrf.mxu2  ;;  %2367 = vmatpush.msra.mxu3 %v2366_v2  ;;  %2330 = vmatpush.msra.mxu2 %v7854_v51 }
 0x104   :  { %v7881_v14 = vadd.f32 %v876_v7, %v676_v37  ;;  %v955_v13 = vadd.f32 %v954_v60, %v915_v10  ;;  %v958_v19 = vpop.f32.mrf.mxu1  ;;  %v7937_v60 = vand.u32 4294901760, %v2508_v56 }
 0x105   :  { %v1014_v0 = vpop.f32.mrf.mxu3  ;;  %2373 = vmatpush.msra.mxu3 %v2372_v6 }
 0x106   :  { %v985_v5 = vadd.f32 %v984_v11, %v955_v13  ;;  %1999 = vmatmul.f32.vlgmr.msra.gmra.mxu0 %v7796_v28  ;;  %2035 = vmatmul.f32.gmra.mxu1 %v1935_v25  ;;  %v2130_v28 = vand.u32 4294901760, %v2129_v49  ;;  %v7941_v3 = vsub.f32 %v2508_v56, %v7937_v60  ;;  %v2506_v56 = vld [vmem:[#allocation2 + $0x23] sm:$0xf] }
 0x107   :  { %2259 = vmatpush.msra.mxu0 %v2161_v16 }
 0x108   :  { %v1015_v23 = vadd.f32 %v1014_v0, %v985_v5  ;;  %2066 = vmatmul.f32.gmra.mxu2 %v7802_v1  ;;  %v2131_v25 = vsub.f32 %v2129_v49, %v2130_v28  ;;  %v2573_v7 = vand.u32 4294901760, %v7941_v3 }
 0x109   :  { %2263 = vmatpush.msra.mxu0 %v2167_v34  ;;  %v2303_v34 = vld [vmem:[#allocation2 + $0x22] sm:$0xf] }
 0x10a   :  { %2093 = vmatmul.f32.gmra.mxu3 %v7802_v1  ;;  %v7904_v1 = vsub.f32 %v2308_v22, %v7898_v29  ;;  %v2311_v40 = vsel %vm43_vm0, %v2303_v34, 0  ;;  %v2574_v13 = vsub.f32 %v7941_v3, %v2573_v7 }
 0x10b   :  { %v923_v9 = vpop.f32.mrf.mxu0  ;;  %v989_v16 = vpop.f32.mrf.mxu2  ;;  %v7914_v32 = vand.u32 4294901760, %v2311_v40 }
 0x10c   :  { %v959_v26 = vadd.f32 %v958_v19, %v923_v9  ;;  %v1074_v31 = vpop.f32.mrf.mxu1  ;;  %v2333_v43 = vand.u32 4294901760, %v7904_v1  ;;  %v2711_v9 = vld [vmem:[#allocation3 + $0xd0] sm:$0xff] }
 0x10d   :  { %v1020_v18 = vpop.f32.mrf.mxu3  ;;  %v7930_v54 = vsub.f32 %v2311_v40, %v7914_v32 }
 0x10e   :  { %v990_v33 = vadd.f32 %v989_v16, %v959_v26  ;;  %2004 = vmatmul.f32.gmra.mxu0 %v7818_v15  ;;  %2172 = vmatmul.f32.vlgmr.msrb.gmra.mxu1 %v7878_v48  ;;  %v2132_v15 = vand.u32 4294901760, %v2131_v25  ;;  %v7966_v26 = vand.u32 4294901760, %v2711_v9 }
 0x10f   :  { %2429 = vmatpush.msrb.mxu1 %v7847_v46  ;;  %v2341_v62 = vand.u32 4294901760, %v7930_v54 }
 0x110   :  { %v1021_v37 = vadd.f32 %v1020_v18, %v990_v33  ;;  %2202 = vmatmul.f32.vlgmr.msrb.gmra.mxu2 %v2129_v49  ;;  %v7971_v25 = vsub.f32 %v2711_v9, %v7966_v26 }
 0x111   :  { %2462 = vmatpush.msrb.mxu2 %v2364_v55  ;;  %2431 = vmatpush.msrb.mxu1 %v7854_v51  ;;  %v2567_v55 = vand.u32 4294901760, %v7922_v52  ;;  %v2342_v11 = vsub.f32 %v7930_v54, %v2341_v62 }
 0x112   :  { %2232 = vmatmul.f32.vlgmr.msrb.gmra.mxu3 %v2130_v28 }
 0x113   :  { %v1047_v42 = vpop.f32.mrf.mxu0  ;;  %v1118_v27 = vpop.f32.mrf.mxu2  ;;  %2491 = vmatpush.msrb.mxu3 %v7847_v46  ;;  %2466 = vmatpush.msrb.mxu2 %v2370_v38  ;;  %v2343_v5 = vand.u32 4294901760, %v2342_v11 }
 0x114   :  { %v1048_v36 = vadd.f32 %v1047_v42, %v1015_v23  ;;  %v1078_v45 = vpop.f32.mrf.mxu1  ;;  %v2712_v23 = vld [vmem:[#allocation3 + $0xd8] sm:$0xff]  ;;  %v2776_v42 = vand.u32 4294901760, %v7971_v25 }
 0x115   :  { %v1157_v12 = vpop.f32.mrf.mxu3  ;;  %2493 = vmatpush.msrb.mxu3 %v7854_v51  ;;  %v2334_v51 = vsub.f32 %v7904_v1, %v2333_v43  ;;  %v7959_v22 = vand.u32 4294901760, %v2712_v23 }
 0x116   :  { %v1075_v20 = vadd.f32 %v1074_v31, %v1048_v36  ;;  %2133 = vmatmul.f32.vlgmr.msrb.gmra.mxu0 %v2132_v15  ;;  %v1158_v46 = vadd.f32 %v1157_v12, %v1118_v27  ;;  %2176 = vmatmul.f32.gmra.mxu1 %v7896_v24  ;;  %v2777_v12 = vsub.f32 %v7971_v25, %v2776_v42 }
 0x117   :  { %2399 = vmatpush.msrb.mxu0 %v7852_v39  ;;  %v2140_v39 = vand.u32 4294901760, %v2139_v35  ;;  %v2335_v38 = vand.u32 4294901760, %v2334_v51  ;;  %v7964_v16 = vsub.f32 %v2712_v23, %v7959_v22 }
 0x118   :  { %v1081_v8 = vadd.f32 %v1075_v20, %v7861_v53  ;;  %2207 = vmatmul.f32.gmra.mxu2 %v2137_v30  ;;  %v2568_v53 = vsub.f32 %v7922_v52, %v2567_v55  ;;  %v2778_v20 = vand.u32 4294901760, %v2777_v12 }
 0x119   :  { %2402 = vmatpush.msrb.mxu0 %v7859_v50  ;;  %v2770_v33 = vand.u32 4294901760, %v7964_v16 }
 0x11a   :  { %2238 = vmatmul.f32.gmra.mxu3 %v2138_v41  ;;  %v2569_v50 = vand.u32 4294901760, %v2568_v53  ;;  %v2514_v53 = vsel %vm43_vm0, %v2506_v56, 0 }
 0x11b   :  { %v1051_v57 = vpop.f32.mrf.mxu0  ;;  %v1126_v59 = vpop.f32.mrf.mxu2  ;;  %v2771_v41 = vsub.f32 %v7964_v16, %v2770_v33 }
 0x11c   :  { %v1052_v61 = vadd.f32 %v1051_v57, %v1021_v37  ;;  %v1217_v2 = vpop.f32.mrf.mxu1  ;;  %v2505_v37 = vld [vmem:[#allocation2 + $0x1b] sm:$0xff] }
 0x11d   :  { %v1161_v63 = vpop.f32.mrf.mxu3  ;;  %v2511_v36 = vsel %vm43_vm0, %v2505_v37, 0  ;;  %v2772_v44 = vand.u32 4294901760, %v2771_v41 }
 0x11e   :  { %v1079_v4 = vadd.f32 %v1078_v45, %v1052_v61  ;;  %2141 = vmatmul.f32.gmra.mxu0 %v2140_v39  ;;  %v1162_v6 = vadd.f32 %v1161_v63, %v1126_v59  ;;  %2292 = vmatmul.f32.vlgmr.msra.gmra.mxu1 %v7878_v48  ;;  %v2708_v59 = vld [vmem:[#allocation2 + $0x1c] sm:$0xff] }
 0x11f   :  { %2570 = vmatpush.msra.mxu1 %v2569_v50 }
 0x120   :  { %v1082_v10 = vadd.f32 %v1079_v4, %v7881_v14  ;;  %2336 = vmatmul.f32.vlgmr.msra.gmra.mxu2 %v2335_v38  ;;  %v2575_v14 = vand.u32 4294901760, %v2574_v13  ;;  %v8008_v38 = vand.u32 4294901760, %v2514_v53 }
 0x121   :  { %2602 = vmatpush.msra.mxu2 %v7922_v52 }
 0x122   :  { %2375 = vmatmul.f32.vlgmr.msra.gmra.mxu3 %v7898_v29  ;;  %2576 = vmatpush.msra.mxu1 %v2575_v14 }
 0x123   :  { %v1187_v17 = vpop.f32.mrf.mxu0  ;;  %v1250_v0 = vpop.f32.mrf.mxu2  ;;  %2632 = vmatpush.msra.mxu3 %v7918_v47  ;;  %2605 = vmatpush.msra.mxu2 %v7941_v3  ;;  %v2543_v3 = vsub.f32 %v2514_v53, %v8008_v38 }
 0x124   :  { %v1188_v19 = vadd.f32 %v1187_v17, %v1158_v46  ;;  %v1223_v21 = vpop.f32.mrf.mxu1 }
 0x125   :  { %v1277_v49 = vpop.f32.mrf.mxu3  ;;  %2634 = vmatpush.msra.mxu3 %v7937_v60  ;;  %v2544_v13 = vand.u32 4294901760, %v2543_v3 }
 0x126   :  { %v1218_v58 = vadd.f32 %v1217_v2, %v1188_v19  ;;  %2265 = vmatmul.f32.vlgmr.msra.gmra.mxu0 %v7878_v48  ;;  %2296 = vmatmul.f32.gmra.mxu1 %v7896_v24 }
 0x127   :  { %2531 = vmatpush.msra.mxu0 %v7918_v47  ;;  %v2545_v9 = vsub.f32 %v2543_v3, %v2544_v13 }
 0x128   :  { %v1251_v28 = vadd.f32 %v1250_v0, %v1218_v58  ;;  %2344 = vmatmul.f32.gmra.mxu2 %v2343_v5 }
 0x129   :  { %2533 = vmatpush.msra.mxu0 %v7937_v60 }
 0x12a   :  { %v1278_v18 = vadd.f32 %v1277_v49, %v1251_v28  ;;  %2379 = vmatmul.f32.gmra.mxu3 %v7914_v32  ;;  %v2915_v49 = vld [vmem:[#allocation3 + $0xe8] sm:$0xff] }
 0x12b   :  { %v1192_v48 = vpop.f32.mrf.mxu0  ;;  %v1254_v31 = vpop.f32.mrf.mxu2  ;;  %v8030_v23 = vand.u32 4294901760, %v2915_v49 }
 0x12c   :  { %v7973_v30 = vadd.f32 %v1278_v18, %v1081_v8  ;;  %v1193_v34 = vadd.f32 %v1192_v48, %v1162_v6  ;;  %v1360_v15 = vpop.f32.mrf.mxu1 }
 0x12d   :  { %v1281_v40 = vpop.f32.mrf.mxu3  ;;  %v8034_v18 = vsub.f32 %v2915_v49, %v8030_v23 }
 0x12e   :  { %v1224_v27 = vadd.f32 %v1223_v21, %v1193_v34  ;;  %2269 = vmatmul.f32.gmra.mxu0 %v7896_v24  ;;  %2435 = vmatmul.f32.vlgmr.msrb.gmra.mxu1 %v2333_v43  ;;  %v7990_v24 = vand.u32 4294901760, %v2511_v36  ;;  %v2914_v34 = vld [vmem:[#allocation3 + $0xe0] sm:$0xff] }
 0x12f   :  { %2694 = vmatpush.msrb.mxu1 %v7918_v47 }
 0x130   :  { %v1255_v45 = vadd.f32 %v1254_v31, %v1224_v27  ;;  %2468 = vmatmul.f32.vlgmr.msrb.gmra.mxu2 %v7898_v29 }
 0x131   :  { %2734 = vmatpush.msrb.mxu2 %v7959_v22  ;;  %2696 = vmatpush.msrb.mxu1 %v7937_v60  ;;  %v2714_v60 = vsel %vm43_vm0, %v2708_v59, 0 }
 0x132   :  { %v1282_v46 = vadd.f32 %v1281_v40, %v1255_v45  ;;  %2495 = vmatmul.f32.vlgmr.msrb.gmra.mxu3 %v7898_v29  ;;  %v2535_v29 = vsub.f32 %v2511_v36, %v7990_v24  ;;  %v8010_v2 = vand.u32 4294901760, %v2714_v60 }
 0x133   :  { %v1321_v35 = vpop.f32.mrf.mxu0  ;;  %v1390_v8 = vpop.f32.mrf.mxu2  ;;  %2773 = vmatpush.msrb.mxu3 %v2772_v44  ;;  %2736 = vmatpush.msrb.mxu2 %v7966_v26 }
 0x134   :  { %v7993_v51 = vadd.f32 %v1282_v46, %v1082_v10  ;;  %v1361_v39 = vadd.f32 %v1360_v15, %v1321_v35  ;;  %v1364_v57 = vpop.f32.mrf.mxu1  ;;  %v8049_v15 = vand.u32 4294901760, %v2914_v34 }
 0x135   :  { %v1420_v43 = vpop.f32.mrf.mxu3  ;;  %2779 = vmatpush.msrb.mxu3 %v2778_v20 }
 0x136   :  { %v1391_v47 = vadd.f32 %v1390_v8, %v1361_v39  ;;  %2405 = vmatmul.f32.vlgmr.msrb.gmra.mxu0 %v7904_v1  ;;  %2441 = vmatmul.f32.gmra.mxu1 %v2341_v62  ;;  %v2536_v1 = vand.u32 4294901760, %v2535_v29  ;;  %v8053_v12 = vsub.f32 %v2914_v34, %v8049_v15  ;;  %v2912_v34 = vld [vmem:[#allocation2 + $0x25] sm:$0xf] }
 0x137   :  { %2665 = vmatpush.msrb.mxu0 %v2567_v55 }
 0x138   :  { %v1421_v61 = vadd.f32 %v1420_v43, %v1391_v47  ;;  %2472 = vmatmul.f32.gmra.mxu2 %v7914_v32  ;;  %v2537_v62 = vsub.f32 %v2535_v29, %v2536_v1  ;;  %v2979_v46 = vand.u32 4294901760, %v8053_v12 }
 0x139   :  { %2669 = vmatpush.msrb.mxu0 %v2573_v7  ;;  %v2709_v7 = vld [vmem:[#allocation2 + $0x24] sm:$0xf] }
 0x13a   :  { %2499 = vmatmul.f32.gmra.mxu3 %v7914_v32  ;;  %v8016_v32 = vsub.f32 %v2714_v60, %v8010_v2  ;;  %v2717_v11 = vsel %vm43_vm0, %v2709_v7, 0  ;;  %v2980_v39 = vsub.f32 %v8053_v12, %v2979_v46 }
 0x13b   :  { %v1329_v52 = vpop.f32.mrf.mxu0  ;;  %v1395_v55 = vpop.f32.mrf.mxu2  ;;  %v8026_v5 = vand.u32 4294901760, %v2717_v11 }
 0x13c   :  { %v1365_v63 = vadd.f32 %v1364_v57, %v1329_v52  ;;  %v1480_v4 = vpop.f32.mrf.mxu1  ;;  %v2739_v19 = vand.u32 4294901760, %v8016_v32  ;;  %v3117_v52 = vld [vmem:[#allocation3 + $0xf0] sm:$0xff] }
 0x13d   :  { %v1426_v50 = vpop.f32.mrf.mxu3  ;;  %v8042_v31 = vsub.f32 %v2717_v11, %v8026_v5 }
 0x13e   :  { %v1396_v6 = vadd.f32 %v1395_v55, %v1365_v63  ;;  %2410 = vmatmul.f32.gmra.mxu0 %v7930_v54  ;;  %2578 = vmatmul.f32.vlgmr.msra.gmra.mxu1 %v7990_v24  ;;  %v2538_v54 = vand.u32 4294901760, %v2537_v62  ;;  %v8078_v63 = vand.u32 4294901760, %v3117_v52 }
 0x13f   :  { %2835 = vmatpush.msra.mxu1 %v7959_v22  ;;  %v2747_v27 = vand.u32 4294901760, %v8042_v31 }
 0x140   :  { %v1427_v10 = vadd.f32 %v1426_v50, %v1396_v6  ;;  %2608 = vmatmul.f32.vlgmr.msra.gmra.mxu2 %v2535_v29  ;;  %v8083_v62 = vsub.f32 %v3117_v52, %v8078_v63 }
 0x141   :  { %2868 = vmatpush.msra.mxu2 %v2770_v33  ;;  %2837 = vmatpush.msra.mxu1 %v7966_v26  ;;  %v2973_v33 = vand.u32 4294901760, %v8034_v18  ;;  %v2748_v8 = vsub.f32 %v8042_v31, %v2747_v27 }
 0x142   :  { %2638 = vmatmul.f32.vlgmr.msra.gmra.mxu3 %v2536_v1 }
 0x143   :  { %v1453_v17 = vpop.f32.mrf.mxu0  ;;  %v1524_v0 = vpop.f32.mrf.mxu2  ;;  %2897 = vmatpush.msra.mxu3 %v7959_v22  ;;  %2872 = vmatpush.msra.mxu2 %v2776_v42  ;;  %v2749_v47 = vand.u32 4294901760, %v2748_v8 }
 0x144   :  { %v1454_v14 = vadd.f32 %v1453_v17, %v1421_v61  ;;  %v1484_v58 = vpop.f32.mrf.mxu1  ;;  %v3118_v61 = vld [vmem:[#allocation3 + $0xf8] sm:$0xff]  ;;  %v3182_v17 = vand.u32 4294901760, %v8083_v62 }
 0x145   :  { %v1563_v21 = vpop.f32.mrf.mxu3  ;;  %2899 = vmatpush.msra.mxu3 %v7966_v26  ;;  %v2740_v26 = vsub.f32 %v8016_v32, %v2739_v19  ;;  %v8071_v60 = vand.u32 4294901760, %v3118_v61 }
 0x146   :  { %v1481_v28 = vadd.f32 %v1480_v4, %v1454_v14  ;;  %2539 = vmatmul.f32.vlgmr.msra.gmra.mxu0 %v2538_v54  ;;  %v1564_v22 = vadd.f32 %v1563_v21, %v1524_v0  ;;  %2582 = vmatmul.f32.gmra.mxu1 %v8008_v38  ;;  %v3183_v21 = vsub.f32 %v8083_v62, %v3182_v17 }
 0x147   :  { %2805 = vmatpush.msra.mxu0 %v7964_v16  ;;  %v2546_v16 = vand.u32 4294901760, %v2545_v9  ;;  %v2741_v42 = vand.u32 4294901760, %v2740_v26  ;;  %v8076_v55 = vsub.f32 %v3118_v61, %v8071_v60 }
 0x148   :  { %v1487_v48 = vadd.f32 %v1481_v28, %v7973_v30  ;;  %2613 = vmatmul.f32.gmra.mxu2 %v2543_v3  ;;  %v2974_v30 = vsub.f32 %v8034_v18, %v2973_v33  ;;  %v3184_v28 = vand.u32 4294901760, %v3183_v21 }
 0x149   :  { %2808 = vmatpush.msra.mxu0 %v7971_v25  ;;  %v3176_v6 = vand.u32 4294901760, %v8076_v55 }
 0x14a   :  { %2644 = vmatmul.f32.gmra.mxu3 %v2544_v13  ;;  %v2975_v25 = vand.u32 4294901760, %v2974_v30  ;;  %v2920_v30 = vsel %vm43_vm0, %v2912_v34, 0 }
 0x14b   :  { %v1457_v37 = vpop.f32.mrf.mxu0  ;;  %v1532_v40 = vpop.f32.mrf.mxu2  ;;  %v3177_v13 = vsub.f32 %v8076_v55, %v3176_v6 }
 0x14c   :  { %v1458_v41 = vadd.f32 %v1457_v37, %v1427_v10  ;;  %v1623_v44 = vpop.f32.mrf.mxu1  ;;  %v2911_v10 = vld [vmem:[#allocation2 + $0x1d] sm:$0xff] }
 0x14d   :  { %v1567_v36 = vpop.f32.mrf.mxu3  ;;  %v2917_v14 = vsel %vm43_vm0, %v2911_v10, 0  ;;  %v3178_v49 = vand.u32 4294901760, %v3177_v13 }
 0x14e   :  { %v1485_v45 = vadd.f32 %v1484_v58, %v1458_v41  ;;  %2547 = vmatmul.f32.gmra.mxu0 %v2546_v16  ;;  %v1568_v20 = vadd.f32 %v1567_v36, %v1532_v40  ;;  %2698 = vmatmul.f32.vlgmr.msrb.gmra.mxu1 %v7990_v24  ;;  %v3114_v40 = vld [vmem:[#allocation2 + $0x1e] sm:$0xff] }
 0x14f   :  { %2976 = vmatpush.msrb.mxu1 %v2975_v25 }
 0x150   :  { %v1488_v35 = vadd.f32 %v1485_v45, %v7993_v51  ;;  %2742 = vmatmul.f32.vlgmr.msrb.gmra.mxu2 %v2741_v42  ;;  %v2981_v51 = vand.u32 4294901760, %v2980_v39  ;;  %v8120_v42 = vand.u32 4294901760, %v2920_v30 }
 0x151   :  { %3008 = vmatpush.msrb.mxu2 %v8034_v18 }
 0x152   :  { %2781 = vmatmul.f32.vlgmr.msrb.gmra.mxu3 %v8010_v2  ;;  %2982 = vmatpush.msrb.mxu1 %v2981_v51 }
 0x153   :  { %v1593_v56 = vpop.f32.mrf.mxu0  ;;  %v1656_v43 = vpop.f32.mrf.mxu2  ;;  %3038 = vmatpush.msrb.mxu3 %v8030_v23  ;;  %3011 = vmatpush.msrb.mxu2 %v8053_v12  ;;  %v2949_v12 = vsub.f32 %v2920_v30, %v8120_v42 }
 0x154   :  { %v1594_v57 = vadd.f32 %v1593_v56, %v1564_v22  ;;  %v1629_v59 = vpop.f32.mrf.mxu1 }
 0x155   :  { %v1683_v29 = vpop.f32.mrf.mxu3  ;;  %3040 = vmatpush.msrb.mxu3 %v8049_v15  ;;  %v2950_v39 = vand.u32 4294901760, %v2949_v12 }
 0x156   :  { %v1624_v53 = vadd.f32 %v1623_v44, %v1594_v57  ;;  %2671 = vmatmul.f32.vlgmr.msrb.gmra.mxu0 %v7990_v24  ;;  %2702 = vmatmul.f32.gmra.mxu1 %v8008_v38 }
 0x157   :  { %2937 = vmatpush.msrb.mxu0 %v8030_v23  ;;  %v2951_v52 = vsub.f32 %v2949_v12, %v2950_v39 }
 0x158   :  { %v1657_v1 = vadd.f32 %v1656_v43, %v1624_v53  ;;  %2750 = vmatmul.f32.gmra.mxu2 %v2749_v47 }
 0x159   :  { %2939 = vmatpush.msrb.mxu0 %v8049_v15 }
 0x15a   :  { %v1684_v50 = vadd.f32 %v1683_v29, %v1657_v1  ;;  %2785 = vmatmul.f32.gmra.mxu3 %v8026_v5  ;;  %v3321_v29 = vld [vmem:[#allocation3 + $0x108] sm:$0xff] }
 0x15b   :  { %v1598_v24 = vpop.f32.mrf.mxu0  ;;  %v1660_v4 = vpop.f32.mrf.mxu2  ;;  %v8142_v61 = vand.u32 4294901760, %v3321_v29 }
 0x15c   :  { %v8085_v3 = vadd.f32 %v1684_v50, %v1487_v48  ;;  %v1599_v7 = vadd.f32 %v1598_v24, %v1568_v20  ;;  %v1766_v54 = vpop.f32.mrf.mxu1 }
 0x15d   :  { %v1687_v11 = vpop.f32.mrf.mxu3  ;;  %v8146_v50 = vsub.f32 %v3321_v29, %v8142_v61 }
 0x15e   :  { %v1630_v0 = vadd.f32 %v1629_v59, %v1599_v7  ;;  %2675 = vmatmul.f32.gmra.mxu0 %v8008_v38  ;;  %2841 = vmatmul.f32.vlgmr.msra.gmra.mxu1 %v2739_v19  ;;  %v8102_v38 = vand.u32 4294901760, %v2917_v14  ;;  %v3320_v7 = vld [vmem:[#allocation3 + $0x100] sm:$0xff] }
 0x15f   :  { %3100 = vmatpush.msra.mxu1 %v8030_v23 }
 0x160   :  { %v1661_v58 = vadd.f32 %v1660_v4, %v1630_v0  ;;  %2874 = vmatmul.f32.vlgmr.msra.gmra.mxu2 %v8010_v2 }
 0x161   :  { %3140 = vmatpush.msra.mxu2 %v8071_v60  ;;  %3102 = vmatpush.msra.mxu1 %v8049_v15  ;;  %v3120_v15 = vsel %vm43_vm0, %v3114_v40, 0 }
 0x162   :  { %v1688_v22 = vadd.f32 %v1687_v11, %v1661_v58  ;;  %2901 = vmatmul.f32.vlgmr.msra.gmra.mxu3 %v8010_v2  ;;  %v2941_v2 = vsub.f32 %v2917_v14, %v8102_v38  ;;  %v8122_v44 = vand.u32 4294901760, %v3120_v15 }
 0x163   :  { %v1727_v9 = vpop.f32.mrf.mxu0  ;;  %v1796_v48 = vpop.f32.mrf.mxu2  ;;  %3179 = vmatpush.msra.mxu3 %v3178_v49  ;;  %3142 = vmatpush.msra.mxu2 %v8078_v63 }
 0x164   :  { %v8105_v26 = vadd.f32 %v1688_v22, %v1488_v35  ;;  %v1767_v16 = vadd.f32 %v1766_v54, %v1727_v9  ;;  %v1770_v37 = vpop.f32.mrf.mxu1  ;;  %v8161_v54 = vand.u32 4294901760, %v3320_v7 }
 0x165   :  { %v1826_v19 = vpop.f32.mrf.mxu3  ;;  %3185 = vmatpush.msra.mxu3 %v3184_v28 }
 0x166   :  { %v1797_v23 = vadd.f32 %v1796_v48, %v1767_v16  ;;  %2811 = vmatmul.f32.vlgmr.msra.gmra.mxu0 %v8016_v32  ;;  %2847 = vmatmul.f32.gmra.mxu1 %v2747_v27  ;;  %v2942_v32 = vand.u32 4294901760, %v2941_v2  ;;  %v8165_v21 = vsub.f32 %v3320_v7, %v8161_v54  ;;  %v3318_v7 = vld [vmem:[#allocation2 + $0x27] sm:$0xf] }
 0x167   :  { %3071 = vmatpush.msra.mxu0 %v2973_v33 }
 0x168   :  { %v1827_v41 = vadd.f32 %v1826_v19, %v1797_v23  ;;  %2878 = vmatmul.f32.gmra.mxu2 %v8026_v5  ;;  %v2943_v27 = vsub.f32 %v2941_v2, %v2942_v32  ;;  %v3385_v22 = vand.u32 4294901760, %v8165_v21 }
 0x169   :  { %3075 = vmatpush.msra.mxu0 %v2979_v46  ;;  %v3115_v46 = vld [vmem:[#allocation2 + $0x26] sm:$0xf] }
 0x16a   :  { %2905 = vmatmul.f32.gmra.mxu3 %v8026_v5  ;;  %v8128_v5 = vsub.f32 %v3120_v15, %v8122_v44  ;;  %v3123_v8 = vsel %vm43_vm0, %v3115_v46, 0  ;;  %v3386_v16 = vsub.f32 %v8165_v21, %v3385_v22 }
 0x16b   :  { %v1735_v18 = vpop.f32.mrf.mxu0  ;;  %v1801_v33 = vpop.f32.mrf.mxu2  ;;  %v8138_v47 = vand.u32 4294901760, %v3123_v8 }
 0x16c   :  { %v1771_v36 = vadd.f32 %v1770_v37, %v1735_v18  ;;  %v1886_v45 = vpop.f32.mrf.mxu1  ;;  %v3145_v57 = vand.u32 4294901760, %v8128_v5  ;;  %v3523_v18 = vld [vmem:[#allocation3 + $0x110] sm:$0xff] }
 0x16d   :  { %v1832_v25 = vpop.f32.mrf.mxu3  ;;  %v8154_v4 = vsub.f32 %v3123_v8, %v8138_v47 }
 0x16e   :  { %v1802_v20 = vadd.f32 %v1801_v33, %v1771_v36  ;;  %2816 = vmatmul.f32.gmra.mxu0 %v8042_v31  ;;  %2984 = vmatmul.f32.vlgmr.msrb.gmra.mxu1 %v8102_v38  ;;  %v2944_v31 = vand.u32 4294901760, %v2943_v27  ;;  %v8190_v36 = vand.u32 4294901760, %v3523_v18 }
 0x16f   :  { %3241 = vmatpush.msrb.mxu1 %v8071_v60  ;;  %v3153_v0 = vand.u32 4294901760, %v8154_v4 }
 0x170   :  { %v1833_v35 = vadd.f32 %v1832_v25, %v1802_v20  ;;  %3014 = vmatmul.f32.vlgmr.msrb.gmra.mxu2 %v2941_v2  ;;  %v8195_v27 = vsub.f32 %v3523_v18, %v8190_v36 }
 0x171   :  { %3274 = vmatpush.msrb.mxu2 %v3176_v6  ;;  %3243 = vmatpush.msrb.mxu1 %v8078_v63  ;;  %v3379_v6 = vand.u32 4294901760, %v8146_v50  ;;  %v3154_v48 = vsub.f32 %v8154_v4, %v3153_v0 }
 0x172   :  { %3044 = vmatmul.f32.vlgmr.msrb.gmra.mxu3 %v2942_v32 }
 0x173   :  { %v1859_v56 = vpop.f32.mrf.mxu0  ;;  %v1931_v43 = vpop.f32.mrf.mxu2  ;;  %3303 = vmatpush.msrb.mxu3 %v8071_v60  ;;  %3278 = vmatpush.msrb.mxu2 %v3182_v17  ;;  %v3155_v23 = vand.u32 4294901760, %v3154_v48 }
 0x174   :  { %v1860_v51 = vadd.f32 %v1859_v56, %v1827_v41  ;;  %v1890_v53 = vpop.f32.mrf.mxu1  ;;  %v3524_v41 = vld [vmem:[#allocation3 + $0x118] sm:$0xff]  ;;  %v3588_v56 = vand.u32 4294901760, %v8195_v27 }
 0x175   :  { %v1970_v59 = vpop.f32.mrf.mxu3  ;;  %3305 = vmatpush.msrb.mxu3 %v8078_v63  ;;  %v3146_v63 = vsub.f32 %v8128_v5, %v3145_v57  ;;  %v8183_v15 = vand.u32 4294901760, %v3524_v41 }
 0x176   :  { %v1887_v1 = vadd.f32 %v1886_v45, %v1860_v51  ;;  %2945 = vmatmul.f32.vlgmr.msrb.gmra.mxu0 %v2944_v31  ;;  %v1971_v60 = vadd.f32 %v1970_v59, %v1931_v43  ;;  %2988 = vmatmul.f32.gmra.mxu1 %v8120_v42  ;;  %v3589_v59 = vsub.f32 %v8195_v27, %v3588_v56 }
 0x177   :  { %3211 = vmatpush.msrb.mxu0 %v8076_v55  ;;  %v2952_v55 = vand.u32 4294901760, %v2951_v52  ;;  %v3147_v17 = vand.u32 4294901760, %v3146_v63  ;;  %v8188_v33 = vsub.f32 %v3524_v41, %v8183_v15 }
 0x178   :  { %v1893_v24 = vadd.f32 %v1887_v1, %v8085_v3  ;;  %3019 = vmatmul.f32.gmra.mxu2 %v2949_v12  ;;  %v3380_v3 = vsub.f32 %v8146_v50, %v3379_v6  ;;  %v3590_v1 = vand.u32 4294901760, %v3589_v59 }
 0x179   :  { %3214 = vmatpush.msrb.mxu0 %v8083_v62  ;;  %v3582_v20 = vand.u32 4294901760, %v8188_v33 }
 0x17a   :  { %3050 = vmatmul.f32.gmra.mxu3 %v2950_v39  ;;  %v3381_v62 = vand.u32 4294901760, %v3380_v3  ;;  %v3326_v3 = vsel %vm43_vm0, %v3318_v7, 0 }
 0x17b   :  { %v1863_v10 = vpop.f32.mrf.mxu0  ;;  %v1939_v11 = vpop.f32.mrf.mxu2  ;;  %v3583_v39 = vsub.f32 %v8188_v33, %v3582_v20 }
 0x17c   :  { %v1864_v13 = vadd.f32 %v1863_v10, %v1833_v35  ;;  %v2030_v49 = vpop.f32.mrf.mxu1  ;;  %v3317_v35 = vld [vmem:[#allocation2 + $0x1f] sm:$0xff] }
 0x17d   :  { %v1974_v14 = vpop.f32.mrf.mxu3  ;;  %v3323_v51 = vsel %vm43_vm0, %v3317_v35, 0  ;;  %v3584_v29 = vand.u32 4294901760, %v3583_v39  ;;  %v3734_v35 = vld [vmem:[#allocation3 + $0x10] sm:$0xff] }
 0x17e   :  { %v1891_v58 = vadd.f32 %v1890_v53, %v1864_v13  ;;  %2953 = vmatmul.f32.gmra.mxu0 %v2952_v55  ;;  %v1975_v28 = vadd.f32 %v1974_v14, %v1939_v11  ;;  %3104 = vmatmul.f32.vlgmr.msra.gmra.mxu1 %v8102_v38  ;;  %v3520_v11 = vld [vmem:[#allocation2 + $0x20] sm:$0xff] }
 0x17f   :  { %3382 = vmatpush.msra.mxu1 %v3381_v62 }
 0x180   :  { %v1894_v9 = vadd.f32 %v1891_v58, %v8105_v26  ;;  %3148 = vmatmul.f32.vlgmr.msra.gmra.mxu2 %v3147_v17  ;;  %v3387_v26 = vand.u32 4294901760, %v3386_v16  ;;  %v8232_v17 = vand.u32 4294901760, %v3326_v3 }
 0x181   :  { %3414 = vmatpush.msra.mxu2 %v8146_v50 }
 0x182   :  { %3187 = vmatmul.f32.vlgmr.msra.gmra.mxu3 %v8122_v44  ;;  %3388 = vmatpush.msra.mxu1 %v3387_v26 }
 0x183   :  { %v2000_v34 = vpop.f32.mrf.mxu0  ;;  %v2063_v19 = vpop.f32.mrf.mxu2  ;;  %3444 = vmatpush.msra.mxu3 %v8142_v61  ;;  %3417 = vmatpush.msra.mxu2 %v8165_v21  ;;  %v3355_v21 = vsub.f32 %v3326_v3, %v8232_v17 }
 0x184   :  { %v2001_v37 = vadd.f32 %v2000_v34, %v1971_v60  ;;  %v2036_v40 = vpop.f32.mrf.mxu1  ;;  %v61_v34 = vld [vmem:[#allocation5 + $0x20] sm:$0xff] }
 0x185   :  { %v2090_v2 = vpop.f32.mrf.mxu3  ;;  %3446 = vmatpush.msra.mxu3 %v8161_v54  ;;  %v3356_v16 = vand.u32 4294901760, %v3355_v21  ;;  %69 = vst.msk [vmem:[#allocation2 + $0x32] sm:$0xff] %vm43_vm0, %v61_v34 }
 0x186   :  { %v2031_v30 = vadd.f32 %v2030_v49, %v2001_v37  ;;  %3077 = vmatmul.f32.vlgmr.msra.gmra.mxu0 %v8102_v38  ;;  %3108 = vmatmul.f32.gmra.mxu1 %v8120_v42 }
 0x187   :  { %3343 = vmatpush.msra.mxu0 %v8142_v61 }
 0x188   :  { %v2064_v32 = vadd.f32 %v2063_v19, %v2031_v30  ;;  %3156 = vmatmul.f32.gmra.mxu2 %v3155_v23 }
 0x189   :  { %3345 = vmatpush.msra.mxu0 %v8161_v54 }
 0x18a   :  { %v2091_v25 = vadd.f32 %v2090_v2, %v2064_v32  ;;  %3191 = vmatmul.f32.gmra.mxu3 %v8138_v47 }
 0x18b   :  { %v2005_v38 = vpop.f32.mrf.mxu0  ;;  %v2067_v45 = vpop.f32.mrf.mxu2 }
 0x18c   :  { %v8197_v12 = vadd.f32 %v2091_v25, %v1893_v24  ;;  %v2006_v46 = vadd.f32 %v2005_v38, %v1975_v28  ;;  %v2173_v31 = vpop.f32.mrf.mxu1  ;;  %v3357_v25 = vsub.f32 %v3355_v21, %v3356_v16 }
 0x18d   :  { %v2094_v8 = vpop.f32.mrf.mxu3 }
 0x18e   :  { %v2037_v43 = vadd.f32 %v2036_v40, %v2006_v46  ;;  %3081 = vmatmul.f32.gmra.mxu0 %v8120_v42  ;;  %3247 = vmatmul.f32.vlgmr.msrb.gmra.mxu1 %v3145_v57  ;;  %v8214_v42 = vand.u32 4294901760, %v3323_v51  ;;  %v3735_v40 = vld [vmem:[#allocation3 + $0x18] sm:$0xff]  ;;  %v3358_v46 = vand.u32 4294901760, %v3357_v25 }
 0x18f   :  { %3506 = vmatpush.msrb.mxu1 %v8142_v61  ;;  %v8255_v32 = vand.u32 4294901760, %v3735_v40 }
 0x190   :  { %v2068_v53 = vadd.f32 %v2067_v45, %v2037_v43  ;;  %3280 = vmatmul.f32.vlgmr.msrb.gmra.mxu2 %v8122_v44 }
 0x191   :  { %3546 = vmatpush.msrb.mxu2 %v8183_v15  ;;  %3508 = vmatpush.msrb.mxu1 %v8161_v54  ;;  %v3526_v54 = vsel %vm43_vm0, %v3520_v11, 0  ;;  %v8259_v38 = vsub.f32 %v3735_v40, %v8255_v32 }
 0x192   :  { %v2095_v60 = vadd.f32 %v2094_v8, %v2068_v53  ;;  %3307 = vmatmul.f32.vlgmr.msrb.gmra.mxu3 %v8122_v44  ;;  %v3347_v44 = vsub.f32 %v3323_v51, %v8214_v42  ;;  %v8234_v49 = vand.u32 4294901760, %v3526_v54  ;;  %v62_v8 = vld [vmem:[#allocation5 + $0x28] sm:$0xff] }
 0x193   :  { %v2134_v52 = vpop.f32.mrf.mxu0  ;;  %v2203_v24 = vpop.f32.mrf.mxu2  ;;  %3585 = vmatpush.msrb.mxu3 %v3584_v29  ;;  %3548 = vmatpush.msrb.mxu2 %v8190_v36  ;;  %70 = vst.msk [vmem:[#allocation2 + $0x3a] sm:$0xff] %vm43_vm0, %v62_v8 }
 0x194   :  { %v8217_v63 = vadd.f32 %v2095_v60, %v1894_v9  ;;  %v2174_v55 = vadd.f32 %v2173_v31, %v2134_v52  ;;  %v2177_v10 = vpop.f32.mrf.mxu1 }
 0x195   :  { %v2233_v57 = vpop.f32.mrf.mxu3  ;;  %3591 = vmatpush.msrb.mxu3 %v3590_v1 }
 0x196   :  { %v2204_v61 = vadd.f32 %v2203_v24, %v2174_v55  ;;  %3217 = vmatmul.f32.vlgmr.msrb.gmra.mxu0 %v8128_v5  ;;  %3253 = vmatmul.f32.gmra.mxu1 %v3153_v0  ;;  %v3348_v5 = vand.u32 4294901760, %v3347_v44 }
 0x197   :  { %3477 = vmatpush.msrb.mxu0 %v3379_v6 }
 0x198   :  { %v2234_v13 = vadd.f32 %v2233_v57, %v2204_v61  ;;  %3284 = vmatmul.f32.gmra.mxu2 %v8138_v47  ;;  %v3349_v0 = vsub.f32 %v3347_v44, %v3348_v5 }
 0x199   :  { %3481 = vmatpush.msrb.mxu0 %v3385_v22  ;;  %v3521_v22 = vld [vmem:[#allocation2 + $0x28] sm:$0xf] }
 0x19a   :  { %3311 = vmatmul.f32.gmra.mxu3 %v8138_v47  ;;  %v8240_v47 = vsub.f32 %v3526_v54, %v8234_v49  ;;  %v3529_v48 = vsel %vm43_vm0, %v3521_v22, 0  ;;  %v3733_v8 = vld [vmem:[#allocation2 + $0x39] sm:$0xf] }
 0x19b   :  { %v2142_v50 = vpop.f32.mrf.mxu0  ;;  %v2208_v6 = vpop.f32.mrf.mxu2  ;;  %v8251_v2 = vand.u32 4294901760, %v3529_v48 }
 0x19c   :  { %v2178_v14 = vadd.f32 %v2177_v10, %v2142_v50  ;;  %v2293_v58 = vpop.f32.mrf.mxu1  ;;  %v3551_v23 = vand.u32 4294901760, %v8240_v47 }
 0x19d   :  { %v2239_v62 = vpop.f32.mrf.mxu3 }
 0x19e   :  { %v2209_v28 = vadd.f32 %v2208_v6, %v2178_v14  ;;  %3222 = vmatmul.f32.gmra.mxu0 %v8154_v4  ;;  %3390 = vmatmul.f32.vlgmr.msra.gmra.mxu1 %v8214_v42  ;;  %v3350_v4 = vand.u32 4294901760, %v3349_v0  ;;  %v3730_v14 = vld [vmem:[#allocation3] sm:$0xff] }
 0x19f   :  { %3647 = vmatpush.msra.mxu1 %v8183_v15 }
 0x1a0   :  { %v2240_v9 = vadd.f32 %v2239_v62, %v2209_v28  ;;  %3420 = vmatmul.f32.vlgmr.msra.gmra.mxu2 %v3347_v44 }
 0x1a1   :  { %3680 = vmatpush.msra.mxu2 %v3582_v20  ;;  %3649 = vmatpush.msra.mxu1 %v8190_v36  ;;  %v8269_v20 = vsub.f32 %v3529_v48, %v8251_v2 }
 0x1a2   :  { %3450 = vmatmul.f32.vlgmr.msra.gmra.mxu3 %v3348_v5  ;;  %v3731_v5 = vld [vmem:[#allocation3 + $0x8] sm:$0xff] }
 0x1a3   :  { %v2266_v19 = vpop.f32.mrf.mxu0  ;;  %v2337_v26 = vpop.f32.mrf.mxu2  ;;  %3709 = vmatpush.msra.mxu3 %v8183_v15  ;;  %3684 = vmatpush.msra.mxu2 %v3588_v56  ;;  %v8276_v56 = vand.u32 4294901760, %v3734_v35  ;;  %v8299_v50 = vand.u32 4294901760, %v3731_v5 }
 0x1a4   :  { %v2267_v37 = vadd.f32 %v2266_v19, %v2234_v13  ;;  %v2297_v41 = vpop.f32.mrf.mxu1 }
 0x1a5   :  { %v2376_v30 = vpop.f32.mrf.mxu3  ;;  %3711 = vmatpush.msra.mxu3 %v8190_v36  ;;  %v3552_v36 = vsub.f32 %v8240_v47, %v3551_v23  ;;  %v8281_v1 = vsub.f32 %v3734_v35, %v8276_v56  ;;  %v8304_v62 = vsub.f32 %v3731_v5, %v8299_v50 }
 0x1a6   :  { %v2294_v15 = vadd.f32 %v2293_v58, %v2267_v37  ;;  %3351 = vmatmul.f32.vlgmr.msra.gmra.mxu0 %v3350_v4  ;;  %v2377_v18 = vadd.f32 %v2376_v30, %v2337_v26  ;;  %3394 = vmatmul.f32.gmra.mxu1 %v8232_v17  ;;  %v8306_v58 = vand.u32 4294901760, %v3730_v14  ;;  %v3732_v4 = vld [vmem:[#allocation2 + $0x31] sm:$0xff] }
 0x1a7   :  { %3617 = vmatpush.msra.mxu0 %v8188_v33  ;;  %v3793_v33 = vand.u32 4294901760, %v8259_v38  ;;  %v3553_v51 = vand.u32 4294901760, %v3552_v36  ;;  %v3799_v24 = vand.u32 4294901760, %v8281_v1  ;;  %v3737_v40 = vsel %vm43_vm0, %v3732_v4, 0 }
 0x1a8   :  { %v8262_v45 = vadd.f32 %v2294_v15, %v8197_v12  ;;  %3425 = vmatmul.f32.gmra.mxu2 %v3355_v21  ;;  %v3989_v21 = vand.u32 4294901760, %v8304_v62  ;;  %v8311_v22 = vsub.f32 %v3730_v14, %v8306_v58 }
 0x1a9   :  { %3620 = vmatpush.msra.mxu0 %v8195_v27  ;;  %v3794_v39 = vsub.f32 %v8259_v38, %v3793_v33  ;;  %v3559_v27 = vand.u32 4294901760, %v8269_v20  ;;  %v3800_v57 = vsub.f32 %v8281_v1, %v3799_v24 }
 0x1aa   :  { %3456 = vmatmul.f32.gmra.mxu3 %v3356_v16  ;;  %v3990_v19 = vsub.f32 %v8304_v62, %v3989_v21  ;;  %v3995_v26 = vand.u32 4294901760, %v8311_v22 }
 0x1ab   :  { %v2270_v12 = vpop.f32.mrf.mxu0  ;;  %v2345_v31 = vpop.f32.mrf.mxu2  ;;  %v3795_v53 = vand.u32 4294901760, %v3794_v39  ;;  %v3560_v7 = vsub.f32 %v8269_v20, %v3559_v27  ;;  %v3740_v39 = vsel %vm43_vm0, %v3733_v8, 0 }
 0x1ac   :  { %v2271_v43 = vadd.f32 %v2270_v12, %v2240_v9  ;;  %v2436_v59 = vpop.f32.mrf.mxu1  ;;  %v3991_v30 = vand.u32 4294901760, %v3990_v19 }
 0x1ad   :  { %v2380_v29 = vpop.f32.mrf.mxu3  ;;  %v3561_v11 = vand.u32 4294901760, %v3560_v7 }
 0x1ae   :  { %v2298_v60 = vadd.f32 %v2297_v41, %v2271_v43  ;;  %3359 = vmatmul.f32.gmra.mxu0 %v3358_v46  ;;  %v2381_v52 = vadd.f32 %v2380_v29, %v2345_v31  ;;  %3510 = vmatmul.f32.vlgmr.msrb.gmra.mxu1 %v8214_v42  ;;  %v3996_v41 = vsub.f32 %v8311_v22, %v3995_v26  ;;  %v3728_v31 = vld [vmem:[#allocation2 + $0x30] sm:$0xff] }
 0x1af   :  { %3796 = vmatpush.msrb.mxu1 %v3795_v53 }
 0x1b0   :  { %v2301_v55 = vadd.f32 %v2298_v60, %v8217_v63  ;;  %3554 = vmatmul.f32.vlgmr.msrb.gmra.mxu2 %v3553_v51  ;;  %v3801_v63 = vand.u32 4294901760, %v3800_v57  ;;  %v8349_v51 = vand.u32 4294901760, %v3740_v39 }
 0x1b1   :  { %3828 = vmatpush.msrb.mxu2 %v8259_v38 }
 0x1b2   :  { %3593 = vmatmul.f32.vlgmr.msrb.gmra.mxu3 %v8234_v49  ;;  %3802 = vmatpush.msrb.mxu1 %v3801_v63 }
 0x1b3   :  { %v2406_v10 = vpop.f32.mrf.mxu0  ;;  %v2469_v61 = vpop.f32.mrf.mxu2  ;;  %3858 = vmatpush.msrb.mxu3 %v8255_v32  ;;  %3831 = vmatpush.msrb.mxu2 %v8281_v1  ;;  %v3769_v1 = vsub.f32 %v3740_v39, %v8349_v51 }
 0x1b4   :  { %v2407_v44 = vadd.f32 %v2406_v10, %v2377_v18  ;;  %v2442_v13 = vpop.f32.mrf.mxu1  ;;  %v3997_v18 = vand.u32 4294901760, %v3996_v41 }
 0x1b5   :  { %v2496_v3 = vpop.f32.mrf.mxu3  ;;  %3860 = vmatpush.msrb.mxu3 %v8276_v56  ;;  %v3770_v57 = vand.u32 4294901760, %v3769_v1 }
 0x1b6   :  { %v2437_v54 = vadd.f32 %v2436_v59, %v2407_v44  ;;  %3483 = vmatmul.f32.vlgmr.msrb.gmra.mxu0 %v8214_v42  ;;  %3514 = vmatmul.f32.gmra.mxu1 %v8232_v17 }
 0x1b7   :  { %3757 = vmatpush.msrb.mxu0 %v8255_v32  ;;  %v3771_v14 = vsub.f32 %v3769_v1, %v3770_v57 }
 0x1b8   :  { %v2470_v6 = vadd.f32 %v2469_v61, %v2437_v54  ;;  %3562 = vmatmul.f32.gmra.mxu2 %v3561_v11 }
 0x1b9   :  { %3759 = vmatpush.msrb.mxu0 %v8276_v56 }
 0x1ba   :  { %v2497_v28 = vadd.f32 %v2496_v3, %v2470_v6  ;;  %3597 = vmatmul.f32.gmra.mxu3 %v8251_v2  ;;  %v4131_v3 = vld [vmem:[#allocation3 + $0x28] sm:$0xff] }
 0x1bb   :  { %v2411_v42 = vpop.f32.mrf.mxu0  ;;  %v2473_v0 = vpop.f32.mrf.mxu2  ;;  %v8371_v5 = vand.u32 4294901760, %v4131_v3 }
 0x1bc   :  { %v8314_v9 = vadd.f32 %v2497_v28, %v8262_v45  ;;  %v2412_v48 = vadd.f32 %v2411_v42, %v2381_v52  ;;  %v2579_v34 = vpop.f32.mrf.mxu1 }
 0x1bd   :  { %v2500_v16 = vpop.f32.mrf.mxu3  ;;  %v8375_v28 = vsub.f32 %v4131_v3, %v8371_v5 }
 0x1be   :  { %v2443_v37 = vadd.f32 %v2442_v13, %v2412_v48  ;;  %3487 = vmatmul.f32.gmra.mxu0 %v8232_v17  ;;  %3653 = vmatmul.f32.vlgmr.msra.gmra.mxu1 %v3551_v23  ;;  %v8331_v17 = vand.u32 4294901760, %v3737_v40  ;;  %v4130_v48 = vld [vmem:[#allocation3 + $0x20] sm:$0xff] }
 0x1bf   :  { %3920 = vmatpush.msra.mxu1 %v8255_v32 }
 0x1c0   :  { %v2474_v15 = vadd.f32 %v2473_v0, %v2443_v37  ;;  %3686 = vmatmul.f32.vlgmr.msra.gmra.mxu2 %v8234_v49 }
 0x1c1   :  { %3953 = vmatpush.msra.mxu2 %v8299_v50  ;;  %3922 = vmatpush.msra.mxu1 %v8276_v56  ;;  %v3933_v56 = vsel %vm43_vm0, %v3728_v31, 0 }
 0x1c2   :  { %v2501_v25 = vadd.f32 %v2500_v16, %v2474_v15  ;;  %3713 = vmatmul.f32.vlgmr.msra.gmra.mxu3 %v8234_v49  ;;  %v3761_v49 = vsub.f32 %v3737_v40, %v8331_v17  ;;  %v8351_v59 = vand.u32 4294901760, %v3933_v56 }
 0x1c3   :  { %v2540_v45 = vpop.f32.mrf.mxu0  ;;  %v2609_v36 = vpop.f32.mrf.mxu2  ;;  %3992 = vmatpush.msra.mxu3 %v3991_v30  ;;  %3955 = vmatpush.msra.mxu2 %v8306_v58 }
 0x1c4   :  { %v8334_v46 = vadd.f32 %v2501_v25, %v2301_v55  ;;  %v2580_v35 = vadd.f32 %v2579_v34, %v2540_v45  ;;  %v2583_v12 = vpop.f32.mrf.mxu1  ;;  %v8390_v34 = vand.u32 4294901760, %v4130_v48 }
 0x1c5   :  { %v2639_v23 = vpop.f32.mrf.mxu3  ;;  %3998 = vmatpush.msra.mxu3 %v3997_v18 }
 0x1c6   :  { %v2610_v32 = vadd.f32 %v2609_v36, %v2580_v35  ;;  %3623 = vmatmul.f32.vlgmr.msra.gmra.mxu0 %v8240_v47  ;;  %3659 = vmatmul.f32.gmra.mxu1 %v3559_v27  ;;  %v3762_v47 = vand.u32 4294901760, %v3761_v49  ;;  %v8394_v41 = vsub.f32 %v4130_v48, %v8390_v34  ;;  %v4129_v48 = vld [vmem:[#allocation2 + $0x3a] sm:$0xf] }
 0x1c7   :  { %3891 = vmatpush.msra.mxu0 %v3793_v33 }
 0x1c8   :  { %v2640_v43 = vadd.f32 %v2639_v23, %v2610_v32  ;;  %3690 = vmatmul.f32.gmra.mxu2 %v8251_v2  ;;  %v3763_v27 = vsub.f32 %v3761_v49, %v3762_v47  ;;  %v4195_v25 = vand.u32 4294901760, %v8394_v41 }
 0x1c9   :  { %3895 = vmatpush.msra.mxu0 %v3799_v24  ;;  %v3729_v24 = vld [vmem:[#allocation2 + $0x38] sm:$0xf] }
 0x1ca   :  { %3717 = vmatmul.f32.gmra.mxu3 %v8251_v2  ;;  %v8357_v2 = vsub.f32 %v3933_v56, %v8351_v59  ;;  %v3936_v7 = vsel %vm43_vm0, %v3729_v24, 0  ;;  %v4196_v35 = vsub.f32 %v8394_v41, %v4195_v25 }
 0x1cb   :  { %v2548_v38 = vpop.f32.mrf.mxu0  ;;  %v2614_v33 = vpop.f32.mrf.mxu2  ;;  %v8367_v11 = vand.u32 4294901760, %v3936_v7 }
 0x1cc   :  { %v2584_v29 = vadd.f32 %v2583_v12, %v2548_v38  ;;  %v2699_v60 = vpop.f32.mrf.mxu1  ;;  %v3958_v44 = vand.u32 4294901760, %v8357_v2  ;;  %v4332_v38 = vld [vmem:[#allocation3 + $0x30] sm:$0xff] }
 0x1cd   :  { %v2645_v53 = vpop.f32.mrf.mxu3  ;;  %v8383_v0 = vsub.f32 %v3936_v7, %v8367_v11 }
 0x1ce   :  { %v2615_v52 = vadd.f32 %v2614_v33, %v2584_v29  ;;  %3628 = vmatmul.f32.gmra.mxu0 %v8269_v20  ;;  %3804 = vmatmul.f32.vlgmr.msrb.gmra.mxu1 %v8331_v17  ;;  %v3764_v20 = vand.u32 4294901760, %v3763_v27  ;;  %v8419_v29 = vand.u32 4294901760, %v4332_v38 }
 0x1cf   :  { %4054 = vmatpush.msrb.mxu1 %v8299_v50  ;;  %v3966_v37 = vand.u32 4294901760, %v8383_v0 }
 0x1d0   :  { %v2646_v55 = vadd.f32 %v2645_v53, %v2615_v52  ;;  %3834 = vmatmul.f32.vlgmr.msrb.gmra.mxu2 %v3761_v49  ;;  %v8424_v27 = vsub.f32 %v4332_v38, %v8419_v29 }
 0x1d1   :  { %4087 = vmatpush.msrb.mxu2 %v3989_v21  ;;  %4056 = vmatpush.msrb.mxu1 %v8306_v58  ;;  %v4189_v21 = vand.u32 4294901760, %v8375_v28  ;;  %v3967_v36 = vsub.f32 %v8383_v0, %v3966_v37 }
 0x1d2   :  { %3864 = vmatmul.f32.vlgmr.msrb.gmra.mxu3 %v3762_v47 }
 0x1d3   :  { %v2672_v10 = vpop.f32.mrf.mxu0  ;;  %v2743_v61 = vpop.f32.mrf.mxu2  ;;  %4116 = vmatpush.msrb.mxu3 %v8299_v50  ;;  %4091 = vmatpush.msrb.mxu2 %v3995_v26  ;;  %v3968_v32 = vand.u32 4294901760, %v3967_v36 }
 0x1d4   :  { %v2673_v63 = vadd.f32 %v2672_v10, %v2640_v43  ;;  %v2703_v54 = vpop.f32.mrf.mxu1  ;;  %v4333_v43 = vld [vmem:[#allocation3 + $0x38] sm:$0xff]  ;;  %v4397_v10 = vand.u32 4294901760, %v8424_v27 }
 0x1d5   :  { %v2782_v13 = vpop.f32.mrf.mxu3  ;;  %4118 = vmatpush.msrb.mxu3 %v8306_v58  ;;  %v3959_v58 = vsub.f32 %v8357_v2, %v3958_v44  ;;  %v8412_v56 = vand.u32 4294901760, %v4333_v43 }
 0x1d6   :  { %v2700_v6 = vadd.f32 %v2699_v60, %v2673_v63  ;;  %3765 = vmatmul.f32.vlgmr.msrb.gmra.mxu0 %v3764_v20  ;;  %v2783_v50 = vadd.f32 %v2782_v13, %v2743_v61  ;;  %3808 = vmatmul.f32.gmra.mxu1 %v8349_v51  ;;  %v4398_v13 = vsub.f32 %v8424_v27, %v4397_v10 }
 0x1d7   :  { %4024 = vmatpush.msrb.mxu0 %v8304_v62  ;;  %v3772_v62 = vand.u32 4294901760, %v3771_v14  ;;  %v3960_v26 = vand.u32 4294901760, %v3959_v58  ;;  %v8417_v33 = vsub.f32 %v4333_v43, %v8412_v56 }
 0x1d8   :  { %v2706_v42 = vadd.f32 %v2700_v6, %v8314_v9  ;;  %3839 = vmatmul.f32.gmra.mxu2 %v3769_v1  ;;  %v4190_v9 = vsub.f32 %v8375_v28, %v4189_v21  ;;  %v4399_v6 = vand.u32 4294901760, %v4398_v13 }
 0x1d9   :  { %4027 = vmatpush.msrb.mxu0 %v8311_v22  ;;  %v4391_v52 = vand.u32 4294901760, %v8417_v33 }
 0x1da   :  { %3870 = vmatmul.f32.gmra.mxu3 %v3770_v57  ;;  %v4191_v22 = vand.u32 4294901760, %v4190_v9  ;;  %v4136_v9 = vsel %vm43_vm0, %v4129_v48, 0 }
 0x1db   :  { %v2676_v4 = vpop.f32.mrf.mxu0  ;;  %v2751_v16 = vpop.f32.mrf.mxu2  ;;  %v4392_v57 = vsub.f32 %v8417_v33, %v4391_v52 }
 0x1dc   :  { %v2677_v19 = vadd.f32 %v2676_v4, %v2646_v55  ;;  %v2842_v30 = vpop.f32.mrf.mxu1  ;;  %v4128_v55 = vld [vmem:[#allocation2 + $0x32] sm:$0xff] }
 0x1dd   :  { %v2786_v40 = vpop.f32.mrf.mxu3  ;;  %v4133_v63 = vsel %vm43_vm0, %v4128_v55, 0  ;;  %v4393_v3 = vand.u32 4294901760, %v4392_v57 }
 0x1de   :  { %v2704_v15 = vadd.f32 %v2703_v54, %v2677_v19  ;;  %3773 = vmatmul.f32.gmra.mxu0 %v3772_v62  ;;  %v2787_v18 = vadd.f32 %v2786_v40, %v2751_v16  ;;  %3924 = vmatmul.f32.vlgmr.msra.gmra.mxu1 %v8331_v17  ;;  %v4330_v16 = vld [vmem:[#allocation2 + $0x33] sm:$0xff] }
 0x1df   :  { %4192 = vmatpush.msra.mxu1 %v4191_v22 }
 0x1e0   :  { %v2707_v45 = vadd.f32 %v2704_v15, %v8334_v46  ;;  %3961 = vmatmul.f32.vlgmr.msra.gmra.mxu2 %v3960_v26  ;;  %v4197_v46 = vand.u32 4294901760, %v4196_v35  ;;  %v8461_v26 = vand.u32 4294901760, %v4136_v9 }
 0x1e1   :  { %4224 = vmatpush.msra.mxu2 %v8375_v28 }
 0x1e2   :  { %4000 = vmatmul.f32.vlgmr.msra.gmra.mxu3 %v8351_v59  ;;  %4198 = vmatpush.msra.mxu1 %v4197_v46 }
 0x1e3   :  { %v2812_v8 = vpop.f32.mrf.mxu0  ;;  %v2875_v23 = vpop.f32.mrf.mxu2  ;;  %4254 = vmatpush.msra.mxu3 %v8371_v5  ;;  %4227 = vmatpush.msra.mxu2 %v8394_v41  ;;  %v4165_v41 = vsub.f32 %v4136_v9, %v8461_v26 }
 0x1e4   :  { %v2813_v12 = vadd.f32 %v2812_v8, %v2783_v50  ;;  %v2848_v31 = vpop.f32.mrf.mxu1 }
 0x1e5   :  { %v2902_v49 = vpop.f32.mrf.mxu3  ;;  %4256 = vmatpush.msra.mxu3 %v8390_v34  ;;  %v4166_v35 = vand.u32 4294901760, %v4165_v41 }
 0x1e6   :  { %v2843_v39 = vadd.f32 %v2842_v30, %v2813_v12  ;;  %3897 = vmatmul.f32.vlgmr.msra.gmra.mxu0 %v8331_v17  ;;  %3928 = vmatmul.f32.gmra.mxu1 %v8349_v51 }
 0x1e7   :  { %4153 = vmatpush.msra.mxu0 %v8371_v5 }
 0x1e8   :  { %v2876_v47 = vadd.f32 %v2875_v23, %v2843_v39  ;;  %3969 = vmatmul.f32.gmra.mxu2 %v3968_v32 }
 0x1e9   :  { %4155 = vmatpush.msra.mxu0 %v8390_v34 }
 0x1ea   :  { %v2903_v53 = vadd.f32 %v2902_v49, %v2876_v47  ;;  %4004 = vmatmul.f32.gmra.mxu3 %v8367_v11  ;;  %v4535_v49 = vld [vmem:[#allocation3 + $0x48] sm:$0xff] }
 0x1eb   :  { %v2817_v17 = vpop.f32.mrf.mxu0  ;;  %v2879_v60 = vpop.f32.mrf.mxu2  ;;  %v8487_v43 = vand.u32 4294901760, %v4535_v49 }
 0x1ec   :  { %v8426_v1 = vadd.f32 %v2903_v53, %v2706_v42  ;;  %v2818_v24 = vadd.f32 %v2817_v17, %v2787_v18  ;;  %v2985_v20 = vpop.f32.mrf.mxu1 }
 0x1ed   :  { %v2906_v7 = vpop.f32.mrf.mxu3  ;;  %v8491_v38 = vsub.f32 %v4535_v49, %v8487_v43 }
 0x1ee   :  { %v2849_v61 = vadd.f32 %v2848_v31, %v2818_v24  ;;  %3901 = vmatmul.f32.gmra.mxu0 %v8349_v51  ;;  %4060 = vmatmul.f32.vlgmr.msrb.gmra.mxu1 %v3958_v44  ;;  %v8443_v51 = vand.u32 4294901760, %v4133_v63 }
 0x1ef   :  { %4316 = vmatpush.msrb.mxu1 %v8371_v5 }
 0x1f0   :  { %v2880_v54 = vadd.f32 %v2879_v60, %v2849_v61  ;;  %4093 = vmatmul.f32.vlgmr.msrb.gmra.mxu2 %v8351_v59 }
 0x1f1   :  { %4355 = vmatpush.msrb.mxu2 %v8412_v56  ;;  %4318 = vmatpush.msrb.mxu1 %v8390_v34  ;;  %v4335_v34 = vsel %vm43_vm0, %v4330_v16, 0  ;;  %v4736_v16 = vld [vmem:[#allocation3 + $0x50] sm:$0xff] }
 0x1f2   :  { %v2907_v50 = vadd.f32 %v2906_v7, %v2880_v54  ;;  %4120 = vmatmul.f32.vlgmr.msrb.gmra.mxu3 %v8351_v59  ;;  %v4157_v59 = vsub.f32 %v4133_v63, %v8443_v51  ;;  %v8463_v30 = vand.u32 4294901760, %v4335_v34 }
 0x1f3   :  { %v2946_v14 = vpop.f32.mrf.mxu0  ;;  %v3015_v42 = vpop.f32.mrf.mxu2  ;;  %4394 = vmatpush.msrb.mxu3 %v4393_v3  ;;  %4357 = vmatpush.msrb.mxu2 %v8419_v29 }
 0x1f4   :  { %v8446_v58 = vadd.f32 %v2907_v50, %v2707_v45  ;;  %v2986_v62 = vadd.f32 %v2985_v20, %v2946_v14  ;;  %v2989_v4 = vpop.f32.mrf.mxu1 }
 0x1f5   :  { %v3045_v44 = vpop.f32.mrf.mxu3  ;;  %4400 = vmatpush.msrb.mxu3 %v4399_v6 }
 0x1f6   :  { %v3016_v5 = vadd.f32 %v3015_v42, %v2986_v62  ;;  %4030 = vmatmul.f32.vlgmr.msrb.gmra.mxu0 %v8357_v2  ;;  %4066 = vmatmul.f32.gmra.mxu1 %v3966_v37  ;;  %v4158_v2 = vand.u32 4294901760, %v4157_v59 }
 0x1f7   :  { %4287 = vmatpush.msrb.mxu0 %v4189_v21 }
 0x1f8   :  { %v3046_v19 = vadd.f32 %v3045_v44, %v3016_v5  ;;  %4097 = vmatmul.f32.gmra.mxu2 %v8367_v11  ;;  %v4159_v37 = vsub.f32 %v4157_v59, %v4158_v2  ;;  %v4737_v5 = vld [vmem:[#allocation3 + $0x58] sm:$0xff] }
 0x1f9   :  { %4291 = vmatpush.msrb.mxu0 %v4195_v25  ;;  %v4331_v25 = vld [vmem:[#allocation2 + $0x3b] sm:$0xf] }
 0x1fa   :  { %4124 = vmatmul.f32.gmra.mxu3 %v8367_v11  ;;  %v8469_v11 = vsub.f32 %v4335_v34, %v8463_v30  ;;  %v4338_v36 = vsel %vm43_vm0, %v4331_v25, 0 }
 0x1fb   :  { %v2954_v28 = vpop.f32.mrf.mxu0  ;;  %v3020_v21 = vpop.f32.mrf.mxu2  ;;  %v8481_v32 = vand.u32 4294901760, %v4338_v36 }
 0x1fc   :  { %v2990_v40 = vadd.f32 %v2989_v4, %v2954_v28  ;;  %v3105_v15 = vpop.f32.mrf.mxu1  ;;  %v4360_v12 = vand.u32 4294901760, %v8469_v11 }
 0x1fd   :  { %v3051_v22 = vpop.f32.mrf.mxu3  ;;  %v8501_v17 = vsub.f32 %v4338_v36, %v8481_v32 }
 0x1fe   :  { %v3021_v18 = vadd.f32 %v3020_v21, %v2990_v40  ;;  %4035 = vmatmul.f32.gmra.mxu0 %v8383_v0  ;;  %4200 = vmatmul.f32.vlgmr.msra.gmra.mxu1 %v8443_v51  ;;  %v4160_v0 = vand.u32 4294901760, %v4159_v37  ;;  %v4532_v21 = vld [vmem:[#allocation2 + $0x34] sm:$0xff] }
 0x1ff   :  { %4456 = vmatpush.msra.mxu1 %v8412_v56  ;;  %v4537_v37 = vsel %vm43_vm0, %v4532_v21, 0 }
 0x200   :  { %v3052_v45 = vadd.f32 %v3051_v22, %v3021_v18  ;;  %4230 = vmatmul.f32.vlgmr.msra.gmra.mxu2 %v4157_v59  ;;  %v8546_v59 = vand.u32 4294901760, %v4737_v5  ;;  %v8579_v36 = vand.u32 4294901760, %v4537_v37 }
 0x201   :  { %4489 = vmatpush.msra.mxu2 %v4391_v52  ;;  %4458 = vmatpush.msra.mxu1 %v8419_v29  ;;  %v4534_v52 = vld [vmem:[#allocation3 + $0x40] sm:$0xff] }
 0x202   :  { %4260 = vmatmul.f32.vlgmr.msra.gmra.mxu3 %v4158_v2  ;;  %v8510_v7 = vand.u32 4294901760, %v4534_v52  ;;  %v8551_v9 = vsub.f32 %v4737_v5, %v8546_v59 }
 0x203   :  { %v3078_v8 = vpop.f32.mrf.mxu0  ;;  %v8475_v23 = vpop.f32.mrf.mxu2  ;;  %4518 = vmatpush.msra.mxu3 %v8412_v56  ;;  %4493 = vmatpush.msra.mxu2 %v4397_v10  ;;  %v4167_v56 = vsub.f32 %v4165_v41, %v4166_v35  ;;  %v4368_v10 = vand.u32 4294901760, %v8501_v17 }
 0x204   :  { %v3079_v46 = vadd.f32 %v3078_v8, %v3046_v19  ;;  %v3109_v39 = vpop.f32.mrf.mxu1  ;;  %v8518_v3 = vsub.f32 %v4534_v52, %v8510_v7  ;;  %v8553_v19 = vand.u32 4294901760, %v4736_v16  ;;  %v4795_v2 = vand.u32 4294901760, %v8551_v9 }
 0x205   :  { %v8484_v31 = vpop.f32.mrf.mxu3  ;;  %4520 = vmatpush.msra.mxu3 %v8419_v29  ;;  %v4361_v29 = vsub.f32 %v8469_v11, %v4360_v12  ;;  %v4168_v60 = vand.u32 4294901760, %v4167_v56  ;;  %v4369_v50 = vsub.f32 %v8501_v17, %v4368_v10 }
 0x206   :  { %v3106_v47 = vadd.f32 %v3105_v15, %v3079_v46  ;;  %4161 = vmatmul.f32.vlgmr.msra.gmra.mxu0 %v4160_v0  ;;  %4204 = vmatmul.f32.gmra.mxu1 %v8461_v26  ;;  %v4599_v54 = vand.u32 4294901760, %v8518_v3  ;;  %v8562_v28 = vsub.f32 %v4736_v16, %v8553_v19  ;;  %v4796_v15 = vsub.f32 %v8551_v9, %v4795_v2  ;;  %v4938_v16 = vld [vmem:[#allocation3 + $0x60] sm:$0xff] }
 0x207   :  { %4426 = vmatpush.msra.mxu0 %v8417_v33  ;;  %v4593_v33 = vand.u32 4294901760, %v8491_v38  ;;  %v4362_v57 = vand.u32 4294901760, %v4361_v29  ;;  %v4370_v48 = vand.u32 4294901760, %v4369_v50 }
 0x208   :  { %v8494_v53 = vadd.f32 %v3106_v47, %v8426_v1  ;;  %4235 = vmatmul.f32.gmra.mxu2 %v4165_v41  ;;  %v4600_v14 = vsub.f32 %v8518_v3, %v4599_v54  ;;  %v4801_v18 = vand.u32 4294901760, %v8562_v28  ;;  %v4797_v41 = vand.u32 4294901760, %v4796_v15 }
 0x209   :  { %4429 = vmatpush.msra.mxu0 %v8424_v27  ;;  %v4594_v55 = vsub.f32 %v8491_v38, %v4593_v33 }
 0x20a   :  { %4266 = vmatmul.f32.gmra.mxu3 %v4166_v35  ;;  %v4601_v62 = vand.u32 4294901760, %v4600_v14  ;;  %v4802_v25 = vsub.f32 %v8562_v28, %v4801_v18  ;;  %v4533_v35 = vld [vmem:[#allocation2 + $0x3c] sm:$0xf]  ;;  %v4939_v14 = vld [vmem:[#allocation3 + $0x68] sm:$0xff] }
 0x20b   :  { %v3082_v24 = vpop.f32.mrf.mxu0  ;;  %v8505_v1 = vpop.f32.mrf.mxu2  ;;  %v4595_v63 = vand.u32 4294901760, %v4594_v55  ;;  %v4540_v49 = vsel %vm43_vm0, %v4533_v35, 0 }
 0x20c   :  { %v3083_v20 = vadd.f32 %v3082_v24, %v3052_v45  ;;  %v8515_v27 = vpop.f32.mrf.mxu1  ;;  %v4803_v45 = vand.u32 4294901760, %v4802_v25  ;;  %v4735_v24 = vld [vmem:[#allocation2 + $0x3d] sm:$0xf] }
 0x20d   :  { %v8513_v61 = vpop.f32.mrf.mxu3  ;;  %v4742_v55 = vsel %vm43_vm0, %v4735_v24, 0 }
 0x20e   :  { %v3110_v13 = vadd.f32 %v3109_v39, %v3083_v20  ;;  %4169 = vmatmul.f32.gmra.mxu0 %v4168_v60  ;;  %4320 = vmatmul.f32.vlgmr.msrb.gmra.mxu1 %v8443_v51 }
 0x20f   :  { %4596 = vmatpush.msrb.mxu1 %v4595_v63  ;;  %v8623_v63 = vand.u32 4294901760, %v4742_v55 }
 0x210   :  { %v8522_v6 = vadd.f32 %v3110_v13, %v8446_v58  ;;  %4363 = vmatmul.f32.vlgmr.msrb.gmra.mxu2 %v4362_v57 }
 0x211   :  { %4628 = vmatpush.msrb.mxu2 %v8491_v38  ;;  %4602 = vmatpush.msrb.mxu1 %v4601_v62 }
 0x212   :  { %4402 = vmatmul.f32.vlgmr.msrb.gmra.mxu3 %v8463_v30 }
 0x213   :  { %v8533_v42 = vpop.f32.mrf.mxu0  ;;  %v8535_v58 = vpop.f32.mrf.mxu2  ;;  %4658 = vmatpush.msrb.mxu3 %v8487_v43  ;;  %4631 = vmatpush.msrb.mxu2 %v8518_v3  ;;  %v3189_v3 = vadd.f32 %v8484_v31, %v8475_v23  ;;  %v8641_v31 = vsub.f32 %v4742_v55, %v8623_v63 }
 0x214   :  { %v8541_v4 = vpop.f32.mrf.mxu1 }
 0x215   :  { %v8539_v44 = vpop.f32.mrf.mxu3  ;;  %4660 = vmatpush.msrb.mxu3 %v8510_v7  ;;  %v3219_v62 = vadd.f32 %v8533_v42, %v3189_v3 }
 0x216   :  { %4293 = vmatmul.f32.vlgmr.msrb.gmra.mxu0 %v8443_v51  ;;  %4324 = vmatmul.f32.gmra.mxu1 %v8461_v26 }
 0x217   :  { %4557 = vmatpush.msrb.mxu0 %v8487_v43 }
 0x218   :  { %4371 = vmatmul.f32.gmra.mxu2 %v4370_v48  ;;  %v8633_v48 = vand.u32 4294901760, %v4939_v14 }
 0x219   :  { %4559 = vmatpush.msrb.mxu0 %v8510_v7 }
 0x21a   :  { %4406 = vmatmul.f32.gmra.mxu3 %v8481_v32  ;;  %v8645_v42 = vsub.f32 %v4939_v14, %v8633_v48 }
 0x21b   :  { %v8556_v34 = vpop.f32.mrf.mxu0  ;;  %v8558_v51 = vpop.f32.mrf.mxu2 }
 0x21c   :  { %v8566_v22 = vpop.f32.mrf.mxu1  ;;  %v4997_v21 = vand.u32 4294901760, %v8645_v42 }
 0x21d   :  { %v8564_v40 = vpop.f32.mrf.mxu3 }
 0x21e   :  { %4297 = vmatmul.f32.gmra.mxu0 %v8461_v26  ;;  %4462 = vmatmul.f32.vlgmr.msra.gmra.mxu1 %v4360_v12  ;;  %v4734_v12 = vld [vmem:[#allocation2 + $0x35] sm:$0xff] }
 0x21f   :  { %4720 = vmatpush.msra.mxu1 %v8487_v43  ;;  %v4739_v39 = vsel %vm43_vm0, %v4734_v12, 0  ;;  %v8601_v43 = vand.u32 4294901760, %v4540_v49 }
 0x220   :  { %4495 = vmatmul.f32.vlgmr.msra.gmra.mxu2 %v8463_v30  ;;  %v8607_v38 = vand.u32 4294901760, %v4739_v39 }
 0x221   :  { %4759 = vmatpush.msra.mxu2 %v8546_v59  ;;  %4722 = vmatpush.msra.mxu1 %v8510_v7  ;;  %v4569_v52 = vsub.f32 %v4540_v49, %v8601_v43 }
 0x222   :  { %4522 = vmatmul.f32.vlgmr.msra.gmra.mxu3 %v8463_v30  ;;  %v4561_v30 = vsub.f32 %v4537_v37, %v8579_v36  ;;  %v4772_v37 = vand.u32 4294901760, %v8641_v31 }
 0x223   :  { %v3352_v26 = vpop.f32.mrf.mxu0  ;;  %v8581_v0 = vpop.f32.mrf.mxu2  ;;  %4798 = vmatpush.msra.mxu3 %v4797_v41  ;;  %4761 = vmatpush.msra.mxu2 %v8553_v19  ;;  %v4570_v20 = vand.u32 4294901760, %v4569_v52 }
 0x224   :  { %v8587_v46 = vpop.f32.mrf.mxu1  ;;  %v3392_v5 = vadd.f32 %v8566_v22, %v3352_v26  ;;  %v8649_v22 = vand.u32 4294901760, %v4938_v16 }
 0x225   :  { %v8585_v8 = vpop.f32.mrf.mxu3  ;;  %4804 = vmatpush.msra.mxu3 %v4803_v45  ;;  %v4571_v50 = vsub.f32 %v4569_v52, %v4570_v20 }
 0x226   :  { %4432 = vmatmul.f32.vlgmr.msra.gmra.mxu0 %v8469_v11  ;;  %4468 = vmatmul.f32.gmra.mxu1 %v4368_v10  ;;  %v4562_v11 = vand.u32 4294901760, %v4561_v30  ;;  %v3422_v15 = vadd.f32 %v8581_v0, %v3392_v5  ;;  %v8659_v45 = vsub.f32 %v4938_v16, %v8649_v22 }
 0x227   :  { %4691 = vmatpush.msra.mxu0 %v4593_v33 }
 0x228   :  { %4499 = vmatmul.f32.gmra.mxu2 %v8481_v32  ;;  %v4563_v60 = vsub.f32 %v4561_v30, %v4562_v11  ;;  %v3452_v12 = vadd.f32 %v8585_v8, %v3422_v15 }
 0x229   :  { %4695 = vmatpush.msra.mxu0 %v4599_v54 }
 0x22a   :  { %4526 = vmatmul.f32.gmra.mxu3 %v8481_v32  ;;  %v8617_v32 = vsub.f32 %v4739_v39, %v8607_v38  ;;  %v4564_v7 = vand.u32 4294901760, %v4563_v60 }
 0x22b   :  { %v8603_v47 = vpop.f32.mrf.mxu0  ;;  %v8605_v56 = vpop.f32.mrf.mxu2 }
 0x22c   :  { %v8611_v33 = vpop.f32.mrf.mxu1  ;;  %v4764_v10 = vand.u32 4294901760, %v8617_v32 }
 0x22d   :  { %v8609_v29 = vpop.f32.mrf.mxu3 }
 0x22e   :  { %4437 = vmatmul.f32.gmra.mxu0 %v8501_v17  ;;  %4604 = vmatmul.f32.vlgmr.msrb.gmra.mxu1 %v8579_v36  ;;  %v4765_v23 = vsub.f32 %v8617_v32, %v4764_v10 }
 0x22f   :  { %4860 = vmatpush.msrb.mxu1 %v8546_v59 }
 0x230   :  { %4634 = vmatmul.f32.vlgmr.msrb.gmra.mxu2 %v4561_v30  ;;  %v5003_v30 = vand.u32 4294901760, %v8659_v45 }
 0x231   :  { %4893 = vmatpush.msrb.mxu2 %v4795_v2  ;;  %4862 = vmatpush.msrb.mxu1 %v8553_v19 }
 0x232   :  { %4664 = vmatmul.f32.vlgmr.msrb.gmra.mxu3 %v4562_v11 }
 0x233   :  { %v3484_v57 = vpop.f32.mrf.mxu0  ;;  %v3555_v17 = vpop.f32.mrf.mxu2  ;;  %4922 = vmatpush.msrb.mxu3 %v8546_v59  ;;  %4897 = vmatpush.msrb.mxu2 %v4801_v18  ;;  %v4572_v59 = vand.u32 4294901760, %v4571_v50  ;;  %v4766_v18 = vand.u32 4294901760, %v4765_v23  ;;  %v5140_v50 = vld [vmem:[#allocation3 + $0x70] sm:$0xff] }
 0x234   :  { %v8628_v54 = vpop.f32.mrf.mxu1 }
 0x235   :  { %v3594_v13 = vpop.f32.mrf.mxu3  ;;  %4924 = vmatpush.msrb.mxu3 %v8553_v19 }
 0x236   :  { %4565 = vmatmul.f32.vlgmr.msrb.gmra.mxu0 %v4564_v7  ;;  %4608 = vmatmul.f32.gmra.mxu1 %v8601_v43  ;;  %v3595_v49 = vadd.f32 %v3594_v13, %v3555_v17 }
 0x237   :  { %4830 = vmatpush.msrb.mxu0 %v8551_v9  ;;  %v3249_v9 = vadd.f32 %v8515_v27, %v3219_v62  ;;  %v4998_v27 = vsub.f32 %v8645_v42, %v4997_v21 }
 0x238   :  { %4639 = vmatmul.f32.gmra.mxu2 %v4569_v52 }
 0x239   :  { %4833 = vmatpush.msrb.mxu0 %v8562_v28  ;;  %v3193_v28 = vadd.f32 %v8513_v61, %v8505_v1  ;;  %v3282_v26 = vadd.f32 %v8535_v58, %v3249_v9  ;;  %v4999_v35 = vand.u32 4294901760, %v4998_v27  ;;  %v3396_v1 = vadd.f32 %v8587_v46, %v8603_v47 }
 0x23a   :  { %4670 = vmatmul.f32.gmra.mxu3 %v4570_v20  ;;  %v4773_v61 = vsub.f32 %v8641_v31, %v4772_v37  ;;  %v5004_v58 = vsub.f32 %v8659_v45, %v5003_v30 }
 0x23b   :  { %v3488_v19 = vpop.f32.mrf.mxu0  ;;  %v3563_v2 = vpop.f32.mrf.mxu2  ;;  %v3224_v0 = vadd.f32 %v8556_v34, %v3193_v28  ;;  %v3485_v34 = vadd.f32 %v3484_v57, %v3452_v12  ;;  %v3309_v8 = vadd.f32 %v8539_v44, %v3282_v26  ;;  %v3427_v60 = vadd.f32 %v8605_v56, %v3396_v1  ;;  %v5141_v57 = vld [vmem:[#allocation3 + $0x78] sm:$0xff] }
 0x23c   :  { %v3654_v25 = vpop.f32.mrf.mxu1  ;;  %v5005_v11 = vand.u32 4294901760, %v5004_v58  ;;  %v4774_v24 = vand.u32 4294901760, %v4773_v61 }
 0x23d   :  { %v3598_v41 = vpop.f32.mrf.mxu3  ;;  %v3255_v47 = vadd.f32 %v8541_v4, %v3224_v0  ;;  %v3512_v44 = vadd.f32 %v8611_v33, %v3485_v34  ;;  %v3315_v17 = vadd.f32 %v3309_v8, %v8494_v53  ;;  %v8686_v4 = vand.u32 4294901760, %v5141_v57 }
 0x23e   :  { %4573 = vmatmul.f32.gmra.mxu0 %v4572_v59  ;;  %4724 = vmatmul.f32.vlgmr.msra.gmra.mxu1 %v8579_v36  ;;  %v3458_v3 = vadd.f32 %v8609_v29, %v3427_v60  ;;  %v8695_v33 = vand.u32 4294901760, %v5140_v50  ;;  %v3599_v62 = vadd.f32 %v3598_v41, %v3563_v2 }
 0x23f   :  { %5000 = vmatpush.msra.mxu1 %v4999_v35  ;;  %v3286_v56 = vadd.f32 %v8558_v51, %v3255_v47  ;;  %v3518_v53 = vadd.f32 %v3512_v44, %v3315_v17 }
 0x240   :  { %4767 = vmatmul.f32.vlgmr.msra.gmra.mxu2 %v4766_v18  ;;  %v3489_v14 = vadd.f32 %v3488_v19, %v3458_v3  ;;  %v8700_v59 = vsub.f32 %v5140_v50, %v8695_v33  ;;  %v4936_v18 = vld [vmem:[#allocation2 + $0x36] sm:$0xff] }
 0x241   :  { %5032 = vmatpush.msra.mxu2 %v8645_v42  ;;  %5006 = vmatpush.msra.mxu1 %v5005_v11  ;;  %v3313_v16 = vadd.f32 %v8564_v40, %v3286_v56  ;;  %v4941_v40 = vsel %vm43_vm0, %v4936_v18, 0 }
 0x242   :  { %4806 = vmatmul.f32.vlgmr.msra.gmra.mxu3 %v8607_v38  ;;  %v5205_v2 = vand.u32 4294901760, %v8700_v59  ;;  %v3516_v41 = vadd.f32 %v8628_v54, %v3489_v14  ;;  %v8724_v61 = vand.u32 4294901760, %v4941_v40  ;;  %v5343_v14 = vld [vmem:[#allocation3 + $0x88] sm:$0xff] }
 0x243   :  { %v3624_v46 = vpop.f32.mrf.mxu0  ;;  %v3687_v39 = vpop.f32.mrf.mxu2  ;;  %5062 = vmatpush.msra.mxu3 %v8633_v48  ;;  %5035 = vmatpush.msra.mxu2 %v8659_v45  ;;  %v3316_v35 = vadd.f32 %v3313_v16, %v8522_v6 }
 0x244   :  { %v3625_v52 = vadd.f32 %v3624_v46, %v3595_v49  ;;  %v3660_v7 = vpop.f32.mrf.mxu1  ;;  %v5206_v0 = vsub.f32 %v8700_v59, %v5205_v2  ;;  %v4965_v46 = vsub.f32 %v4941_v40, %v8724_v61 }
 0x245   :  { %v3714_v55 = vpop.f32.mrf.mxu3  ;;  %5064 = vmatpush.msra.mxu3 %v8649_v22  ;;  %v3519_v54 = vadd.f32 %v3516_v41, %v3316_v35 }
 0x246   :  { %v3655_v20 = vadd.f32 %v3654_v25, %v3625_v52  ;;  %4697 = vmatmul.f32.vlgmr.msra.gmra.mxu0 %v8579_v36  ;;  %4728 = vmatmul.f32.gmra.mxu1 %v8601_v43  ;;  %v8693_v36 = vsub.f32 %v5141_v57, %v8686_v4 }
 0x247   :  { %4961 = vmatpush.msra.mxu0 %v8633_v48 }
 0x248   :  { %v3688_v13 = vadd.f32 %v3687_v39, %v3655_v20  ;;  %4775 = vmatmul.f32.gmra.mxu2 %v4774_v24  ;;  %v5199_v23 = vand.u32 4294901760, %v8693_v36  ;;  %v5138_v39 = vld [vmem:[#allocation2 + $0x37] sm:$0xff] }
 0x249   :  { %4963 = vmatpush.msra.mxu0 %v8649_v22  ;;  %v5143_v47 = vsel %vm43_vm0, %v5138_v39, 0 }
 0x24a   :  { %v3715_v5 = vadd.f32 %v3714_v55, %v3688_v13  ;;  %4810 = vmatmul.f32.gmra.mxu3 %v8623_v63  ;;  %v5200_v19 = vsub.f32 %v8693_v36, %v5199_v23  ;;  %v8746_v24 = vand.u32 4294901760, %v5143_v47 }
 0x24b   :  { %v3629_v51 = vpop.f32.mrf.mxu0  ;;  %v3691_v29 = vpop.f32.mrf.mxu2 }
 0x24c   :  { %v3721_v9 = vadd.f32 %v3715_v5, %v3518_v53  ;;  %v3630_v15 = vadd.f32 %v3629_v51, %v3599_v62  ;;  %v3805_v25 = vpop.f32.mrf.mxu1  ;;  %v5201_v26 = vand.u32 4294901760, %v5200_v19  ;;  %v8766_v51 = vand.u32 4294901760, %v5343_v14 }
 0x24d   :  { %v3718_v28 = vpop.f32.mrf.mxu3 }
 0x24e   :  { %3724 = vst.msk [vmem:[%s9354_s2] sm:$0xff] %vm3723_vm2, %v3721_v9  ;;  %v3661_v27 = vadd.f32 %v3660_v7, %v3630_v15  ;;  %4701 = vmatmul.f32.gmra.mxu0 %v8601_v43  ;;  %4866 = vmatmul.f32.vlgmr.msrb.gmra.mxu1 %v4764_v10  ;;  %v5207_v43 = vand.u32 4294901760, %v5206_v0  ;;  %v4937_v10 = vld [vmem:[#allocation2 + $0x3e] sm:$0xf] }
 0x24f   :  { %5124 = vmatpush.msrb.mxu1 %v8633_v48  ;;  %v4944_v11 = vsel %vm43_vm0, %v4937_v10, 0 }
 0x250   :  { %v3692_v12 = vadd.f32 %v3691_v29, %v3661_v27  ;;  %4899 = vmatmul.f32.vlgmr.msrb.gmra.mxu2 %v8607_v38  ;;  %v8744_v60 = vand.u32 4294901760, %v4944_v11 }
 0x251   :  { %5163 = vmatpush.msrb.mxu2 %v8686_v4  ;;  %5126 = vmatpush.msrb.mxu1 %v8649_v22 }
 0x252   :  { %v3719_v1 = vadd.f32 %v3718_v28, %v3692_v12  ;;  %4926 = vmatmul.f32.vlgmr.msrb.gmra.mxu3 %v8607_v38  ;;  %v4973_v45 = vsub.f32 %v4944_v11, %v8744_v60  ;;  %v5342_v28 = vld [vmem:[#allocation3 + $0x80] sm:$0xff] }
 0x253   :  { %v3766_v58 = vpop.f32.mrf.mxu0  ;;  %v3835_v6 = vpop.f32.mrf.mxu2  ;;  %5202 = vmatpush.msrb.mxu3 %v5201_v26  ;;  %5165 = vmatpush.msrb.mxu2 %v8695_v33  ;;  %v8784_v41 = vand.u32 4294901760, %v5342_v28 }
 0x254   :  { %v3722_v34 = vadd.f32 %v3719_v1, %v3519_v54  ;;  %v3806_v49 = vadd.f32 %v3805_v25, %v3766_v58  ;;  %v3809_v48 = vpop.f32.mrf.mxu1  ;;  %v4974_v17 = vand.u32 4294901760, %v4973_v45  ;;  %v63_v54 = vld [vmem:[#allocation5 + $0x30] sm:$0xff] }
 0x255   :  { %v3865_v8 = vpop.f32.mrf.mxu3  ;;  %5208 = vmatpush.msrb.mxu3 %v5207_v43  ;;  %v8788_v12 = vsub.f32 %v5342_v28, %v8784_v41  ;;  %71 = vst.msk [vmem:[#allocation2 + $0x4a] sm:$0xff] %vm43_vm0, %v63_v54  ;;  %v5341_v28 = vld [vmem:[#allocation2 + $0x40] sm:$0xf] }
 0x256   :  { %3726 = vst.msk [vmem:[%s9354_s2 + $0x8] sm:$0xf] %vm3725_vm3, %v3722_v34  ;;  %v3836_v38 = vadd.f32 %v3835_v6, %v3806_v49  ;;  %4836 = vmatmul.f32.vlgmr.msrb.gmra.mxu0 %v8617_v32  ;;  %4872 = vmatmul.f32.gmra.mxu1 %v4772_v37  ;;  %v4966_v32 = vand.u32 4294901760, %v4965_v46 }
 0x257   :  { %5095 = vmatpush.msrb.mxu0 %v4997_v21  ;;  %v5407_v1 = vand.u32 4294901760, %v8788_v12 }
 0x258   :  { %v3866_v22 = vadd.f32 %v3865_v8, %v3836_v38  ;;  %4903 = vmatmul.f32.gmra.mxu2 %v8623_v63  ;;  %v4967_v37 = vsub.f32 %v4965_v46, %v4966_v32 }
 0x259   :  { %5099 = vmatpush.msrb.mxu0 %v5003_v30  ;;  %v5139_v30 = vld [vmem:[#allocation2 + $0x3f] sm:$0xf]  ;;  %v5408_v34 = vsub.f32 %v8788_v12, %v5407_v1 }
 0x25a   :  { %4930 = vmatmul.f32.gmra.mxu3 %v8623_v63  ;;  %v8752_v63 = vsub.f32 %v5143_v47, %v8746_v24  ;;  %v5146_v57 = vsel %vm43_vm0, %v5139_v30, 0  ;;  %v5546_v47 = vld [vmem:[#allocation3 + $0x98] sm:$0xff] }
 0x25b   :  { %v3774_v42 = vpop.f32.mrf.mxu0  ;;  %v3840_v21 = vpop.f32.mrf.mxu2  ;;  %v8762_v53 = vand.u32 4294901760, %v5146_v57 }
 0x25c   :  { %v3810_v52 = vadd.f32 %v3809_v48, %v3774_v42  ;;  %v3925_v7 = vpop.f32.mrf.mxu1  ;;  %v5168_v50 = vand.u32 4294901760, %v8752_v63  ;;  %v5409_v48 = vand.u32 4294901760, %v5408_v34  ;;  %v8806_v42 = vand.u32 4294901760, %v5546_v47 }
 0x25d   :  { %v3871_v55 = vpop.f32.mrf.mxu3 }
 0x25e   :  { %v3841_v44 = vadd.f32 %v3840_v21, %v3810_v52  ;;  %4841 = vmatmul.f32.gmra.mxu0 %v8641_v31  ;;  %5008 = vmatmul.f32.vlgmr.msra.gmra.mxu1 %v8724_v61  ;;  %v4968_v31 = vand.u32 4294901760, %v4967_v37  ;;  %v5169_v9 = vsub.f32 %v8752_v63, %v5168_v50  ;;  %v5545_v52 = vld [vmem:[#allocation3 + $0x90] sm:$0xff] }
 0x25f   :  { %5264 = vmatpush.msra.mxu1 %v8686_v4 }
 0x260   :  { %v3872_v20 = vadd.f32 %v3871_v55, %v3841_v44  ;;  %5038 = vmatmul.f32.vlgmr.msra.gmra.mxu2 %v4965_v46  ;;  %v5170_v40 = vand.u32 4294901760, %v5169_v9  ;;  %v8812_v55 = vsub.f32 %v5546_v47, %v8806_v42 }
 0x261   :  { %5297 = vmatpush.msra.mxu2 %v5199_v23  ;;  %5266 = vmatpush.msra.mxu1 %v8695_v33  ;;  %v8770_v23 = vsub.f32 %v5343_v14, %v8766_v51 }
 0x262   :  { %5068 = vmatmul.f32.vlgmr.msra.gmra.mxu3 %v4966_v32  ;;  %v64_v32 = vld [vmem:[#allocation5 + $0x38] sm:$0xff] }
 0x263   :  { %v3898_v56 = vpop.f32.mrf.mxu0  ;;  %v3962_v3 = vpop.f32.mrf.mxu2  ;;  %5326 = vmatpush.msra.mxu3 %v8686_v4  ;;  %5301 = vmatpush.msra.mxu2 %v5205_v2  ;;  %v4975_v4 = vsub.f32 %v4973_v45, %v4974_v17  ;;  %v5401_v15 = vand.u32 4294901760, %v8770_v23  ;;  %72 = vst.msk [vmem:[#allocation2 + $0x52] sm:$0xff] %vm43_vm0, %v64_v32 }
 0x264   :  { %v3899_v13 = vadd.f32 %v3898_v56, %v3866_v22  ;;  %v3929_v5 = vpop.f32.mrf.mxu1 }
 0x265   :  { %v4001_v62 = vpop.f32.mrf.mxu3  ;;  %5328 = vmatpush.msra.mxu3 %v8695_v33  ;;  %v8777_v33 = vsub.f32 %v5146_v57, %v8762_v53  ;;  %v5402_v2 = vsub.f32 %v8770_v23, %v5401_v15  ;;  %v5340_v57 = vld [vmem:[#allocation2 + $0x38] sm:$0xff] }
 0x266   :  { %v3926_v29 = vadd.f32 %v3925_v7, %v3899_v13  ;;  %4969 = vmatmul.f32.vlgmr.msra.gmra.mxu0 %v4968_v31  ;;  %5012 = vmatmul.f32.gmra.mxu1 %v8744_v60  ;;  %v8814_v7 = vand.u32 4294901760, %v5545_v52  ;;  %v5345_v14 = vsel %vm43_vm0, %v5340_v57, 0 }
 0x267   :  { %5234 = vmatpush.msra.mxu0 %v8693_v36  ;;  %v4976_v36 = vand.u32 4294901760, %v4975_v4  ;;  %v5176_v26 = vand.u32 4294901760, %v8777_v33  ;;  %v5403_v35 = vand.u32 4294901760, %v5402_v2  ;;  %v5348_v2 = vsel %vm43_vm0, %v5341_v28, 0 }
 0x268   :  { %v3963_v16 = vadd.f32 %v3962_v3, %v3926_v29  ;;  %5043 = vmatmul.f32.gmra.mxu2 %v4973_v45  ;;  %v5604_v45 = vand.u32 4294901760, %v8812_v55  ;;  %v8821_v30 = vsub.f32 %v5545_v52, %v8814_v7 }
 0x269   :  { %5237 = vmatpush.msra.mxu0 %v8700_v59  ;;  %v5177_v6 = vsub.f32 %v8777_v33, %v5176_v26 }
 0x26a   :  { %v4002_v18 = vadd.f32 %v4001_v62, %v3963_v16  ;;  %5074 = vmatmul.f32.gmra.mxu3 %v4974_v17  ;;  %v5605_v56 = vsub.f32 %v8812_v55, %v5604_v45  ;;  %v5610_v3 = vand.u32 4294901760, %v8821_v30 }
 0x26b   :  { %v3902_v25 = vpop.f32.mrf.mxu0  ;;  %v3970_v19 = vpop.f32.mrf.mxu2  ;;  %v5178_v46 = vand.u32 4294901760, %v5177_v6 }
 0x26c   :  { %v3903_v27 = vadd.f32 %v3902_v25, %v3872_v20  ;;  %v4061_v59 = vpop.f32.mrf.mxu1  ;;  %v5606_v62 = vand.u32 4294901760, %v5605_v56 }
 0x26d   :  { %v4005_v0 = vpop.f32.mrf.mxu3 }
 0x26e   :  { %v3930_v43 = vadd.f32 %v3929_v5, %v3903_v27  ;;  %4977 = vmatmul.f32.gmra.mxu0 %v4976_v36  ;;  %5128 = vmatmul.f32.vlgmr.msrb.gmra.mxu1 %v8724_v61  ;;  %v5611_v5 = vsub.f32 %v8821_v30, %v5610_v3 }
 0x26f   :  { %5404 = vmatpush.msrb.mxu1 %v5403_v35 }
 0x270   :  { %v3971_v58 = vadd.f32 %v3970_v19, %v3930_v43  ;;  %5171 = vmatmul.f32.vlgmr.msrb.gmra.mxu2 %v5170_v40  ;;  %v5612_v4 = vand.u32 4294901760, %v5611_v5  ;;  %v8852_v40 = vand.u32 4294901760, %v5348_v2 }
 0x271   :  { %5436 = vmatpush.msrb.mxu2 %v8770_v23  ;;  %5410 = vmatpush.msrb.mxu1 %v5409_v48 }
 0x272   :  { %v4006_v49 = vadd.f32 %v4005_v0, %v3971_v58  ;;  %5210 = vmatmul.f32.vlgmr.msrb.gmra.mxu3 %v8746_v24 }
 0x273   :  { %v4031_v10 = vpop.f32.mrf.mxu0  ;;  %v4094_v8 = vpop.f32.mrf.mxu2  ;;  %5466 = vmatpush.msrb.mxu3 %v8766_v51  ;;  %5439 = vmatpush.msrb.mxu2 %v8788_v12  ;;  %v5377_v12 = vsub.f32 %v5348_v2, %v8852_v40 }
 0x274   :  { %v4032_v38 = vadd.f32 %v4031_v10, %v4002_v18  ;;  %v4067_v11 = vpop.f32.mrf.mxu1 }
 0x275   :  { %v4121_v39 = vpop.f32.mrf.mxu3  ;;  %5468 = vmatpush.msrb.mxu3 %v8784_v41 }
 0x276   :  { %v4062_v22 = vadd.f32 %v4061_v59, %v4032_v38  ;;  %5101 = vmatmul.f32.vlgmr.msrb.gmra.mxu0 %v8724_v61  ;;  %5132 = vmatmul.f32.gmra.mxu1 %v8744_v60 }
 0x277   :  { %5365 = vmatpush.msrb.mxu0 %v8766_v51 }
 0x278   :  { %v4095_v21 = vadd.f32 %v4094_v8, %v4062_v22  ;;  %5179 = vmatmul.f32.gmra.mxu2 %v5178_v46  ;;  %v5748_v46 = vld [vmem:[#allocation3 + $0xa8] sm:$0xff] }
 0x279   :  { %5367 = vmatpush.msrb.mxu0 %v8784_v41  ;;  %v8870_v22 = vand.u32 4294901760, %v5748_v46 }
 0x27a   :  { %v8816_v61 = vadd.f32 %v4121_v39, %v4095_v21  ;;  %5214 = vmatmul.f32.gmra.mxu3 %v8762_v53 }
 0x27b   :  { %v4036_v44 = vpop.f32.mrf.mxu0  ;;  %v4098_v37 = vpop.f32.mrf.mxu2 }
 0x27c   :  { %v4037_v20 = vadd.f32 %v4036_v44, %v4006_v49  ;;  %v4201_v17 = vpop.f32.mrf.mxu1  ;;  %v5378_v49 = vand.u32 4294901760, %v5377_v12 }
 0x27d   :  { %v4125_v31 = vpop.f32.mrf.mxu3 }
 0x27e   :  { %v4068_v13 = vadd.f32 %v4067_v11, %v4037_v20  ;;  %5105 = vmatmul.f32.gmra.mxu0 %v8744_v60  ;;  %5270 = vmatmul.f32.vlgmr.msra.gmra.mxu1 %v5168_v50  ;;  %v8836_v60 = vand.u32 4294901760, %v5345_v14  ;;  %v5379_v21 = vsub.f32 %v5377_v12, %v5378_v49 }
 0x27f   :  { %5528 = vmatpush.msra.mxu1 %v8766_v51 }
 0x280   :  { %v4099_v29 = vadd.f32 %v4098_v37, %v4068_v13  ;;  %5303 = vmatmul.f32.vlgmr.msra.gmra.mxu2 %v8746_v24  ;;  %v5369_v19 = vsub.f32 %v5345_v14, %v8836_v60 }
 0x281   :  { %5568 = vmatpush.msra.mxu2 %v8806_v42  ;;  %5530 = vmatpush.msra.mxu1 %v8784_v41 }
 0x282   :  { %v8833_v16 = vadd.f32 %v4125_v31, %v4099_v29  ;;  %5330 = vmatmul.f32.vlgmr.msra.gmra.mxu3 %v8746_v24  ;;  %v5543_v24 = vld [vmem:[#allocation2 + $0x48] sm:$0xff] }
 0x283   :  { %v4162_v9 = vpop.f32.mrf.mxu0  ;;  %v4231_v18 = vpop.f32.mrf.mxu2  ;;  %5607 = vmatpush.msra.mxu3 %v5606_v62  ;;  %5570 = vmatpush.msra.mxu2 %v8814_v7  ;;  %v5548_v41 = vsel %vm43_vm0, %v5543_v24, 0 }
 0x284   :  { %v4202_v36 = vadd.f32 %v4201_v17, %v4162_v9  ;;  %v4205_v25 = vpop.f32.mrf.mxu1  ;;  %v8854_v59 = vand.u32 4294901760, %v5548_v41 }
 0x285   :  { %v4261_v50 = vpop.f32.mrf.mxu3  ;;  %5613 = vmatpush.msra.mxu3 %v5612_v4 }
 0x286   :  { %v4232_v51 = vadd.f32 %v4231_v18, %v4202_v36  ;;  %5240 = vmatmul.f32.vlgmr.msra.gmra.mxu0 %v8752_v63  ;;  %5276 = vmatmul.f32.gmra.mxu1 %v5176_v26  ;;  %v5370_v63 = vand.u32 4294901760, %v5369_v19 }
 0x287   :  { %5499 = vmatpush.msra.mxu0 %v5401_v15 }
 0x288   :  { %v4262_v27 = vadd.f32 %v4261_v50, %v4232_v51  ;;  %5307 = vmatmul.f32.gmra.mxu2 %v8762_v53  ;;  %v5371_v26 = vsub.f32 %v5369_v19, %v5370_v63 }
 0x289   :  { %5503 = vmatpush.msra.mxu0 %v5407_v1  ;;  %v5544_v1 = vld [vmem:[#allocation2 + $0x50] sm:$0xf] }
 0x28a   :  { %5334 = vmatmul.f32.gmra.mxu3 %v8762_v53  ;;  %v8860_v53 = vsub.f32 %v5548_v41, %v8854_v59  ;;  %v5551_v6 = vsel %vm43_vm0, %v5544_v1, 0  ;;  %v5372_v34 = vand.u32 4294901760, %v5371_v26 }
 0x28b   :  { %v4170_v23 = vpop.f32.mrf.mxu0  ;;  %v4236_v15 = vpop.f32.mrf.mxu2  ;;  %v8866_v38 = vand.u32 4294901760, %v5551_v6 }
 0x28c   :  { %v4206_v0 = vadd.f32 %v4205_v25, %v4170_v23  ;;  %v4321_v43 = vpop.f32.mrf.mxu1  ;;  %v5573_v48 = vand.u32 4294901760, %v8860_v53  ;;  %v5949_v23 = vld [vmem:[#allocation3 + $0xb0] sm:$0xff] }
 0x28d   :  { %v4267_v35 = vpop.f32.mrf.mxu3  ;;  %v8882_v44 = vsub.f32 %v5551_v6, %v8866_v38 }
 0x28e   :  { %v4237_v54 = vadd.f32 %v4236_v15, %v4206_v0  ;;  %5245 = vmatmul.f32.gmra.mxu0 %v8777_v33  ;;  %5412 = vmatmul.f32.vlgmr.msrb.gmra.mxu1 %v8836_v60  ;;  %v8918_v0 = vand.u32 4294901760, %v5949_v23 }
 0x28f   :  { %5669 = vmatpush.msrb.mxu1 %v8806_v42 }
 0x290   :  { %v4268_v58 = vadd.f32 %v4267_v35, %v4237_v54  ;;  %5442 = vmatmul.f32.vlgmr.msrb.gmra.mxu2 %v5369_v19  ;;  %v8923_v26 = vsub.f32 %v5949_v23, %v8918_v0 }
 0x291   :  { %5702 = vmatpush.msrb.mxu2 %v5604_v45  ;;  %5671 = vmatpush.msrb.mxu1 %v8814_v7  ;;  %v5747_v45 = vld [vmem:[#allocation3 + $0xa0] sm:$0xff] }
 0x292   :  { %5472 = vmatmul.f32.vlgmr.msrb.gmra.mxu3 %v5370_v63  ;;  %v8889_v31 = vand.u32 4294901760, %v5747_v45 }
 0x293   :  { %v4294_v33 = vpop.f32.mrf.mxu0  ;;  %v4364_v10 = vpop.f32.mrf.mxu2  ;;  %5731 = vmatpush.msrb.mxu3 %v8806_v42  ;;  %5706 = vmatpush.msrb.mxu2 %v5610_v3  ;;  %v8874_v42 = vsub.f32 %v5748_v46, %v8870_v22  ;;  %v5581_v3 = vand.u32 4294901760, %v8882_v44 }
 0x294   :  { %v4295_v8 = vadd.f32 %v4294_v33, %v4262_v27  ;;  %v4325_v11 = vpop.f32.mrf.mxu1  ;;  %v8893_v62 = vsub.f32 %v5747_v45, %v8889_v31  ;;  %v5950_v27 = vld [vmem:[#allocation3 + $0xb8] sm:$0xff]  ;;  %v6014_v33 = vand.u32 4294901760, %v8923_v26  ;;  %v5746_v45 = vld [vmem:[#allocation2 + $0x51] sm:$0xf] }
 0x295   :  { %v4403_v39 = vpop.f32.mrf.mxu3  ;;  %5733 = vmatpush.msrb.mxu3 %v8814_v7  ;;  %v5574_v7 = vsub.f32 %v8860_v53, %v5573_v48  ;;  %v5806_v37 = vand.u32 4294901760, %v8874_v42  ;;  %v5582_v18 = vsub.f32 %v8882_v44, %v5581_v3  ;;  %v8911_v41 = vand.u32 4294901760, %v5950_v27 }
 0x296   :  { %v4322_v47 = vadd.f32 %v4321_v43, %v4295_v8  ;;  %5373 = vmatmul.f32.vlgmr.msrb.gmra.mxu0 %v5372_v34  ;;  %v4404_v32 = vadd.f32 %v4403_v39, %v4364_v10  ;;  %5416 = vmatmul.f32.gmra.mxu1 %v8852_v40  ;;  %v5812_v4 = vand.u32 4294901760, %v8893_v62  ;;  %v6015_v39 = vsub.f32 %v8923_v26, %v6014_v33 }
 0x297   :  { %5639 = vmatpush.msrb.mxu0 %v8812_v55  ;;  %v5380_v55 = vand.u32 4294901760, %v5379_v21  ;;  %v5575_v56 = vand.u32 4294901760, %v5574_v7  ;;  %v5583_v51 = vand.u32 4294901760, %v5582_v18  ;;  %v8916_v15 = vsub.f32 %v5950_v27, %v8911_v41 }
 0x298   :  { %v4328_v52 = vadd.f32 %v4322_v47, %v8816_v61  ;;  %5447 = vmatmul.f32.gmra.mxu2 %v5377_v12  ;;  %v5807_v61 = vsub.f32 %v8874_v42, %v5806_v37  ;;  %v5813_v36 = vsub.f32 %v8893_v62, %v5812_v4  ;;  %v6016_v47 = vand.u32 4294901760, %v6015_v39 }
 0x299   :  { %5642 = vmatpush.msrb.mxu0 %v8821_v30  ;;  %v6008_v54 = vand.u32 4294901760, %v8916_v15 }
 0x29a   :  { %5478 = vmatmul.f32.gmra.mxu3 %v5378_v49  ;;  %v5808_v30 = vand.u32 4294901760, %v5807_v61  ;;  %v5753_v61 = vsel %vm43_vm0, %v5746_v45, 0 }
 0x29b   :  { %v4298_v20 = vpop.f32.mrf.mxu0  ;;  %v4372_v57 = vpop.f32.mrf.mxu2  ;;  %v6009_v49 = vsub.f32 %v8916_v15, %v6008_v54 }
 0x29c   :  { %v4299_v17 = vadd.f32 %v4298_v20, %v4268_v58  ;;  %v4463_v14 = vpop.f32.mrf.mxu1  ;;  %v5745_v58 = vld [vmem:[#allocation2 + $0x49] sm:$0xff] }
 0x29d   :  { %v4407_v13 = vpop.f32.mrf.mxu3  ;;  %v5750_v8 = vsel %vm43_vm0, %v5745_v58, 0  ;;  %v6010_v46 = vand.u32 4294901760, %v6009_v49 }
 0x29e   :  { %v4326_v5 = vadd.f32 %v4325_v11, %v4299_v17  ;;  %5381 = vmatmul.f32.gmra.mxu0 %v5380_v55  ;;  %v4408_v29 = vadd.f32 %v4407_v13, %v4372_v57  ;;  %5532 = vmatmul.f32.vlgmr.msra.gmra.mxu1 %v8836_v60  ;;  %v5947_v57 = vld [vmem:[#allocation2 + $0x4a] sm:$0xff] }
 0x29f   :  { %5809 = vmatpush.msra.mxu1 %v5808_v30 }
 0x2a0   :  { %v4329_v9 = vadd.f32 %v4326_v5, %v8833_v16  ;;  %5576 = vmatmul.f32.vlgmr.msra.gmra.mxu2 %v5575_v56  ;;  %v5814_v16 = vand.u32 4294901760, %v5813_v36  ;;  %v8960_v56 = vand.u32 4294901760, %v5753_v61 }
 0x2a1   :  { %5841 = vmatpush.msra.mxu2 %v8874_v42 }
 0x2a2   :  { %5615 = vmatmul.f32.vlgmr.msra.gmra.mxu3 %v8854_v59  ;;  %5815 = vmatpush.msra.mxu1 %v5814_v16 }
 0x2a3   :  { %v4433_v28 = vpop.f32.mrf.mxu0  ;;  %v4496_v50 = vpop.f32.mrf.mxu2  ;;  %5871 = vmatpush.msra.mxu3 %v8870_v22  ;;  %5844 = vmatpush.msra.mxu2 %v8893_v62  ;;  %v5782_v62 = vsub.f32 %v5753_v61, %v8960_v56 }
 0x2a4   :  { %v4434_v25 = vadd.f32 %v4433_v28, %v4404_v32  ;;  %v4469_v24 = vpop.f32.mrf.mxu1 }
 0x2a5   :  { %v4523_v19 = vpop.f32.mrf.mxu3  ;;  %5873 = vmatpush.msra.mxu3 %v8889_v31  ;;  %v5783_v36 = vand.u32 4294901760, %v5782_v62 }
 0x2a6   :  { %v4464_v2 = vadd.f32 %v4463_v14, %v4434_v25  ;;  %5505 = vmatmul.f32.vlgmr.msra.gmra.mxu0 %v8836_v60  ;;  %5536 = vmatmul.f32.gmra.mxu1 %v8852_v40 }
 0x2a7   :  { %5770 = vmatpush.msra.mxu0 %v8870_v22  ;;  %v5784_v23 = vsub.f32 %v5782_v62, %v5783_v36 }
 0x2a8   :  { %v4497_v63 = vadd.f32 %v4496_v50, %v4464_v2  ;;  %5584 = vmatmul.f32.gmra.mxu2 %v5583_v51 }
 0x2a9   :  { %5772 = vmatpush.msra.mxu0 %v8889_v31 }
 0x2aa   :  { %v4524_v35 = vadd.f32 %v4523_v19, %v4497_v63  ;;  %5619 = vmatmul.f32.gmra.mxu3 %v8866_v38  ;;  %v6152_v19 = vld [vmem:[#allocation3 + $0xc8] sm:$0xff] }
 0x2ab   :  { %v4438_v60 = vpop.f32.mrf.mxu0  ;;  %v4500_v43 = vpop.f32.mrf.mxu2  ;;  %v8982_v27 = vand.u32 4294901760, %v6152_v19 }
 0x2ac   :  { %v8925_v12 = vadd.f32 %v4524_v35, %v4328_v52  ;;  %v4439_v1 = vadd.f32 %v4438_v60, %v4408_v29  ;;  %v4605_v34 = vpop.f32.mrf.mxu1 }
 0x2ad   :  { %v4527_v6 = vpop.f32.mrf.mxu3  ;;  %v8986_v35 = vsub.f32 %v6152_v19, %v8982_v27 }
 0x2ae   :  { %v4470_v10 = vadd.f32 %v4469_v24, %v4439_v1  ;;  %5509 = vmatmul.f32.gmra.mxu0 %v8852_v40  ;;  %5675 = vmatmul.f32.vlgmr.msrb.gmra.mxu1 %v5573_v48  ;;  %v8942_v40 = vand.u32 4294901760, %v5750_v8  ;;  %v6151_v1 = vld [vmem:[#allocation3 + $0xc0] sm:$0xff] }
 0x2af   :  { %5933 = vmatpush.msrb.mxu1 %v8870_v22 }
 0x2b0   :  { %v4501_v11 = vadd.f32 %v4500_v43, %v4470_v10  ;;  %5708 = vmatmul.f32.vlgmr.msrb.gmra.mxu2 %v8854_v59 }
 0x2b1   :  { %5972 = vmatpush.msrb.mxu2 %v8911_v41  ;;  %5935 = vmatpush.msrb.mxu1 %v8889_v31  ;;  %v5952_v31 = vsel %vm43_vm0, %v5947_v57, 0 }
 0x2b2   :  { %v4528_v32 = vadd.f32 %v4527_v6, %v4501_v11  ;;  %5735 = vmatmul.f32.vlgmr.msrb.gmra.mxu3 %v8854_v59  ;;  %v5774_v59 = vsub.f32 %v5750_v8, %v8942_v40  ;;  %v8962_v14 = vand.u32 4294901760, %v5952_v31 }
 0x2b3   :  { %v4566_v21 = vpop.f32.mrf.mxu0  ;;  %v4635_v52 = vpop.f32.mrf.mxu2  ;;  %6011 = vmatpush.msrb.mxu3 %v6010_v46  ;;  %5974 = vmatpush.msrb.mxu2 %v8918_v0 }
 0x2b4   :  { %v8945_v7 = vadd.f32 %v4528_v32, %v4329_v9  ;;  %v4606_v55 = vadd.f32 %v4605_v34, %v4566_v21  ;;  %v4609_v20 = vpop.f32.mrf.mxu1  ;;  %v9001_v34 = vand.u32 4294901760, %v6151_v1 }
 0x2b5   :  { %v4665_v48 = vpop.f32.mrf.mxu3  ;;  %6017 = vmatpush.msrb.mxu3 %v6016_v47 }
 0x2b6   :  { %v4636_v22 = vadd.f32 %v4635_v52, %v4606_v55  ;;  %5645 = vmatmul.f32.vlgmr.msrb.gmra.mxu0 %v8860_v53  ;;  %5681 = vmatmul.f32.gmra.mxu1 %v5581_v3  ;;  %v5775_v53 = vand.u32 4294901760, %v5774_v59  ;;  %v9005_v39 = vsub.f32 %v6151_v1, %v9001_v34  ;;  %v6150_v1 = vld [vmem:[#allocation2 + $0x53] sm:$0xf] }
 0x2b7   :  { %5904 = vmatpush.msrb.mxu0 %v5806_v37 }
 0x2b8   :  { %v4666_v17 = vadd.f32 %v4665_v48, %v4636_v22  ;;  %5712 = vmatmul.f32.gmra.mxu2 %v8866_v38  ;;  %v5776_v3 = vsub.f32 %v5774_v59, %v5775_v53  ;;  %v6216_v32 = vand.u32 4294901760, %v9005_v39 }
 0x2b9   :  { %5908 = vmatpush.msrb.mxu0 %v5812_v4  ;;  %v5948_v4 = vld [vmem:[#allocation2 + $0x52] sm:$0xf] }
 0x2ba   :  { %5739 = vmatmul.f32.gmra.mxu3 %v8866_v38  ;;  %v8968_v38 = vsub.f32 %v5952_v31, %v8962_v14  ;;  %v5955_v18 = vsel %vm43_vm0, %v5948_v4, 0  ;;  %v6217_v55 = vsub.f32 %v9005_v39, %v6216_v32 }
 0x2bb   :  { %v4574_v42 = vpop.f32.mrf.mxu0  ;;  %v4640_v37 = vpop.f32.mrf.mxu2  ;;  %v8978_v51 = vand.u32 4294901760, %v5955_v18 }
 0x2bc   :  { %v4610_v13 = vadd.f32 %v4609_v20, %v4574_v42  ;;  %v4725_v5 = vpop.f32.mrf.mxu1  ;;  %v5977_v25 = vand.u32 4294901760, %v8968_v38  ;;  %v6353_v42 = vld [vmem:[#allocation3 + $0xd0] sm:$0xff] }
 0x2bd   :  { %v4671_v30 = vpop.f32.mrf.mxu3  ;;  %v8994_v43 = vsub.f32 %v5955_v18, %v8978_v51 }
 0x2be   :  { %v4641_v29 = vadd.f32 %v4640_v37, %v4610_v13  ;;  %5650 = vmatmul.f32.gmra.mxu0 %v8882_v44  ;;  %5817 = vmatmul.f32.vlgmr.msra.gmra.mxu1 %v8942_v40  ;;  %v5777_v44 = vand.u32 4294901760, %v5776_v3  ;;  %v9030_v13 = vand.u32 4294901760, %v6353_v42 }
 0x2bf   :  { %6073 = vmatpush.msra.mxu1 %v8911_v41  ;;  %v5985_v10 = vand.u32 4294901760, %v8994_v43 }
 0x2c0   :  { %v4672_v9 = vadd.f32 %v4671_v30, %v4641_v29  ;;  %5847 = vmatmul.f32.vlgmr.msra.gmra.mxu2 %v5774_v59  ;;  %v9035_v3 = vsub.f32 %v6353_v42, %v9030_v13 }
 0x2c1   :  { %6106 = vmatpush.msra.mxu2 %v6008_v54  ;;  %6075 = vmatpush.msra.mxu1 %v8918_v0  ;;  %v6210_v54 = vand.u32 4294901760, %v8986_v35  ;;  %v5986_v52 = vsub.f32 %v8994_v43, %v5985_v10 }
 0x2c2   :  { %5877 = vmatmul.f32.vlgmr.msra.gmra.mxu3 %v5775_v53 }
 0x2c3   :  { %v4698_v28 = vpop.f32.mrf.mxu0  ;;  %v4768_v50 = vpop.f32.mrf.mxu2  ;;  %6135 = vmatpush.msra.mxu3 %v8911_v41  ;;  %6110 = vmatpush.msra.mxu2 %v6014_v33  ;;  %v5987_v22 = vand.u32 4294901760, %v5986_v52 }
 0x2c4   :  { %v4699_v16 = vadd.f32 %v4698_v28, %v4666_v17  ;;  %v4729_v2 = vpop.f32.mrf.mxu1  ;;  %v6354_v17 = vld [vmem:[#allocation3 + $0xd8] sm:$0xff]  ;;  %v6418_v28 = vand.u32 4294901760, %v9035_v3 }
 0x2c5   :  { %v4807_v24 = vpop.f32.mrf.mxu3  ;;  %6137 = vmatpush.msra.mxu3 %v8918_v0  ;;  %v5978_v0 = vsub.f32 %v8968_v38, %v5977_v25  ;;  %v9023_v31 = vand.u32 4294901760, %v6354_v17 }
 0x2c6   :  { %v4726_v63 = vadd.f32 %v4725_v5, %v4699_v16  ;;  %5778 = vmatmul.f32.vlgmr.msra.gmra.mxu0 %v5777_v44  ;;  %v4808_v41 = vadd.f32 %v4807_v24, %v4768_v50  ;;  %5821 = vmatmul.f32.gmra.mxu1 %v8960_v56  ;;  %v6419_v24 = vsub.f32 %v9035_v3, %v6418_v28 }
 0x2c7   :  { %6043 = vmatpush.msra.mxu0 %v8916_v15  ;;  %v5785_v15 = vand.u32 4294901760, %v5784_v23  ;;  %v5979_v33 = vand.u32 4294901760, %v5978_v0  ;;  %v9028_v37 = vsub.f32 %v6354_v17, %v9023_v31 }
 0x2c8   :  { %v4732_v60 = vadd.f32 %v4726_v63, %v8925_v12  ;;  %5852 = vmatmul.f32.gmra.mxu2 %v5782_v62  ;;  %v6211_v12 = vsub.f32 %v8986_v35, %v6210_v54  ;;  %v6420_v63 = vand.u32 4294901760, %v6419_v24 }
 0x2c9   :  { %6046 = vmatpush.msra.mxu0 %v8923_v26  ;;  %v6412_v29 = vand.u32 4294901760, %v9028_v37 }
 0x2ca   :  { %5883 = vmatmul.f32.gmra.mxu3 %v5783_v36  ;;  %v6212_v26 = vand.u32 4294901760, %v6211_v12  ;;  %v6157_v12 = vsel %vm43_vm0, %v6150_v1, 0 }
 0x2cb   :  { %v4702_v58 = vpop.f32.mrf.mxu0  ;;  %v4776_v6 = vpop.f32.mrf.mxu2  ;;  %v6413_v36 = vsub.f32 %v9028_v37, %v6412_v29 }
 0x2cc   :  { %v4703_v49 = vadd.f32 %v4702_v58, %v4672_v9  ;;  %v4867_v46 = vpop.f32.mrf.mxu1  ;;  %v6149_v9 = vld [vmem:[#allocation2 + $0x4b] sm:$0xff] }
 0x2cd   :  { %v4811_v8 = vpop.f32.mrf.mxu3  ;;  %v6154_v16 = vsel %vm43_vm0, %v6149_v9, 0  ;;  %v6414_v19 = vand.u32 4294901760, %v6413_v36 }
 0x2ce   :  { %v4730_v11 = vadd.f32 %v4729_v2, %v4703_v49  ;;  %5786 = vmatmul.f32.gmra.mxu0 %v5785_v15  ;;  %v4812_v47 = vadd.f32 %v4811_v8, %v4776_v6  ;;  %5937 = vmatmul.f32.vlgmr.msrb.gmra.mxu1 %v8942_v40  ;;  %v6351_v6 = vld [vmem:[#allocation2 + $0x4c] sm:$0xff] }
 0x2cf   :  { %6213 = vmatpush.msrb.mxu1 %v6212_v26 }
 0x2d0   :  { %v4733_v21 = vadd.f32 %v4730_v11, %v8945_v7  ;;  %5980 = vmatmul.f32.vlgmr.msrb.gmra.mxu2 %v5979_v33  ;;  %v6218_v7 = vand.u32 4294901760, %v6217_v55  ;;  %v9072_v33 = vand.u32 4294901760, %v6157_v12 }
 0x2d1   :  { %6245 = vmatpush.msrb.mxu2 %v8986_v35 }
 0x2d2   :  { %6019 = vmatmul.f32.vlgmr.msrb.gmra.mxu3 %v8962_v14  ;;  %6219 = vmatpush.msrb.mxu1 %v6218_v7 }
 0x2d3   :  { %v4837_v45 = vpop.f32.mrf.mxu0  ;;  %v4900_v48 = vpop.f32.mrf.mxu2  ;;  %6275 = vmatpush.msrb.mxu3 %v8982_v27  ;;  %6248 = vmatpush.msrb.mxu2 %v9005_v39  ;;  %v6186_v39 = vsub.f32 %v6157_v12, %v9072_v33 }
 0x2d4   :  { %v4838_v20 = vadd.f32 %v4837_v45, %v4808_v41  ;;  %v4873_v57 = vpop.f32.mrf.mxu1 }
 0x2d5   :  { %v4927_v59 = vpop.f32.mrf.mxu3  ;;  %6277 = vmatpush.msrb.mxu3 %v9001_v34  ;;  %v6187_v55 = vand.u32 4294901760, %v6186_v39 }
 0x2d6   :  { %v4868_v61 = vadd.f32 %v4867_v46, %v4838_v20  ;;  %5910 = vmatmul.f32.vlgmr.msrb.gmra.mxu0 %v8942_v40  ;;  %5941 = vmatmul.f32.gmra.mxu1 %v8960_v56 }
 0x2d7   :  { %6174 = vmatpush.msrb.mxu0 %v8982_v27  ;;  %v6188_v42 = vsub.f32 %v6186_v39, %v6187_v55 }
 0x2d8   :  { %v4901_v53 = vadd.f32 %v4900_v48, %v4868_v61  ;;  %5988 = vmatmul.f32.gmra.mxu2 %v5987_v22 }
 0x2d9   :  { %6176 = vmatpush.msrb.mxu0 %v9001_v34 }
 0x2da   :  { %v4928_v30 = vadd.f32 %v4927_v59, %v4901_v53  ;;  %6023 = vmatmul.f32.gmra.mxu3 %v8978_v51  ;;  %v6556_v59 = vld [vmem:[#allocation3 + $0xe8] sm:$0xff] }
 0x2db   :  { %v4842_v40 = vpop.f32.mrf.mxu0  ;;  %v4904_v5 = vpop.f32.mrf.mxu2  ;;  %v9094_v17 = vand.u32 4294901760, %v6556_v59 }
 0x2dc   :  { %v9037_v62 = vadd.f32 %v4928_v30, %v4732_v60  ;;  %v4843_v4 = vadd.f32 %v4842_v40, %v4812_v47  ;;  %v5009_v44 = vpop.f32.mrf.mxu1 }
 0x2dd   :  { %v4931_v18 = vpop.f32.mrf.mxu3  ;;  %v9098_v30 = vsub.f32 %v6556_v59, %v9094_v17 }
 0x2de   :  { %v4874_v50 = vadd.f32 %v4873_v57, %v4843_v4  ;;  %5914 = vmatmul.f32.gmra.mxu0 %v8960_v56  ;;  %6079 = vmatmul.f32.vlgmr.msra.gmra.mxu1 %v5977_v25  ;;  %v9054_v56 = vand.u32 4294901760, %v6154_v16  ;;  %v6555_v4 = vld [vmem:[#allocation3 + $0xe0] sm:$0xff] }
 0x2df   :  { %6337 = vmatpush.msra.mxu1 %v8982_v27 }
 0x2e0   :  { %v4905_v2 = vadd.f32 %v4904_v5, %v4874_v50  ;;  %6112 = vmatmul.f32.vlgmr.msra.gmra.mxu2 %v8962_v14 }
 0x2e1   :  { %6376 = vmatpush.msra.mxu2 %v9023_v31  ;;  %6339 = vmatpush.msra.mxu1 %v9001_v34  ;;  %v6356_v34 = vsel %vm43_vm0, %v6351_v6, 0 }
 0x2e2   :  { %v4932_v41 = vadd.f32 %v4931_v18, %v4905_v2  ;;  %6139 = vmatmul.f32.vlgmr.msra.gmra.mxu3 %v8962_v14  ;;  %v6178_v14 = vsub.f32 %v6154_v16, %v9054_v56  ;;  %v9074_v46 = vand.u32 4294901760, %v6356_v34 }
 0x2e3   :  { %v4970_v23 = vpop.f32.mrf.mxu0  ;;  %v5039_v60 = vpop.f32.mrf.mxu2  ;;  %6415 = vmatpush.msra.mxu3 %v6414_v19  ;;  %6378 = vmatpush.msra.mxu2 %v9030_v13 }
 0x2e4   :  { %v9057_v0 = vadd.f32 %v4932_v41, %v4733_v21  ;;  %v5010_v15 = vadd.f32 %v5009_v44, %v4970_v23  ;;  %v5013_v58 = vpop.f32.mrf.mxu1  ;;  %v9113_v44 = vand.u32 4294901760, %v6555_v4 }
 0x2e5   :  { %v5069_v25 = vpop.f32.mrf.mxu3  ;;  %6421 = vmatpush.msra.mxu3 %v6420_v63 }
 0x2e6   :  { %v5040_v27 = vadd.f32 %v5039_v60, %v5010_v15  ;;  %6049 = vmatmul.f32.vlgmr.msra.gmra.mxu0 %v8968_v38  ;;  %6085 = vmatmul.f32.gmra.mxu1 %v5985_v10  ;;  %v6179_v38 = vand.u32 4294901760, %v6178_v14  ;;  %v9117_v24 = vsub.f32 %v6555_v4, %v9113_v44  ;;  %v6554_v4 = vld [vmem:[#allocation2 + $0x55] sm:$0xf] }
 0x2e7   :  { %6308 = vmatpush.msra.mxu0 %v6210_v54 }
 0x2e8   :  { %v5070_v49 = vadd.f32 %v5069_v25, %v5040_v27  ;;  %6116 = vmatmul.f32.gmra.mxu2 %v8978_v51  ;;  %v6180_v10 = vsub.f32 %v6178_v14, %v6179_v38  ;;  %v6620_v41 = vand.u32 4294901760, %v9117_v24 }
 0x2e9   :  { %6312 = vmatpush.msra.mxu0 %v6216_v32  ;;  %v6352_v32 = vld [vmem:[#allocation2 + $0x54] sm:$0xf] }
 0x2ea   :  { %6143 = vmatmul.f32.gmra.mxu3 %v8978_v51  ;;  %v9080_v51 = vsub.f32 %v6356_v34, %v9074_v46  ;;  %v6359_v52 = vsel %vm43_vm0, %v6352_v32, 0  ;;  %v6621_v15 = vsub.f32 %v9117_v24, %v6620_v41 }
 0x2eb   :  { %v4978_v35 = vpop.f32.mrf.mxu0  ;;  %v5044_v54 = vpop.f32.mrf.mxu2  ;;  %v9090_v22 = vand.u32 4294901760, %v6359_v52 }
 0x2ec   :  { %v5014_v8 = vadd.f32 %v5013_v58, %v4978_v35  ;;  %v5129_v11 = vpop.f32.mrf.mxu1  ;;  %v6381_v20 = vand.u32 4294901760, %v9080_v51  ;;  %v6757_v35 = vld [vmem:[#allocation3 + $0xf0] sm:$0xff] }
 0x2ed   :  { %v5075_v26 = vpop.f32.mrf.mxu3  ;;  %v9106_v5 = vsub.f32 %v6359_v52, %v9090_v22 }
 0x2ee   :  { %v5045_v47 = vadd.f32 %v5044_v54, %v5014_v8  ;;  %6054 = vmatmul.f32.gmra.mxu0 %v8994_v43  ;;  %6221 = vmatmul.f32.vlgmr.msrb.gmra.mxu1 %v9054_v56  ;;  %v6181_v43 = vand.u32 4294901760, %v6180_v10  ;;  %v9142_v8 = vand.u32 4294901760, %v6757_v35 }
 0x2ef   :  { %6477 = vmatpush.msrb.mxu1 %v9023_v31  ;;  %v6389_v50 = vand.u32 4294901760, %v9106_v5 }
 0x2f0   :  { %v5076_v21 = vadd.f32 %v5075_v26, %v5045_v47  ;;  %6251 = vmatmul.f32.vlgmr.msrb.gmra.mxu2 %v6178_v14  ;;  %v9147_v10 = vsub.f32 %v6757_v35, %v9142_v8 }
 0x2f1   :  { %6510 = vmatpush.msrb.mxu2 %v6412_v29  ;;  %6479 = vmatpush.msrb.mxu1 %v9030_v13  ;;  %v6614_v29 = vand.u32 4294901760, %v9098_v30  ;;  %v6390_v60 = vsub.f32 %v9106_v5, %v6389_v50 }
 0x2f2   :  { %6281 = vmatmul.f32.vlgmr.msrb.gmra.mxu3 %v6179_v38 }
 0x2f3   :  { %v5102_v45 = vpop.f32.mrf.mxu0  ;;  %v5172_v48 = vpop.f32.mrf.mxu2  ;;  %6539 = vmatpush.msrb.mxu3 %v9023_v31  ;;  %6514 = vmatpush.msrb.mxu2 %v6418_v28  ;;  %v6391_v27 = vand.u32 4294901760, %v6390_v60 }
 0x2f4   :  { %v5103_v7 = vadd.f32 %v5102_v45, %v5070_v49  ;;  %v5133_v61 = vpop.f32.mrf.mxu1  ;;  %v6758_v49 = vld [vmem:[#allocation3 + $0xf8] sm:$0xff]  ;;  %v6822_v45 = vand.u32 4294901760, %v9147_v10 }
 0x2f5   :  { %v5211_v57 = vpop.f32.mrf.mxu3  ;;  %6541 = vmatpush.msrb.mxu3 %v9030_v13  ;;  %v6382_v13 = vsub.f32 %v9080_v51, %v6381_v20  ;;  %v9135_v34 = vand.u32 4294901760, %v6758_v49 }
 0x2f6   :  { %v5130_v53 = vadd.f32 %v5129_v11, %v5103_v7  ;;  %6182 = vmatmul.f32.vlgmr.msrb.gmra.mxu0 %v6181_v43  ;;  %v5212_v31 = vadd.f32 %v5211_v57, %v5172_v48  ;;  %6225 = vmatmul.f32.gmra.mxu1 %v9072_v33  ;;  %v6823_v57 = vsub.f32 %v9147_v10, %v6822_v45 }
 0x2f7   :  { %6447 = vmatpush.msrb.mxu0 %v9028_v37  ;;  %v6189_v37 = vand.u32 4294901760, %v6188_v42  ;;  %v6383_v28 = vand.u32 4294901760, %v6382_v13  ;;  %v9140_v54 = vsub.f32 %v6758_v49, %v9135_v34 }
 0x2f8   :  { %v5136_v40 = vadd.f32 %v5130_v53, %v9037_v62  ;;  %6256 = vmatmul.f32.gmra.mxu2 %v6186_v39  ;;  %v6615_v62 = vsub.f32 %v9098_v30, %v6614_v29  ;;  %v6824_v53 = vand.u32 4294901760, %v6823_v57 }
 0x2f9   :  { %6450 = vmatpush.msrb.mxu0 %v9035_v3  ;;  %v6816_v47 = vand.u32 4294901760, %v9140_v54 }
 0x2fa   :  { %6287 = vmatmul.f32.gmra.mxu3 %v6187_v55  ;;  %v6616_v3 = vand.u32 4294901760, %v6615_v62  ;;  %v6561_v62 = vsel %vm43_vm0, %v6554_v4, 0 }
 0x2fb   :  { %v5106_v9 = vpop.f32.mrf.mxu0  ;;  %v5180_v18 = vpop.f32.mrf.mxu2  ;;  %v6817_v55 = vsub.f32 %v9140_v54, %v6816_v47 }
 0x2fc   :  { %v5107_v36 = vadd.f32 %v5106_v9, %v5076_v21  ;;  %v5271_v19 = vpop.f32.mrf.mxu1  ;;  %v6553_v21 = vld [vmem:[#allocation2 + $0x4d] sm:$0xff] }
 0x2fd   :  { %v5215_v16 = vpop.f32.mrf.mxu3  ;;  %v6558_v7 = vsel %vm43_vm0, %v6553_v21, 0  ;;  %v6818_v59 = vand.u32 4294901760, %v6817_v55 }
 0x2fe   :  { %v5134_v2 = vadd.f32 %v5133_v61, %v5107_v36  ;;  %6190 = vmatmul.f32.gmra.mxu0 %v6189_v37  ;;  %v5216_v63 = vadd.f32 %v5215_v16, %v5180_v18  ;;  %6341 = vmatmul.f32.vlgmr.msra.gmra.mxu1 %v9054_v56  ;;  %v6755_v18 = vld [vmem:[#allocation2 + $0x4e] sm:$0xff] }
 0x2ff   :  { %6617 = vmatpush.msra.mxu1 %v6616_v3 }
 0x300   :  { %v5137_v23 = vadd.f32 %v5134_v2, %v9057_v0  ;;  %6384 = vmatmul.f32.vlgmr.msra.gmra.mxu2 %v6383_v28  ;;  %v6622_v0 = vand.u32 4294901760, %v6621_v15  ;;  %v9184_v28 = vand.u32 4294901760, %v6561_v62 }
 0x301   :  { %6649 = vmatpush.msra.mxu2 %v9098_v30 }
 0x302   :  { %6423 = vmatmul.f32.vlgmr.msra.gmra.mxu3 %v9074_v46  ;;  %6623 = vmatpush.msra.mxu1 %v6622_v0 }
 0x303   :  { %v5241_v1 = vpop.f32.mrf.mxu0  ;;  %v5304_v25 = vpop.f32.mrf.mxu2  ;;  %6679 = vmatpush.msra.mxu3 %v9094_v17  ;;  %6652 = vmatpush.msra.mxu2 %v9117_v24  ;;  %v6590_v24 = vsub.f32 %v6561_v62, %v9184_v28 }
 0x304   :  { %v5242_v58 = vadd.f32 %v5241_v1, %v5212_v31  ;;  %v5277_v6 = vpop.f32.mrf.mxu1 }
 0x305   :  { %v5331_v14 = vpop.f32.mrf.mxu3  ;;  %6681 = vmatpush.msra.mxu3 %v9113_v44  ;;  %v6591_v15 = vand.u32 4294901760, %v6590_v24 }
 0x306   :  { %v5272_v12 = vadd.f32 %v5271_v19, %v5242_v58  ;;  %6314 = vmatmul.f32.vlgmr.msra.gmra.mxu0 %v9054_v56  ;;  %6345 = vmatmul.f32.gmra.mxu1 %v9072_v33 }
 0x307   :  { %6578 = vmatpush.msra.mxu0 %v9094_v17  ;;  %v6592_v35 = vsub.f32 %v6590_v24, %v6591_v15 }
 0x308   :  { %v5305_v38 = vadd.f32 %v5304_v25, %v5272_v12  ;;  %6392 = vmatmul.f32.gmra.mxu2 %v6391_v27 }
 0x309   :  { %6580 = vmatpush.msra.mxu0 %v9113_v44 }
 0x30a   :  { %v5332_v26 = vadd.f32 %v5331_v14, %v5305_v38  ;;  %6427 = vmatmul.f32.gmra.mxu3 %v9090_v22  ;;  %v6960_v14 = vld [vmem:[#allocation3 + $0x108] sm:$0xff] }
 0x30b   :  { %v5246_v56 = vpop.f32.mrf.mxu0  ;;  %v5308_v11 = vpop.f32.mrf.mxu2  ;;  %v9206_v49 = vand.u32 4294901760, %v6960_v14 }
 0x30c   :  { %v9149_v39 = vadd.f32 %v5332_v26, %v5136_v40  ;;  %v5247_v32 = vadd.f32 %v5246_v56, %v5216_v63  ;;  %v5413_v43 = vpop.f32.mrf.mxu1 }
 0x30d   :  { %v5335_v52 = vpop.f32.mrf.mxu3  ;;  %v9210_v26 = vsub.f32 %v6960_v14, %v9206_v49 }
 0x30e   :  { %v5278_v48 = vadd.f32 %v5277_v6, %v5247_v32  ;;  %6318 = vmatmul.f32.gmra.mxu0 %v9072_v33  ;;  %6483 = vmatmul.f32.vlgmr.msrb.gmra.mxu1 %v6381_v20  ;;  %v9166_v33 = vand.u32 4294901760, %v6558_v7  ;;  %v6959_v32 = vld [vmem:[#allocation3 + $0x100] sm:$0xff] }
 0x30f   :  { %6741 = vmatpush.msrb.mxu1 %v9094_v17 }
 0x310   :  { %v5309_v61 = vadd.f32 %v5308_v11, %v5278_v48  ;;  %6516 = vmatmul.f32.vlgmr.msrb.gmra.mxu2 %v9074_v46 }
 0x311   :  { %6780 = vmatpush.msrb.mxu2 %v9135_v34  ;;  %6743 = vmatpush.msrb.mxu1 %v9113_v44  ;;  %v6760_v44 = vsel %vm43_vm0, %v6755_v18, 0 }
 0x312   :  { %v5336_v31 = vadd.f32 %v5335_v52, %v5309_v61  ;;  %6543 = vmatmul.f32.vlgmr.msrb.gmra.mxu3 %v9074_v46  ;;  %v6582_v46 = vsub.f32 %v6558_v7, %v9166_v33  ;;  %v9186_v19 = vand.u32 4294901760, %v6760_v44 }
 0x313   :  { %v5374_v42 = vpop.f32.mrf.mxu0  ;;  %v5443_v40 = vpop.f32.mrf.mxu2  ;;  %6819 = vmatpush.msrb.mxu3 %v6818_v59  ;;  %6782 = vmatpush.msrb.mxu2 %v9142_v8 }
 0x314   :  { %v9169_v13 = vadd.f32 %v5336_v31, %v5137_v23  ;;  %v5414_v37 = vadd.f32 %v5413_v43, %v5374_v42  ;;  %v5417_v9 = vpop.f32.mrf.mxu1  ;;  %v9225_v43 = vand.u32 4294901760, %v6959_v32 }
 0x315   :  { %v5473_v20 = vpop.f32.mrf.mxu3  ;;  %6825 = vmatpush.msrb.mxu3 %v6824_v53 }
 0x316   :  { %v5444_v17 = vadd.f32 %v5443_v40, %v5414_v37  ;;  %6453 = vmatmul.f32.vlgmr.msrb.gmra.mxu0 %v9080_v51  ;;  %6489 = vmatmul.f32.gmra.mxu1 %v6389_v50  ;;  %v6583_v51 = vand.u32 4294901760, %v6582_v46  ;;  %v9229_v57 = vsub.f32 %v6959_v32, %v9225_v43  ;;  %v6958_v32 = vld [vmem:[#allocation2 + $0x57] sm:$0xf] }
 0x317   :  { %6712 = vmatpush.msrb.mxu0 %v6614_v29 }
 0x318   :  { %v5474_v36 = vadd.f32 %v5473_v20, %v5444_v17  ;;  %6520 = vmatmul.f32.gmra.mxu2 %v9090_v22  ;;  %v6584_v50 = vsub.f32 %v6582_v46, %v6583_v51  ;;  %v7024_v31 = vand.u32 4294901760, %v9229_v57 }
 0x319   :  { %6716 = vmatpush.msrb.mxu0 %v6620_v41  ;;  %v6756_v41 = vld [vmem:[#allocation2 + $0x56] sm:$0xf] }
 0x31a   :  { %6547 = vmatmul.f32.gmra.mxu3 %v9090_v22  ;;  %v9192_v22 = vsub.f32 %v6760_v44, %v9186_v19  ;;  %v6763_v60 = vsel %vm43_vm0, %v6756_v41, 0  ;;  %v7025_v37 = vsub.f32 %v9229_v57, %v7024_v31 }
 0x31b   :  { %v5382_v30 = vpop.f32.mrf.mxu0  ;;  %v5448_v29 = vpop.f32.mrf.mxu2  ;;  %v9202_v27 = vand.u32 4294901760, %v6763_v60 }
 0x31c   :  { %v5418_v16 = vadd.f32 %v5417_v9, %v5382_v30  ;;  %v5533_v2 = vpop.f32.mrf.mxu1  ;;  %v6785_v58 = vand.u32 4294901760, %v9192_v22  ;;  %v7161_v30 = vld [vmem:[#allocation3 + $0x110] sm:$0xff] }
 0x31d   :  { %v5479_v3 = vpop.f32.mrf.mxu3  ;;  %v9218_v11 = vsub.f32 %v6763_v60, %v9202_v27 }
 0x31e   :  { %v5449_v63 = vadd.f32 %v5448_v29, %v5418_v16  ;;  %6458 = vmatmul.f32.gmra.mxu0 %v9106_v5  ;;  %6625 = vmatmul.f32.vlgmr.msra.gmra.mxu1 %v9166_v33  ;;  %v6585_v5 = vand.u32 4294901760, %v6584_v50  ;;  %v9254_v16 = vand.u32 4294901760, %v7161_v30 }
 0x31f   :  { %6881 = vmatpush.msra.mxu1 %v9135_v34  ;;  %v6793_v48 = vand.u32 4294901760, %v9218_v11 }
 0x320   :  { %v5480_v23 = vadd.f32 %v5479_v3, %v5449_v63  ;;  %6655 = vmatmul.f32.vlgmr.msra.gmra.mxu2 %v6582_v46  ;;  %v9259_v50 = vsub.f32 %v7161_v30, %v9254_v16 }
 0x321   :  { %6914 = vmatpush.msra.mxu2 %v6816_v47  ;;  %6883 = vmatpush.msra.mxu1 %v9142_v8  ;;  %v7018_v47 = vand.u32 4294901760, %v9210_v26  ;;  %v6794_v40 = vsub.f32 %v9218_v11, %v6793_v48 }
 0x322   :  { %6685 = vmatmul.f32.vlgmr.msra.gmra.mxu3 %v6583_v51 }
 0x323   :  { %v5506_v1 = vpop.f32.mrf.mxu0  ;;  %v5577_v25 = vpop.f32.mrf.mxu2  ;;  %6943 = vmatpush.msra.mxu3 %v9135_v34  ;;  %6918 = vmatpush.msra.mxu2 %v6822_v45  ;;  %v6795_v17 = vand.u32 4294901760, %v6794_v40 }
 0x324   :  { %v5507_v0 = vadd.f32 %v5506_v1, %v5474_v36  ;;  %v5537_v12 = vpop.f32.mrf.mxu1  ;;  %v7162_v36 = vld [vmem:[#allocation3 + $0x118] sm:$0xff]  ;;  %v7226_v1 = vand.u32 4294901760, %v9259_v50 }
 0x325   :  { %v5616_v6 = vpop.f32.mrf.mxu3  ;;  %6945 = vmatpush.msra.mxu3 %v9142_v8  ;;  %v6786_v8 = vsub.f32 %v9192_v22, %v6785_v58  ;;  %v9247_v44 = vand.u32 4294901760, %v7162_v36 }
 0x326   :  { %v5534_v38 = vadd.f32 %v5533_v2, %v5507_v0  ;;  %6586 = vmatmul.f32.vlgmr.msra.gmra.mxu0 %v6585_v5  ;;  %v5617_v34 = vadd.f32 %v5616_v6, %v5577_v25  ;;  %6629 = vmatmul.f32.gmra.mxu1 %v9184_v28  ;;  %v7227_v6 = vsub.f32 %v9259_v50, %v7226_v1 }
 0x327   :  { %6851 = vmatpush.msra.mxu0 %v9140_v54  ;;  %v6593_v54 = vand.u32 4294901760, %v6592_v35  ;;  %v6787_v45 = vand.u32 4294901760, %v6786_v8  ;;  %v9252_v29 = vsub.f32 %v7162_v36, %v9247_v44 }
 0x328   :  { %v5540_v56 = vadd.f32 %v5534_v38, %v9149_v39  ;;  %6660 = vmatmul.f32.gmra.mxu2 %v6590_v24  ;;  %v7019_v39 = vsub.f32 %v9210_v26, %v7018_v47  ;;  %v7228_v38 = vand.u32 4294901760, %v7227_v6 }
 0x329   :  { %6854 = vmatpush.msra.mxu0 %v9147_v10  ;;  %v7220_v63 = vand.u32 4294901760, %v9252_v29 }
 0x32a   :  { %6691 = vmatmul.f32.gmra.mxu3 %v6591_v15  ;;  %v7020_v10 = vand.u32 4294901760, %v7019_v39  ;;  %v6965_v39 = vsel %vm43_vm0, %v6958_v32, 0 }
 0x32b   :  { %v5510_v21 = vpop.f32.mrf.mxu0  ;;  %v5585_v52 = vpop.f32.mrf.mxu2  ;;  %v7221_v15 = vsub.f32 %v9252_v29, %v7220_v63 }
 0x32c   :  { %v5511_v55 = vadd.f32 %v5510_v21, %v5480_v23  ;;  %v5676_v59 = vpop.f32.mrf.mxu1  ;;  %v6957_v23 = vld [vmem:[#allocation2 + $0x4f] sm:$0xff] }
 0x32d   :  { %v5620_v7 = vpop.f32.mrf.mxu3  ;;  %v6962_v0 = vsel %vm43_vm0, %v6957_v23, 0  ;;  %v7222_v14 = vand.u32 4294901760, %v7221_v15 }
 0x32e   :  { %v5538_v61 = vadd.f32 %v5537_v12, %v5511_v55  ;;  %6594 = vmatmul.f32.gmra.mxu0 %v6593_v54  ;;  %v5621_v53 = vadd.f32 %v5620_v7, %v5585_v52  ;;  %6745 = vmatmul.f32.vlgmr.msrb.gmra.mxu1 %v9166_v33  ;;  %v7159_v52 = vld [vmem:[#allocation2 + $0x50] sm:$0xff] }
 0x32f   :  { %7021 = vmatpush.msrb.mxu1 %v7020_v10 }
 0x330   :  { %v5541_v42 = vadd.f32 %v5538_v61, %v9169_v13  ;;  %6788 = vmatmul.f32.vlgmr.msrb.gmra.mxu2 %v6787_v45  ;;  %v7026_v13 = vand.u32 4294901760, %v7025_v37  ;;  %v9296_v45 = vand.u32 4294901760, %v6965_v39 }
 0x331   :  { %7053 = vmatpush.msrb.mxu2 %v9210_v26 }
 0x332   :  { %6827 = vmatmul.f32.vlgmr.msrb.gmra.mxu3 %v9186_v19  ;;  %7027 = vmatpush.msrb.mxu1 %v7026_v13 }
 0x333   :  { %v5646_v4 = vpop.f32.mrf.mxu0  ;;  %v5709_v20 = vpop.f32.mrf.mxu2  ;;  %7083 = vmatpush.msrb.mxu3 %v9206_v49  ;;  %7056 = vmatpush.msrb.mxu2 %v9229_v57  ;;  %v6994_v57 = vsub.f32 %v6965_v39, %v9296_v45 }
 0x334   :  { %v5647_v9 = vadd.f32 %v5646_v4, %v5617_v34  ;;  %v5682_v18 = vpop.f32.mrf.mxu1 }
 0x335   :  { %v5736_v46 = vpop.f32.mrf.mxu3  ;;  %7085 = vmatpush.msrb.mxu3 %v9225_v43  ;;  %v6995_v37 = vand.u32 4294901760, %v6994_v57 }
 0x336   :  { %v5677_v62 = vadd.f32 %v5676_v59, %v5647_v9  ;;  %6718 = vmatmul.f32.vlgmr.msrb.gmra.mxu0 %v9166_v33  ;;  %6749 = vmatmul.f32.gmra.mxu1 %v9184_v28 }
 0x337   :  { %6982 = vmatpush.msrb.mxu0 %v9206_v49 }
 0x338   :  { %v5710_v51 = vadd.f32 %v5709_v20, %v5677_v62  ;;  %6796 = vmatmul.f32.gmra.mxu2 %v6795_v17 }
 0x339   :  { %6984 = vmatpush.msrb.mxu0 %v9225_v43 }
 0x33a   :  { %v5737_v3 = vadd.f32 %v5736_v46, %v5710_v51  ;;  %6831 = vmatmul.f32.gmra.mxu3 %v9202_v27  ;;  %v6996_v51 = vsub.f32 %v6994_v57, %v6995_v37 }
 0x33b   :  { %v5651_v33 = vpop.f32.mrf.mxu0  ;;  %v5713_v2 = vpop.f32.mrf.mxu2 }
 0x33c   :  { %v9261_v24 = vadd.f32 %v5737_v3, %v5540_v56  ;;  %v5652_v41 = vadd.f32 %v5651_v33, %v5621_v53  ;;  %v5818_v5 = vpop.f32.mrf.mxu1 }
 0x33d   :  { %v5740_v60 = vpop.f32.mrf.mxu3 }
 0x33e   :  { %v5683_v25 = vadd.f32 %v5682_v18, %v5652_v41  ;;  %6722 = vmatmul.f32.gmra.mxu0 %v9184_v28  ;;  %6887 = vmatmul.f32.vlgmr.msra.gmra.mxu1 %v6785_v58  ;;  %v9278_v28 = vand.u32 4294901760, %v6962_v0 }
 0x33f   :  { %7145 = vmatpush.msra.mxu1 %v9206_v49 }
 0x340   :  { %v5714_v12 = vadd.f32 %v5713_v2, %v5683_v25  ;;  %6920 = vmatmul.f32.vlgmr.msra.gmra.mxu2 %v9186_v19 }
 0x341   :  { %7184 = vmatpush.msra.mxu2 %v9247_v44  ;;  %7147 = vmatpush.msra.mxu1 %v9225_v43  ;;  %v7164_v43 = vsel %vm43_vm0, %v7159_v52, 0 }
 0x342   :  { %v5741_v34 = vadd.f32 %v5740_v60, %v5714_v12  ;;  %6947 = vmatmul.f32.vlgmr.msra.gmra.mxu3 %v9186_v19  ;;  %v6986_v19 = vsub.f32 %v6962_v0, %v9278_v28  ;;  %v9298_v59 = vand.u32 4294901760, %v7164_v43 }
 0x343   :  { %v5779_v35 = vpop.f32.mrf.mxu0  ;;  %v5848_v56 = vpop.f32.mrf.mxu2  ;;  %7223 = vmatpush.msra.mxu3 %v7222_v14  ;;  %7186 = vmatpush.msra.mxu2 %v9254_v16 }
 0x344   :  { %v9281_v8 = vadd.f32 %v5741_v34, %v5541_v42  ;;  %v5819_v54 = vadd.f32 %v5818_v5, %v5779_v35  ;;  %v5822_v21 = vpop.f32.mrf.mxu1 }
 0x345   :  { %v5878_v58 = vpop.f32.mrf.mxu3  ;;  %7229 = vmatpush.msra.mxu3 %v7228_v38 }
 0x346   :  { %v5849_v49 = vadd.f32 %v5848_v56, %v5819_v54  ;;  %6857 = vmatmul.f32.vlgmr.msra.gmra.mxu0 %v9192_v22  ;;  %6893 = vmatmul.f32.gmra.mxu1 %v6793_v48  ;;  %v6987_v22 = vand.u32 4294901760, %v6986_v19 }
 0x347   :  { %7116 = vmatpush.msra.mxu0 %v7018_v47 }
 0x348   :  { %v5879_v55 = vadd.f32 %v5878_v58, %v5849_v49  ;;  %6924 = vmatmul.f32.gmra.mxu2 %v9202_v27  ;;  %v6988_v48 = vsub.f32 %v6986_v19, %v6987_v22 }
 0x349   :  { %7120 = vmatpush.msra.mxu0 %v7024_v31  ;;  %v7160_v31 = vld [vmem:[#allocation2 + $0x58] sm:$0xf] }
 0x34a   :  { %6951 = vmatmul.f32.gmra.mxu3 %v9202_v27  ;;  %v9304_v27 = vsub.f32 %v7164_v43, %v9298_v59  ;;  %v7167_v40 = vsel %vm43_vm0, %v7160_v31, 0 }
 0x34b   :  { %v5787_v26 = vpop.f32.mrf.mxu0  ;;  %v5853_v47 = vpop.f32.mrf.mxu2  ;;  %v9314_v17 = vand.u32 4294901760, %v7167_v40 }
 0x34c   :  { %v5823_v7 = vadd.f32 %v5822_v21, %v5787_v26  ;;  %v5938_v61 = vpop.f32.mrf.mxu1  ;;  %v7189_v9 = vand.u32 4294901760, %v9304_v27 }
 0x34d   :  { %v5884_v10 = vpop.f32.mrf.mxu3  ;;  %v9323_v3 = vsub.f32 %v7167_v40, %v9314_v17 }
 0x34e   :  { %v5854_v53 = vadd.f32 %v5853_v47, %v5823_v7  ;;  %6862 = vmatmul.f32.gmra.mxu0 %v9218_v11  ;;  %7029 = vmatmul.f32.vlgmr.msrb.gmra.mxu1 %v9278_v28  ;;  %v6989_v11 = vand.u32 4294901760, %v6988_v48  ;;  %v7190_v30 = vsub.f32 %v9304_v27, %v7189_v9 }
 0x34f   :  { %7285 = vmatpush.msrb.mxu1 %v9247_v44 }
 0x350   :  { %v5885_v42 = vadd.f32 %v5884_v10, %v5854_v53  ;;  %7059 = vmatmul.f32.vlgmr.msrb.gmra.mxu2 %v6986_v19  ;;  %v7191_v41 = vand.u32 4294901760, %v7190_v30 }
 0x351   :  { %7318 = vmatpush.msrb.mxu2 %v7220_v63  ;;  %7287 = vmatpush.msrb.mxu1 %v9254_v16 }
 0x352   :  { %7089 = vmatmul.f32.vlgmr.msrb.gmra.mxu3 %v6987_v22 }
 0x353   :  { %v5911_v4 = vpop.f32.mrf.mxu0  ;;  %v5981_v20 = vpop.f32.mrf.mxu2  ;;  %7347 = vmatpush.msrb.mxu3 %v9247_v44  ;;  %7322 = vmatpush.msrb.mxu2 %v7226_v1 }
 0x354   :  { %v5912_v13 = vadd.f32 %v5911_v4, %v5879_v55  ;;  %v5942_v18 = vpop.f32.mrf.mxu1 }
 0x355   :  { %v6020_v46 = vpop.f32.mrf.mxu3  ;;  %7349 = vmatpush.msrb.mxu3 %v9254_v16  ;;  %v6997_v16 = vand.u32 4294901760, %v6996_v51 }
 0x356   :  { %v5939_v62 = vadd.f32 %v5938_v61, %v5912_v13  ;;  %6990 = vmatmul.f32.vlgmr.msrb.gmra.mxu0 %v6989_v11  ;;  %v6021_v36 = vadd.f32 %v6020_v46, %v5981_v20  ;;  %7033 = vmatmul.f32.gmra.mxu1 %v9296_v45 }
 0x357   :  { %7255 = vmatpush.msrb.mxu0 %v9252_v29  ;;  %v7197_v29 = vand.u32 4294901760, %v9323_v3 }
 0x358   :  { %v5945_v44 = vadd.f32 %v5939_v62, %v9261_v24  ;;  %7064 = vmatmul.f32.gmra.mxu2 %v6994_v57 }
 0x359   :  { %7258 = vmatpush.msrb.mxu0 %v9259_v50  ;;  %v7198_v50 = vsub.f32 %v9323_v3, %v7197_v29 }
 0x35a   :  { %7095 = vmatmul.f32.gmra.mxu3 %v6995_v37 }
 0x35b   :  { %v5915_v33 = vpop.f32.mrf.mxu0  ;;  %v5989_v2 = vpop.f32.mrf.mxu2  ;;  %v7199_v14 = vand.u32 4294901760, %v7198_v50 }
 0x35c   :  { %v5916_v63 = vadd.f32 %v5915_v33, %v5885_v42  ;;  %v6080_v24 = vpop.f32.mrf.mxu1 }
 0x35d   :  { %v6024_v23 = vpop.f32.mrf.mxu3 }
 0x35e   :  { %v5943_v60 = vadd.f32 %v5942_v18, %v5916_v63  ;;  %6998 = vmatmul.f32.gmra.mxu0 %v6997_v16  ;;  %v6025_v5 = vadd.f32 %v6024_v23, %v5989_v2  ;;  %7149 = vmatmul.f32.vlgmr.msra.gmra.mxu1 %v9278_v28 }
 0x360   :  { %v5946_v15 = vadd.f32 %v5943_v60, %v9281_v8  ;;  %7192 = vmatmul.f32.vlgmr.msra.gmra.mxu2 %v7191_v41 }
 0x362   :  { %7231 = vmatmul.f32.vlgmr.msra.gmra.mxu3 %v9298_v59 }
 0x363   :  { %v6050_v1 = vpop.f32.mrf.mxu0  ;;  %v6113_v25 = vpop.f32.mrf.mxu2 }
 0x364   :  { %v6051_v0 = vadd.f32 %v6050_v1, %v6021_v36  ;;  %v6086_v12 = vpop.f32.mrf.mxu1 }
 0x365   :  { %v6140_v6 = vpop.f32.mrf.mxu3 }
 0x366   :  { %v6081_v38 = vadd.f32 %v6080_v24, %v6051_v0  ;;  %7122 = vmatmul.f32.vlgmr.msra.gmra.mxu0 %v9278_v28  ;;  %7153 = vmatmul.f32.gmra.mxu1 %v9296_v45 }
 0x368   :  { %v6114_v34 = vadd.f32 %v6113_v25, %v6081_v38  ;;  %7200 = vmatmul.f32.gmra.mxu2 %v7199_v14 }
 0x36a   :  { %v6141_v35 = vadd.f32 %v6140_v6, %v6114_v34  ;;  %7235 = vmatmul.f32.gmra.mxu3 %v9314_v17 }
 0x36b   :  { %v6055_v56 = vpop.f32.mrf.mxu0  ;;  %v6117_v8 = vpop.f32.mrf.mxu2 }
 0x36c   :  { %v6147_v54 = vadd.f32 %v6141_v35, %v5945_v44  ;;  %v6056_v32 = vadd.f32 %v6055_v56, %v6025_v5  ;;  %v6222_v21 = vpop.f32.mrf.mxu1 }
 0x36d   :  { %v6144_v58 = vpop.f32.mrf.mxu3 }
 0x36e   :  { %v6087_v49 = vadd.f32 %v6086_v12, %v6056_v32  ;;  %7126 = vmatmul.f32.gmra.mxu0 %v9296_v45  ;;  %7291 = vmatmul.f32.vlgmr.msrb.gmra.mxu1 %v7189_v9 }
 0x370   :  { %v6118_v19 = vadd.f32 %v6117_v8, %v6087_v49  ;;  %7324 = vmatmul.f32.vlgmr.msrb.gmra.mxu2 %v9298_v59 }
 0x372   :  { %v6145_v28 = vadd.f32 %v6144_v58, %v6118_v19  ;;  %7351 = vmatmul.f32.vlgmr.msrb.gmra.mxu3 %v9298_v59 }
 0x373   :  { %v6183_v52 = vpop.f32.mrf.mxu0  ;;  %v6252_v39 = vpop.f32.mrf.mxu2 }
 0x374   :  { %v6148_v55 = vadd.f32 %v6145_v28, %v5946_v15  ;;  %v6223_v43 = vadd.f32 %v6222_v21, %v6183_v52  ;;  %v6226_v26 = vpop.f32.mrf.mxu1 }
 0x375   :  { %v6282_v22 = vpop.f32.mrf.mxu3 }
 0x376   :  { %v6253_v47 = vadd.f32 %v6252_v39, %v6223_v43  ;;  %7261 = vmatmul.f32.vlgmr.msrb.gmra.mxu0 %v9304_v27  ;;  %7297 = vmatmul.f32.gmra.mxu1 %v7197_v29 }
 0x378   :  { %v6283_v7 = vadd.f32 %v6282_v22, %v6253_v47  ;;  %7328 = vmatmul.f32.gmra.mxu2 %v9314_v17 }
 0x37a   :  { %7355 = vmatmul.f32.gmra.mxu3 %v9314_v17 }
 0x37b   :  { %v6191_v45 = vpop.f32.mrf.mxu0  ;;  %v6257_v10 = vpop.f32.mrf.mxu2 }
 0x37c   :  { %v6227_v61 = vadd.f32 %v6226_v26, %v6191_v45  ;;  %v6342_v59 = vpop.f32.mrf.mxu1 }
 0x37d   :  { %v6288_v53 = vpop.f32.mrf.mxu3 }
 0x37e   :  { %v6258_v48 = vadd.f32 %v6257_v10, %v6227_v61  ;;  %7266 = vmatmul.f32.gmra.mxu0 %v9323_v3 }
 0x380   :  { %v6289_v57 = vadd.f32 %v6288_v53, %v6258_v48 }
 0x383   :  { %v6315_v31 = vpop.f32.mrf.mxu0  ;;  %v6385_v42 = vpop.f32.mrf.mxu2 }
 0x384   :  { %v6316_v40 = vadd.f32 %v6315_v31, %v6283_v7  ;;  %v6346_v27 = vpop.f32.mrf.mxu1 }
 0x385   :  { %v6424_v11 = vpop.f32.mrf.mxu3 }
 0x386   :  { %v6343_v37 = vadd.f32 %v6342_v59, %v6316_v40  ;;  %v6425_v4 = vadd.f32 %v6424_v11, %v6385_v42 }
 0x388   :  { %v6349_v20 = vadd.f32 %v6343_v37, %v6147_v54 }
 0x38b   :  { %v6319_v13 = vpop.f32.mrf.mxu0  ;;  %v6393_v9 = vpop.f32.mrf.mxu2 }
 0x38c   :  { %v6320_v17 = vadd.f32 %v6319_v13, %v6289_v57  ;;  %v6484_v18 = vpop.f32.mrf.mxu1 }
 0x38d   :  { %v6428_v46 = vpop.f32.mrf.mxu3 }
 0x38e   :  { %v6347_v62 = vadd.f32 %v6346_v27, %v6320_v17  ;;  %v6429_v36 = vadd.f32 %v6428_v46, %v6393_v9 }
 0x390   :  { %v6350_v51 = vadd.f32 %v6347_v62, %v6148_v55 }
 0x393   :  { %v6454_v44 = vpop.f32.mrf.mxu0  ;;  %v6517_v30 = vpop.f32.mrf.mxu2 }
 0x394   :  { %v6455_v3 = vadd.f32 %v6454_v44, %v6425_v4  ;;  %v6490_v33 = vpop.f32.mrf.mxu1 }
 0x395   :  { %v6544_v16 = vpop.f32.mrf.mxu3 }
 0x396   :  { %v6485_v2 = vadd.f32 %v6484_v18, %v6455_v3 }
 0x398   :  { %v6518_v63 = vadd.f32 %v6517_v30, %v6485_v2 }
 0x39a   :  { %v6545_v41 = vadd.f32 %v6544_v16, %v6518_v63 }
 0x39b   :  { %v6459_v29 = vpop.f32.mrf.mxu0  ;;  %v6521_v23 = vpop.f32.mrf.mxu2 }
 0x39c   :  { %v6551_v24 = vadd.f32 %v6545_v41, %v6349_v20  ;;  %v6460_v60 = vadd.f32 %v6459_v29, %v6429_v36  ;;  %v6626_v15 = vpop.f32.mrf.mxu1 }
 0x39d   :  { %v6548_v5 = vpop.f32.mrf.mxu3 }
 0x39e   :  { %v6491_v50 = vadd.f32 %v6490_v33, %v6460_v60 }
 0x3a0   :  { %v6522_v1 = vadd.f32 %v6521_v23, %v6491_v50 }
 0x3a2   :  { %v6549_v25 = vadd.f32 %v6548_v5, %v6522_v1 }
 0x3a3   :  { %v6587_v0 = vpop.f32.mrf.mxu0  ;;  %v6656_v14 = vpop.f32.mrf.mxu2 }
 0x3a4   :  { %v6552_v6 = vadd.f32 %v6549_v25, %v6350_v51  ;;  %v6627_v12 = vadd.f32 %v6626_v15, %v6587_v0  ;;  %v6630_v34 = vpop.f32.mrf.mxu1 }
 0x3a5   :  { %v6686_v38 = vpop.f32.mrf.mxu3 }
 0x3a6   :  { %v6657_v35 = vadd.f32 %v6656_v14, %v6627_v12 }
 0x3a8   :  { %v6687_v56 = vadd.f32 %v6686_v38, %v6657_v35 }
 0x3ab   :  { %v6595_v8 = vpop.f32.mrf.mxu0  ;;  %v6661_v54 = vpop.f32.mrf.mxu2 }
 0x3ac   :  { %v6631_v32 = vadd.f32 %v6630_v34, %v6595_v8  ;;  %v6746_v21 = vpop.f32.mrf.mxu1 }
 0x3ad   :  { %v6692_v58 = vpop.f32.mrf.mxu3 }
 0x3ae   :  { %v6662_v49 = vadd.f32 %v6661_v54, %v6631_v32 }
 0x3b0   :  { %v6693_v19 = vadd.f32 %v6692_v58, %v6662_v49 }
 0x3b3   :  { %v6719_v28 = vpop.f32.mrf.mxu0  ;;  %v6789_v52 = vpop.f32.mrf.mxu2 }
 0x3b4   :  { %v6720_v39 = vadd.f32 %v6719_v28, %v6687_v56  ;;  %v6750_v43 = vpop.f32.mrf.mxu1 }
 0x3b5   :  { %v6828_v55 = vpop.f32.mrf.mxu3 }
 0x3b6   :  { %v6747_v22 = vadd.f32 %v6746_v21, %v6720_v39  ;;  %v6829_v30 = vadd.f32 %v6828_v55, %v6789_v52 }
 0x3b8   :  { %v6753_v26 = vadd.f32 %v6747_v22, %v6551_v24 }
 0x3bb   :  { %v6723_v47 = vpop.f32.mrf.mxu0  ;;  %v6797_v7 = vpop.f32.mrf.mxu2 }
 0x3bc   :  { %v6724_v45 = vadd.f32 %v6723_v47, %v6693_v19  ;;  %v6888_v61 = vpop.f32.mrf.mxu1 }
 0x3bd   :  { %v6832_v10 = vpop.f32.mrf.mxu3 }
 0x3be   :  { %v6751_v53 = vadd.f32 %v6750_v43, %v6724_v45  ;;  %v6833_v24 = vadd.f32 %v6832_v10, %v6797_v7 }
 0x3c0   :  { %v9341_v59 = vadd.f32 %v6751_v53, %v6552_v6 }
 0x3c3   :  { %v6858_v48 = vpop.f32.mrf.mxu0  ;;  %v6921_v57 = vpop.f32.mrf.mxu2 }
 0x3c4   :  { %v6894_v42 = vpop.f32.mrf.mxu1  ;;  %v6859_v16 = vadd.f32 %v6858_v48, %v6829_v30 }
 0x3c5   :  { %v6948_v31 = vpop.f32.mrf.mxu3 }
 0x3c6   :  { %v6889_v41 = vadd.f32 %v6888_v61, %v6859_v16 }
 0x3c8   :  { %v6922_v60 = vadd.f32 %v6921_v57, %v6889_v41 }
 0x3ca   :  { %v6949_v12 = vadd.f32 %v6948_v31, %v6922_v60 }
 0x3cb   :  { %v6863_v40 = vpop.f32.mrf.mxu0  ;;  %v6925_v11 = vpop.f32.mrf.mxu2 }
 0x3cc   :  { %v7030_v37 = vpop.f32.mrf.mxu1  ;;  %v6864_v5 = vadd.f32 %v6863_v40, %v6833_v24  ;;  %v6955_v32 = vadd.f32 %v6949_v12, %v6753_v26 }
 0x3cd   :  { %v6952_v27 = vpop.f32.mrf.mxu3 }
 0x3ce   :  { %v6895_v38 = vadd.f32 %v6894_v42, %v6864_v5 }
 0x3d0   :  { %v6926_v58 = vadd.f32 %v6925_v11, %v6895_v38 }
 0x3d2   :  { %v6953_v22 = vadd.f32 %v6952_v27, %v6926_v58 }
 0x3d3   :  { %v6991_v4 = vpop.f32.mrf.mxu0  ;;  %v7060_v20 = vpop.f32.mrf.mxu2 }
 0x3d4   :  { %v7034_v9 = vpop.f32.mrf.mxu1  ;;  %v7031_v33 = vadd.f32 %v7030_v37, %v6991_v4  ;;  %v6956_v53 = vadd.f32 %v6953_v22, %v9341_v59 }
 0x3d5   :  { %v7090_v13 = vpop.f32.mrf.mxu3 }
 0x3d6   :  { %v7061_v29 = vadd.f32 %v7060_v20, %v7031_v33 }
 0x3d8   :  { %v7091_v15 = vadd.f32 %v7090_v13, %v7061_v29 }
 0x3db   :  { %v6999_v17 = vpop.f32.mrf.mxu0  ;;  %v7065_v46 = vpop.f32.mrf.mxu2 }
 0x3dc   :  { %v7150_v62 = vpop.f32.mrf.mxu1  ;;  %v7035_v50 = vadd.f32 %v7034_v9, %v6999_v17 }
 0x3dd   :  { %v7096_v18 = vpop.f32.mrf.mxu3 }
 0x3de   :  { %v7066_v34 = vadd.f32 %v7065_v46, %v7035_v50 }
 0x3e0   :  { %v7097_v21 = vadd.f32 %v7096_v18, %v7066_v34 }
 0x3e3   :  { %v7123_v36 = vpop.f32.mrf.mxu0  ;;  %v7193_v51 = vpop.f32.mrf.mxu2 }
 0x3e4   :  { %v7154_v3 = vpop.f32.mrf.mxu1  ;;  %v7124_v25 = vadd.f32 %v7123_v36, %v7091_v15 }
 0x3e5   :  { %v7232_v44 = vpop.f32.mrf.mxu3 }
 0x3e6   :  { %v7233_v0 = vadd.f32 %v7232_v44, %v7193_v51  ;;  %v7151_v8 = vadd.f32 %v7150_v62, %v7124_v25 }
 0x3e8   :  { %v7157_v19 = vadd.f32 %v7151_v8, %v6955_v32 }
 0x3eb   :  { %v7127_v2 = vpop.f32.mrf.mxu0  ;;  %v7201_v63 = vpop.f32.mrf.mxu2 }
 0x3ec   :  { %v7292_v1 = vpop.f32.mrf.mxu1  ;;  %v7128_v28 = vadd.f32 %v7127_v2, %v7097_v21 }
 0x3ed   :  { %v7236_v23 = vpop.f32.mrf.mxu3 }
 0x3ee   :  { %v7237_v52 = vadd.f32 %v7236_v23, %v7201_v63  ;;  %v7155_v10 = vadd.f32 %v7154_v3, %v7128_v28 }
 0x3f0   :  { %v7158_v57 = vadd.f32 %v7155_v10, %v6956_v53 }
 0x3f3   :  { %v7262_v14 = vpop.f32.mrf.mxu0  ;;  %v7325_v6 = vpop.f32.mrf.mxu2 }
 0x3f4   :  { %v7263_v35 = vadd.f32 %v7262_v14, %v7233_v0  ;;  %v7298_v43 = vpop.f32.mrf.mxu1 }
 0x3f5   :  { %v7352_v56 = vpop.f32.mrf.mxu3 }
 0x3f6   :  { %v7293_v54 = vadd.f32 %v7292_v1, %v7263_v35 }
 0x3f8   :  { %v7326_v49 = vadd.f32 %v7325_v6, %v7293_v54 }
 0x3fa   :  { %v7353_v39 = vadd.f32 %v7352_v56, %v7326_v49 }
 0x3fb   :  { %v7267_v55 = vpop.f32.mrf.mxu0  ;;  %v7329_v45 = vpop.f32.mrf.mxu2 }
 0x3fc   :  { %v7359_v47 = vadd.f32 %v7353_v39, %v7157_v19  ;;  %v7268_v7 = vadd.f32 %v7267_v55, %v7237_v52 }
 0x3fd   :  { %v7356_v61 = vpop.f32.mrf.mxu3 }
 0x3fe   :  { %7370 = vst.msk [vmem:[%s9354_s2 + $0x10] sm:$0xff] %vm3723_vm2, %v7359_v47  ;;  %v7299_v26 = vadd.f32 %v7298_v43, %v7268_v7 }
 0x400   :  { %v7330_v48 = vadd.f32 %v7329_v45, %v7299_v26 }
 0x402   :  { %v7357_v31 = vadd.f32 %v7356_v61, %v7330_v48 }
 0x404   :  { %v7360_v42 = vadd.f32 %v7357_v31, %v7158_v57 }
 0x406   :  { %7371 = vst.msk [vmem:[%s9354_s2 + $0x18] sm:$0xf] %vm3725_vm3, %v7360_v42 }
 0x407   :  { %7368 = vsyncpa [#allocation4], 1 }
 0x408   :  { %7369 = vsyncpa [#allocation6], 1 }

</bundles_post_ra>
